<compile_context>
chip_gen: v7x
topology: tpu7x:2x2x1
jax: 0.10.0
libtpu: 0.0.40
codegen_flags: <defaults>
</compile_context>

<pallas_src>
import math

import jax
import jax.numpy as jnp
import numpy as np
from jax import lax
from jax.experimental import pallas as pl
from jax.experimental.pallas import tpu as pltpu


def _gelu_tanh(x):
    # TODO(synk): PyTorch F.gelu defaults to the exact erf-based GELU; the
    # tanh approximation is used here (and in the in-script reference) since
    # erf has no guaranteed Mosaic lowering. Max activation deviation < 1e-3.
    c = math.sqrt(2.0 / math.pi)
    return 0.5 * x * (1.0 + jnp.tanh(c * (x + 0.044715 * x * x * x)))


def _make_transformer_kernel(B, S, D, V, H, L, M):
    hd = D // H
    BS = B * S
    contract_last = (((1,), (1,)), ((), ()))  # contract last dim of both operands

    def kernel(tok_ref, emb_ref, pos_ref,
               wqkv_ref, wo_ref, bo_ref,
               w1_ref, b1_ref, w2_ref, b2_ref,
               out_ref, attn_scratch):
        f32 = jnp.float32

        # ---- embedding via one-hot matmul (gather-free, MXU-friendly) ----
        tok = tok_ref[...]                                        # (BS, 1) int32
        vocab_ids = lax.broadcasted_iota(jnp.int32, (BS, V), 1)   # (BS, V)
        onehot = (vocab_ids == tok).astype(f32)                   # (BS, V)
        emb = emb_ref[...]                                        # (V, D)
        x = jnp.dot(onehot, emb, preferred_element_type=f32)      # (BS, D)

        # ---- positional encoding (pre-tiled to (BS, D) in the wrapper) ----
        x = x + pos_ref[...]                                      # (BS, D)

        # ---- causal additive bias, built once for the whole kernel ----
        row = lax.broadcasted_iota(jnp.int32, (S, S), 0)
        col = lax.broadcasted_iota(jnp.int32, (S, S), 1)
        neg_bias = jnp.where(row >= col, 0.0, -1e30).astype(f32)  # (S, S)

        for l in range(L):                       # static unroll over layers
            # ---------------- attention ----------------
            # Fused QKV projection: one MXU matmul, (BS, 3D).
            qkv = jnp.dot(x, wqkv_ref[l], preferred_element_type=f32)

            for b in range(B):                   # static unroll (B=2)
                r0, r1 = b * S, (b + 1) * S
                for h in range(H):               # static unroll (H=4)
                    c0 = h * hd
                    qh = qkv[r0:r1, c0:c0 + hd]                      # (S, hd), pre-scaled
                    kh = qkv[r0:r1, D + c0:D + c0 + hd]
                    vh = qkv[r0:r1, 2 * D + c0:2 * D + c0 + hd]
                    # Q @ K^T without materializing a transpose.
                    s = lax.dot_general(qh, kh, contract_last,
                                        preferred_element_type=f32)  # (S, S)
                    s = s + neg_bias
                    m = jnp.max(s, axis=-1, keepdims=True)
                    p = jnp.exp(s - m)
                    denom = jnp.sum(p, axis=-1, keepdims=True)
                    attn = p * pl.reciprocal(denom, approx=True)
                    # Write head output directly into the slab (no concat).
                    attn_scratch[r0:r1, c0:c0 + hd] = jnp.dot(
                        attn, vh, preferred_element_type=f32)

            attn_out = attn_scratch[...]                             # (BS, D)
            proj = jnp.dot(attn_out, wo_ref[l], preferred_element_type=f32)
            x = x + proj + bo_ref[l]                                 # residual

            # ---------------- MLP ----------------
            h1 = jnp.dot(x, w1_ref[l], preferred_element_type=f32) + b1_ref[l]
            h1 = _gelu_tanh(h1)
            x = x + jnp.dot(h1, w2_ref[l], preferred_element_type=f32) + b2_ref[l]

        # ---- unembed: logits = x @ emb^T (weight tying), lane-dense out ----
        logits = lax.dot_general(x, emb, contract_last,
                                 preferred_element_type=f32)         # (BS, V)
        out_ref[...] = logits.astype(out_ref.dtype)

    return kernel


def transformer_pallas(tokens, emb, pos_emb, layers, num_heads):
    """
    tokens : (B, S) int32
    emb    : (vocab, d_model)  embedding table (tied with unembed)
    pos_emb: (max_seq_len, d_model)
    layers : list of dicts with PyTorch-layout weights:
             wq/wk/wv/wo (D, D), bo (D,), w1 (M, D), b1 (M,), w2 (D, M), b2 (D,)
    """
    B, S = tokens.shape
    V, D = emb.shape
    L = len(layers)
    M = layers[0]["w1"].shape[0]
    BS = B * S
    hd = D // num_heads
    scale = 1.0 / math.sqrt(hd)

    # Pre-transpose PyTorch (out, in) weights to (in, out): kernel does x @ W.
    # Fuse Q/K/V into one (D, 3D) block per layer; fold the attention scale
    # into the Q columns (one-time prep, zero in-kernel cost).
    wqkv = jnp.stack([
        jnp.concatenate([p["wq"].T * scale, p["wk"].T, p["wv"].T], axis=1)
        for p in layers
    ])                                                           # (L, D, 3D)
    wo = jnp.stack([p["wo"].T for p in layers])                  # (L, D, D)
    bo = jnp.stack([p["bo"].reshape(1, D) for p in layers])      # (L, 1, D)
    w1 = jnp.stack([p["w1"].T for p in layers])                  # (L, D, M)
    b1 = jnp.stack([p["b1"].reshape(1, M) for p in layers])      # (L, 1, M)
    w2 = jnp.stack([p["w2"].T for p in layers])                  # (L, M, D)
    b2 = jnp.stack([p["b2"].reshape(1, D) for p in layers])      # (L, 1, D)

    tok2d = tokens.reshape(BS, 1).astype(jnp.int32)
    pos = jnp.tile(pos_emb[:S], (B, 1))                          # (BS, D)

    kernel = _make_transformer_kernel(B, S, D, V, num_heads, L, M)
    vmem = pl.BlockSpec(memory_space=pltpu.MemorySpace.VMEM)

    logits = pl.pallas_call(
        kernel,
        out_shape=jax.ShapeDtypeStruct((BS, V), jnp.float32),
        in_specs=[vmem] * 10,
        out_specs=vmem,
        scratch_shapes=[pltpu.VMEM((BS, D), jnp.float32)],  # attn head slab
    )(tok2d, emb, pos, wqkv, wo, bo, w1, b1, w2, b2)

    return logits.reshape(B, S, V)


def transformer_reference(tokens, emb, pos_emb, layers, num_heads):
    """Pure-JAX reference mirroring the PyTorch forward."""
    B, S = tokens.shape
    V, D = emb.shape
    hd = D // num_heads
    scale = 1.0 / math.sqrt(hd)

    x = emb[tokens] + pos_emb[:S][None, :, :]
    mask = jnp.tril(jnp.ones((S, S), dtype=bool))

    for p in layers:
        q = (x @ p["wq"].T).reshape(B, S, num_heads, hd).transpose(0, 2, 1, 3)
        k = (x @ p["wk"].T).reshape(B, S, num_heads, hd).transpose(0, 2, 1, 3)
        v = (x @ p["wv"].T).reshape(B, S, num_heads, hd).transpose(0, 2, 1, 3)
        s = jnp.einsum("bhqd,bhkd->bhqk", q, k) * scale
        s = jnp.where(mask, s, -jnp.inf)
        a = jax.nn.softmax(s, axis=-1)
        o = jnp.einsum("bhqk,bhkd->bhqd", a, v).transpose(0, 2, 1, 3).reshape(B, S, D)
        x = x + (o @ p["wo"].T + p["bo"])
        h1 = _gelu_tanh(x @ p["w1"].T + p["b1"])
        x = x + (h1 @ p["w2"].T + p["b2"])

    return x @ emb.T


if __name__ == "__main__":
    # Full-f32 matmuls in the XLA reference path so the comparison is exact-ish.
    jax.config.update("jax_default_matmul_precision", "highest")

    # Small config consistent with the module.
    B, S = 2, 8
    vocab_size, d_model, num_heads, d_mlp, num_layers = 128, 32, 4, 64, 2
    max_seq_len = 16
    init_std = 0.02

    key = jax.random.PRNGKey(0)
    keys = jax.random.split(key, 3 + num_layers * 9)

    tokens = jax.random.randint(keys[0], (B, S), 0, vocab_size, dtype=jnp.int32)
    emb = init_std * jax.random.normal(keys[1], (vocab_size, d_model), jnp.float32)
    pos_emb = init_std * jax.random.normal(keys[2], (max_seq_len, d_model), jnp.float32)

    layers = []
    for l in range(num_layers):
        k = keys[3 + l * 9: 3 + (l + 1) * 9]
        layers.append(dict(
            wq=init_std * jax.random.normal(k[0], (d_model, d_model), jnp.float32),
            wk=init_std * jax.random.normal(k[1], (d_model, d_model), jnp.float32),
            wv=init_std * jax.random.normal(k[2], (d_model, d_model), jnp.float32),
            wo=init_std * jax.random.normal(k[3], (d_model, d_model), jnp.float32),
            bo=init_std * jax.random.normal(k[4], (d_model,), jnp.float32),
            w1=init_std * jax.random.normal(k[5], (d_mlp, d_model), jnp.float32),
            b1=init_std * jax.random.normal(k[6], (d_mlp,), jnp.float32),
            w2=init_std * jax.random.normal(k[7], (d_model, d_mlp), jnp.float32),
            b2=init_std * jax.random.normal(k[8], (d_model,), jnp.float32),
        ))

    out = transformer_pallas(tokens, emb, pos_emb, layers, num_heads)
    out = jax.block_until_ready(out)

    ref = transformer_reference(tokens, emb, pos_emb, layers, num_heads)
    np.testing.assert_allclose(np.asarray(out), np.asarray(ref),
                               rtol=5e-3, atol=5e-5)

    print("KERNEL_OK")
</pallas_src>

<mosaic_0001>
module attributes {stable_mosaic.version = 11 : i64} {
  func.func @kernel(%arg0: memref<16x1xi32, #tpu.memory_space<vmem>>, %arg1: memref<128x32xf32, #tpu.memory_space<vmem>>, %arg2: memref<16x32xf32, #tpu.memory_space<vmem>>, %arg3: memref<2x32x96xf32, #tpu.memory_space<vmem>>, %arg4: memref<2x32x32xf32, #tpu.memory_space<vmem>>, %arg5: memref<2x1x32xf32, #tpu.memory_space<vmem>>, %arg6: memref<2x32x64xf32, #tpu.memory_space<vmem>>, %arg7: memref<2x1x64xf32, #tpu.memory_space<vmem>>, %arg8: memref<2x64x32xf32, #tpu.memory_space<vmem>>, %arg9: memref<2x1x32xf32, #tpu.memory_space<vmem>>, %arg10: memref<16x128xf32, #tpu.memory_space<vmem>>, %arg11: memref<16x32xf32, #tpu.memory_space<vmem>>) attributes {dimension_semantics = [], scalar_prefetch = 0 : i64, scratch_operands = 1 : i64, tpu.core_type = #tpu.core_type<tc>} {
    %c0 = arith.constant 0 : index
    %c0_0 = arith.constant 0 : index
    %0 = vector.load %arg0[%c0, %c0_0] : memref<16x1xi32, #tpu.memory_space<vmem>>, vector<16x1xi32>
    %1 = tpu.iota {dimensions = array<i32: 1>} : vector<16x128xi32>
    %2 = vector.broadcast %0 : vector<16x1xi32> to vector<16x128xi32>
    %3 = arith.cmpi eq, %1, %2 : vector<16x128xi32>
    %4 = arith.extui %3 : vector<16x128xi1> to vector<16x128xi32>
    %5 = arith.sitofp %4 : vector<16x128xi32> to vector<16x128xf32>
    %c0_1 = arith.constant 0 : index
    %c0_2 = arith.constant 0 : index
    %6 = vector.load %arg1[%c0_1, %c0_2] : memref<128x32xf32, #tpu.memory_space<vmem>>, vector<128x32xf32>
    %cst = arith.constant dense<0.000000e+00> : vector<16x32xf32>
    %7 = tpu.matmul %5, %6, %cst {dimension_numbers = #tpu.dot_dimension_numbers<[1], [0], [0], [1], [0, 0, 1, 1], [], []>, precision = #tpu.contract_precision<fp32>} : vector<16x128xf32>, vector<128x32xf32>, vector<16x32xf32> -> vector<16x32xf32>
    %c0_3 = arith.constant 0 : index
    %c0_4 = arith.constant 0 : index
    %8 = vector.load %arg2[%c0_3, %c0_4] : memref<16x32xf32, #tpu.memory_space<vmem>>, vector<16x32xf32>
    %9 = arith.addf %7, %8 : vector<16x32xf32>
    %10 = tpu.iota {dimensions = array<i32: 0>} : vector<8x8xi32>
    %11 = tpu.iota {dimensions = array<i32: 1>} : vector<8x8xi32>
    %12 = arith.cmpi sge, %10, %11 : vector<8x8xi32>
    %cst_5 = arith.constant 0.000000e+00 : f32
    %cst_6 = arith.constant -1.000000e+30 : f32
    %13 = vector.broadcast %cst_5 : f32 to vector<8x8xf32>
    %14 = vector.broadcast %cst_6 : f32 to vector<8x8xf32>
    %15 = arith.select %12, %13, %14 : vector<8x8xi1>, vector<8x8xf32>
    %c0_7 = arith.constant 0 : index
    %c0_8 = arith.constant 0 : index
    %c0_9 = arith.constant 0 : index
    %16 = vector.load %arg3[%c0_7, %c0_8, %c0_9] : memref<2x32x96xf32, #tpu.memory_space<vmem>>, vector<1x32x96xf32>
    %17 = vector.shape_cast %16 : vector<1x32x96xf32> to vector<32x96xf32>
    %cst_10 = arith.constant dense<0.000000e+00> : vector<16x96xf32>
    %18 = tpu.matmul %9, %17, %cst_10 {dimension_numbers = #tpu.dot_dimension_numbers<[1], [0], [0], [1], [0, 0, 1, 1], [], []>, precision = #tpu.contract_precision<fp32>} : vector<16x32xf32>, vector<32x96xf32>, vector<16x96xf32> -> vector<16x96xf32>
    %19 = vector.extract_strided_slice %18 {offsets = [0, 0], sizes = [8, 8], strides = [1, 1]} : vector<16x96xf32> to vector<8x8xf32>
    %20 = vector.extract_strided_slice %18 {offsets = [0, 32], sizes = [8, 8], strides = [1, 1]} : vector<16x96xf32> to vector<8x8xf32>
    %21 = vector.extract_strided_slice %18 {offsets = [0, 64], sizes = [8, 8], strides = [1, 1]} : vector<16x96xf32> to vector<8x8xf32>
    %cst_11 = arith.constant dense<0.000000e+00> : vector<8x8xf32>
    %22 = tpu.matmul %19, %20, %cst_11 {dimension_numbers = #tpu.dot_dimension_numbers<[1], [1], [0], [0], [0, 0, 1, 0], [], []>, precision = #tpu.contract_precision<fp32>} : vector<8x8xf32>, vector<8x8xf32>, vector<8x8xf32> -> vector<8x8xf32>
    %23 = arith.addf %22, %15 : vector<8x8xf32>
    %cst_12 = arith.constant dense<0xFF800000> : vector<8xf32>
    %24 = vector.multi_reduction <maximumf>, %23, %cst_12 [1] : vector<8x8xf32> to vector<8xf32>
    %25 = vector.shape_cast %24 : vector<8xf32> to vector<8x1xf32>
    %26 = vector.broadcast %25 : vector<8x1xf32> to vector<8x8xf32>
    %27 = arith.subf %23, %26 : vector<8x8xf32>
    %28 = math.exp %27 : vector<8x8xf32>
    %cst_13 = arith.constant dense<0.000000e+00> : vector<8xf32>
    %29 = vector.multi_reduction <add>, %28, %cst_13 [1] : vector<8x8xf32> to vector<8xf32>
    %30 = vector.shape_cast %29 : vector<8xf32> to vector<8x1xf32>
    %31 = tpu.reciprocal %30 {approx = true} : vector<8x1xf32> -> vector<8x1xf32>
    %32 = vector.broadcast %31 : vector<8x1xf32> to vector<8x8xf32>
    %33 = arith.mulf %28, %32 : vector<8x8xf32>
    %cst_14 = arith.constant dense<0.000000e+00> : vector<8x8xf32>
    %34 = tpu.matmul %33, %21, %cst_14 {dimension_numbers = #tpu.dot_dimension_numbers<[1], [0], [0], [1], [0, 0, 1, 1], [], []>, precision = #tpu.contract_precision<fp32>} : vector<8x8xf32>, vector<8x8xf32>, vector<8x8xf32> -> vector<8x8xf32>
    %c0_15 = arith.constant 0 : index
    %c0_16 = arith.constant 0 : index
    %35 = vector.load %arg11[%c0_15, %c0_16] : memref<16x32xf32, #tpu.memory_space<vmem>>, vector<8x8xf32>
    tpu.vector_store %arg11[%c0_15, %c0_16], %34 {strides = array<i32>} : memref<16x32xf32, #tpu.memory_space<vmem>>, vector<8x8xf32>,
    %36 = vector.extract_strided_slice %18 {offsets = [0, 8], sizes = [8, 8], strides = [1, 1]} : vector<16x96xf32> to vector<8x8xf32>
    %37 = vector.extract_strided_slice %18 {offsets = [0, 40], sizes = [8, 8], strides = [1, 1]} : vector<16x96xf32> to vector<8x8xf32>
    %38 = vector.extract_strided_slice %18 {offsets = [0, 72], sizes = [8, 8], strides = [1, 1]} : vector<16x96xf32> to vector<8x8xf32>
    %cst_17 = arith.constant dense<0.000000e+00> : vector<8x8xf32>
    %39 = tpu.matmul %36, %37, %cst_17 {dimension_numbers = #tpu.dot_dimension_numbers<[1], [1], [0], [0], [0, 0, 1, 0], [], []>, precision = #tpu.contract_precision<fp32>} : vector<8x8xf32>, vector<8x8xf32>, vector<8x8xf32> -> vector<8x8xf32>
    %40 = arith.addf %39, %15 : vector<8x8xf32>
    %cst_18 = arith.constant dense<0xFF800000> : vector<8xf32>
    %41 = vector.multi_reduction <maximumf>, %40, %cst_18 [1] : vector<8x8xf32> to vector<8xf32>
    %42 = vector.shape_cast %41 : vector<8xf32> to vector<8x1xf32>
    %43 = vector.broadcast %42 : vector<8x1xf32> to vector<8x8xf32>
    %44 = arith.subf %40, %43 : vector<8x8xf32>
    %45 = math.exp %44 : vector<8x8xf32>
    %cst_19 = arith.constant dense<0.000000e+00> : vector<8xf32>
    %46 = vector.multi_reduction <add>, %45, %cst_19 [1] : vector<8x8xf32> to vector<8xf32>
    %47 = vector.shape_cast %46 : vector<8xf32> to vector<8x1xf32>
    %48 = tpu.reciprocal %47 {approx = true} : vector<8x1xf32> -> vector<8x1xf32>
    %49 = vector.broadcast %48 : vector<8x1xf32> to vector<8x8xf32>
    %50 = arith.mulf %45, %49 : vector<8x8xf32>
    %cst_20 = arith.constant dense<0.000000e+00> : vector<8x8xf32>
    %51 = tpu.matmul %50, %38, %cst_20 {dimension_numbers = #tpu.dot_dimension_numbers<[1], [0], [0], [1], [0, 0, 1, 1], [], []>, precision = #tpu.contract_precision<fp32>} : vector<8x8xf32>, vector<8x8xf32>, vector<8x8xf32> -> vector<8x8xf32>
    %c0_21 = arith.constant 0 : index
    %c8 = arith.constant 8 : index
    %52 = vector.load %arg11[%c0_21, %c8] : memref<16x32xf32, #tpu.memory_space<vmem>>, vector<8x8xf32>
    tpu.vector_store %arg11[%c0_21, %c8], %51 {strides = array<i32>} : memref<16x32xf32, #tpu.memory_space<vmem>>, vector<8x8xf32>,
    %53 = vector.extract_strided_slice %18 {offsets = [0, 16], sizes = [8, 8], strides = [1, 1]} : vector<16x96xf32> to vector<8x8xf32>
    %54 = vector.extract_strided_slice %18 {offsets = [0, 48], sizes = [8, 8], strides = [1, 1]} : vector<16x96xf32> to vector<8x8xf32>
    %55 = vector.extract_strided_slice %18 {offsets = [0, 80], sizes = [8, 8], strides = [1, 1]} : vector<16x96xf32> to vector<8x8xf32>
    %cst_22 = arith.constant dense<0.000000e+00> : vector<8x8xf32>
    %56 = tpu.matmul %53, %54, %cst_22 {dimension_numbers = #tpu.dot_dimension_numbers<[1], [1], [0], [0], [0, 0, 1, 0], [], []>, precision = #tpu.contract_precision<fp32>} : vector<8x8xf32>, vector<8x8xf32>, vector<8x8xf32> -> vector<8x8xf32>
    %57 = arith.addf %56, %15 : vector<8x8xf32>
    %cst_23 = arith.constant dense<0xFF800000> : vector<8xf32>
    %58 = vector.multi_reduction <maximumf>, %57, %cst_23 [1] : vector<8x8xf32> to vector<8xf32>
    %59 = vector.shape_cast %58 : vector<8xf32> to vector<8x1xf32>
    %60 = vector.broadcast %59 : vector<8x1xf32> to vector<8x8xf32>
    %61 = arith.subf %57, %60 : vector<8x8xf32>
    %62 = math.exp %61 : vector<8x8xf32>
    %cst_24 = arith.constant dense<0.000000e+00> : vector<8xf32>
    %63 = vector.multi_reduction <add>, %62, %cst_24 [1] : vector<8x8xf32> to vector<8xf32>
    %64 = vector.shape_cast %63 : vector<8xf32> to vector<8x1xf32>
    %65 = tpu.reciprocal %64 {approx = true} : vector<8x1xf32> -> vector<8x1xf32>
    %66 = vector.broadcast %65 : vector<8x1xf32> to vector<8x8xf32>
    %67 = arith.mulf %62, %66 : vector<8x8xf32>
    %cst_25 = arith.constant dense<0.000000e+00> : vector<8x8xf32>
    %68 = tpu.matmul %67, %55, %cst_25 {dimension_numbers = #tpu.dot_dimension_numbers<[1], [0], [0], [1], [0, 0, 1, 1], [], []>, precision = #tpu.contract_precision<fp32>} : vector<8x8xf32>, vector<8x8xf32>, vector<8x8xf32> -> vector<8x8xf32>
    %c0_26 = arith.constant 0 : index
    %c16 = arith.constant 16 : index
    %69 = vector.load %arg11[%c0_26, %c16] : memref<16x32xf32, #tpu.memory_space<vmem>>, vector<8x8xf32>
    tpu.vector_store %arg11[%c0_26, %c16], %68 {strides = array<i32>} : memref<16x32xf32, #tpu.memory_space<vmem>>, vector<8x8xf32>,
    %70 = vector.extract_strided_slice %18 {offsets = [0, 24], sizes = [8, 8], strides = [1, 1]} : vector<16x96xf32> to vector<8x8xf32>
    %71 = vector.extract_strided_slice %18 {offsets = [0, 56], sizes = [8, 8], strides = [1, 1]} : vector<16x96xf32> to vector<8x8xf32>
    %72 = vector.extract_strided_slice %18 {offsets = [0, 88], sizes = [8, 8], strides = [1, 1]} : vector<16x96xf32> to vector<8x8xf32>
    %cst_27 = arith.constant dense<0.000000e+00> : vector<8x8xf32>
    %73 = tpu.matmul %70, %71, %cst_27 {dimension_numbers = #tpu.dot_dimension_numbers<[1], [1], [0], [0], [0, 0, 1, 0], [], []>, precision = #tpu.contract_precision<fp32>} : vector<8x8xf32>, vector<8x8xf32>, vector<8x8xf32> -> vector<8x8xf32>
    %74 = arith.addf %73, %15 : vector<8x8xf32>
    %cst_28 = arith.constant dense<0xFF800000> : vector<8xf32>
    %75 = vector.multi_reduction <maximumf>, %74, %cst_28 [1] : vector<8x8xf32> to vector<8xf32>
    %76 = vector.shape_cast %75 : vector<8xf32> to vector<8x1xf32>
    %77 = vector.broadcast %76 : vector<8x1xf32> to vector<8x8xf32>
    %78 = arith.subf %74, %77 : vector<8x8xf32>
    %79 = math.exp %78 : vector<8x8xf32>
    %cst_29 = arith.constant dense<0.000000e+00> : vector<8xf32>
    %80 = vector.multi_reduction <add>, %79, %cst_29 [1] : vector<8x8xf32> to vector<8xf32>
    %81 = vector.shape_cast %80 : vector<8xf32> to vector<8x1xf32>
    %82 = tpu.reciprocal %81 {approx = true} : vector<8x1xf32> -> vector<8x1xf32>
    %83 = vector.broadcast %82 : vector<8x1xf32> to vector<8x8xf32>
    %84 = arith.mulf %79, %83 : vector<8x8xf32>
    %cst_30 = arith.constant dense<0.000000e+00> : vector<8x8xf32>
    %85 = tpu.matmul %84, %72, %cst_30 {dimension_numbers = #tpu.dot_dimension_numbers<[1], [0], [0], [1], [0, 0, 1, 1], [], []>, precision = #tpu.contract_precision<fp32>} : vector<8x8xf32>, vector<8x8xf32>, vector<8x8xf32> -> vector<8x8xf32>
    %c0_31 = arith.constant 0 : index
    %c24 = arith.constant 24 : index
    %86 = vector.load %arg11[%c0_31, %c24] : memref<16x32xf32, #tpu.memory_space<vmem>>, vector<8x8xf32>
    tpu.vector_store %arg11[%c0_31, %c24], %85 {strides = array<i32>} : memref<16x32xf32, #tpu.memory_space<vmem>>, vector<8x8xf32>,
    %87 = vector.extract_strided_slice %18 {offsets = [8, 0], sizes = [8, 8], strides = [1, 1]} : vector<16x96xf32> to vector<8x8xf32>
    %88 = vector.extract_strided_slice %18 {offsets = [8, 32], sizes = [8, 8], strides = [1, 1]} : vector<16x96xf32> to vector<8x8xf32>
    %89 = vector.extract_strided_slice %18 {offsets = [8, 64], sizes = [8, 8], strides = [1, 1]} : vector<16x96xf32> to vector<8x8xf32>
    %cst_32 = arith.constant dense<0.000000e+00> : vector<8x8xf32>
    %90 = tpu.matmul %87, %88, %cst_32 {dimension_numbers = #tpu.dot_dimension_numbers<[1], [1], [0], [0], [0, 0, 1, 0], [], []>, precision = #tpu.contract_precision<fp32>} : vector<8x8xf32>, vector<8x8xf32>, vector<8x8xf32> -> vector<8x8xf32>
    %91 = arith.addf %90, %15 : vector<8x8xf32>
    %cst_33 = arith.constant dense<0xFF800000> : vector<8xf32>
    %92 = vector.multi_reduction <maximumf>, %91, %cst_33 [1] : vector<8x8xf32> to vector<8xf32>
    %93 = vector.shape_cast %92 : vector<8xf32> to vector<8x1xf32>
    %94 = vector.broadcast %93 : vector<8x1xf32> to vector<8x8xf32>
    %95 = arith.subf %91, %94 : vector<8x8xf32>
    %96 = math.exp %95 : vector<8x8xf32>
    %cst_34 = arith.constant dense<0.000000e+00> : vector<8xf32>
    %97 = vector.multi_reduction <add>, %96, %cst_34 [1] : vector<8x8xf32> to vector<8xf32>
    %98 = vector.shape_cast %97 : vector<8xf32> to vector<8x1xf32>
    %99 = tpu.reciprocal %98 {approx = true} : vector<8x1xf32> -> vector<8x1xf32>
    %100 = vector.broadcast %99 : vector<8x1xf32> to vector<8x8xf32>
    %101 = arith.mulf %96, %100 : vector<8x8xf32>
    %cst_35 = arith.constant dense<0.000000e+00> : vector<8x8xf32>
    %102 = tpu.matmul %101, %89, %cst_35 {dimension_numbers = #tpu.dot_dimension_numbers<[1], [0], [0], [1], [0, 0, 1, 1], [], []>, precision = #tpu.contract_precision<fp32>} : vector<8x8xf32>, vector<8x8xf32>, vector<8x8xf32> -> vector<8x8xf32>
    %c8_36 = arith.constant 8 : index
    %c0_37 = arith.constant 0 : index
    %103 = vector.load %arg11[%c8_36, %c0_37] : memref<16x32xf32, #tpu.memory_space<vmem>>, vector<8x8xf32>
    tpu.vector_store %arg11[%c8_36, %c0_37], %102 {strides = array<i32>} : memref<16x32xf32, #tpu.memory_space<vmem>>, vector<8x8xf32>,
    %104 = vector.extract_strided_slice %18 {offsets = [8, 8], sizes = [8, 8], strides = [1, 1]} : vector<16x96xf32> to vector<8x8xf32>
    %105 = vector.extract_strided_slice %18 {offsets = [8, 40], sizes = [8, 8], strides = [1, 1]} : vector<16x96xf32> to vector<8x8xf32>
    %106 = vector.extract_strided_slice %18 {offsets = [8, 72], sizes = [8, 8], strides = [1, 1]} : vector<16x96xf32> to vector<8x8xf32>
    %cst_38 = arith.constant dense<0.000000e+00> : vector<8x8xf32>
    %107 = tpu.matmul %104, %105, %cst_38 {dimension_numbers = #tpu.dot_dimension_numbers<[1], [1], [0], [0], [0, 0, 1, 0], [], []>, precision = #tpu.contract_precision<fp32>} : vector<8x8xf32>, vector<8x8xf32>, vector<8x8xf32> -> vector<8x8xf32>
    %108 = arith.addf %107, %15 : vector<8x8xf32>
    %cst_39 = arith.constant dense<0xFF800000> : vector<8xf32>
    %109 = vector.multi_reduction <maximumf>, %108, %cst_39 [1] : vector<8x8xf32> to vector<8xf32>
    %110 = vector.shape_cast %109 : vector<8xf32> to vector<8x1xf32>
    %111 = vector.broadcast %110 : vector<8x1xf32> to vector<8x8xf32>
    %112 = arith.subf %108, %111 : vector<8x8xf32>
    %113 = math.exp %112 : vector<8x8xf32>
    %cst_40 = arith.constant dense<0.000000e+00> : vector<8xf32>
    %114 = vector.multi_reduction <add>, %113, %cst_40 [1] : vector<8x8xf32> to vector<8xf32>
    %115 = vector.shape_cast %114 : vector<8xf32> to vector<8x1xf32>
    %116 = tpu.reciprocal %115 {approx = true} : vector<8x1xf32> -> vector<8x1xf32>
    %117 = vector.broadcast %116 : vector<8x1xf32> to vector<8x8xf32>
    %118 = arith.mulf %113, %117 : vector<8x8xf32>
    %cst_41 = arith.constant dense<0.000000e+00> : vector<8x8xf32>
    %119 = tpu.matmul %118, %106, %cst_41 {dimension_numbers = #tpu.dot_dimension_numbers<[1], [0], [0], [1], [0, 0, 1, 1], [], []>, precision = #tpu.contract_precision<fp32>} : vector<8x8xf32>, vector<8x8xf32>, vector<8x8xf32> -> vector<8x8xf32>
    %c8_42 = arith.constant 8 : index
    %c8_43 = arith.constant 8 : index
    %120 = vector.load %arg11[%c8_42, %c8_43] : memref<16x32xf32, #tpu.memory_space<vmem>>, vector<8x8xf32>
    tpu.vector_store %arg11[%c8_42, %c8_43], %119 {strides = array<i32>} : memref<16x32xf32, #tpu.memory_space<vmem>>, vector<8x8xf32>,
    %121 = vector.extract_strided_slice %18 {offsets = [8, 16], sizes = [8, 8], strides = [1, 1]} : vector<16x96xf32> to vector<8x8xf32>
    %122 = vector.extract_strided_slice %18 {offsets = [8, 48], sizes = [8, 8], strides = [1, 1]} : vector<16x96xf32> to vector<8x8xf32>
    %123 = vector.extract_strided_slice %18 {offsets = [8, 80], sizes = [8, 8], strides = [1, 1]} : vector<16x96xf32> to vector<8x8xf32>
    %cst_44 = arith.constant dense<0.000000e+00> : vector<8x8xf32>
    %124 = tpu.matmul %121, %122, %cst_44 {dimension_numbers = #tpu.dot_dimension_numbers<[1], [1], [0], [0], [0, 0, 1, 0], [], []>, precision = #tpu.contract_precision<fp32>} : vector<8x8xf32>, vector<8x8xf32>, vector<8x8xf32> -> vector<8x8xf32>
    %125 = arith.addf %124, %15 : vector<8x8xf32>
    %cst_45 = arith.constant dense<0xFF800000> : vector<8xf32>
    %126 = vector.multi_reduction <maximumf>, %125, %cst_45 [1] : vector<8x8xf32> to vector<8xf32>
    %127 = vector.shape_cast %126 : vector<8xf32> to vector<8x1xf32>
    %128 = vector.broadcast %127 : vector<8x1xf32> to vector<8x8xf32>
    %129 = arith.subf %125, %128 : vector<8x8xf32>
    %130 = math.exp %129 : vector<8x8xf32>
    %cst_46 = arith.constant dense<0.000000e+00> : vector<8xf32>
    %131 = vector.multi_reduction <add>, %130, %cst_46 [1] : vector<8x8xf32> to vector<8xf32>
    %132 = vector.shape_cast %131 : vector<8xf32> to vector<8x1xf32>
    %133 = tpu.reciprocal %132 {approx = true} : vector<8x1xf32> -> vector<8x1xf32>
    %134 = vector.broadcast %133 : vector<8x1xf32> to vector<8x8xf32>
    %135 = arith.mulf %130, %134 : vector<8x8xf32>
    %cst_47 = arith.constant dense<0.000000e+00> : vector<8x8xf32>
    %136 = tpu.matmul %135, %123, %cst_47 {dimension_numbers = #tpu.dot_dimension_numbers<[1], [0], [0], [1], [0, 0, 1, 1], [], []>, precision = #tpu.contract_precision<fp32>} : vector<8x8xf32>, vector<8x8xf32>, vector<8x8xf32> -> vector<8x8xf32>
    %c8_48 = arith.constant 8 : index
    %c16_49 = arith.constant 16 : index
    %137 = vector.load %arg11[%c8_48, %c16_49] : memref<16x32xf32, #tpu.memory_space<vmem>>, vector<8x8xf32>
    tpu.vector_store %arg11[%c8_48, %c16_49], %136 {strides = array<i32>} : memref<16x32xf32, #tpu.memory_space<vmem>>, vector<8x8xf32>,
    %138 = vector.extract_strided_slice %18 {offsets = [8, 24], sizes = [8, 8], strides = [1, 1]} : vector<16x96xf32> to vector<8x8xf32>
    %139 = vector.extract_strided_slice %18 {offsets = [8, 56], sizes = [8, 8], strides = [1, 1]} : vector<16x96xf32> to vector<8x8xf32>
    %140 = vector.extract_strided_slice %18 {offsets = [8, 88], sizes = [8, 8], strides = [1, 1]} : vector<16x96xf32> to vector<8x8xf32>
    %cst_50 = arith.constant dense<0.000000e+00> : vector<8x8xf32>
    %141 = tpu.matmul %138, %139, %cst_50 {dimension_numbers = #tpu.dot_dimension_numbers<[1], [1], [0], [0], [0, 0, 1, 0], [], []>, precision = #tpu.contract_precision<fp32>} : vector<8x8xf32>, vector<8x8xf32>, vector<8x8xf32> -> vector<8x8xf32>
    %142 = arith.addf %141, %15 : vector<8x8xf32>
    %cst_51 = arith.constant dense<0xFF800000> : vector<8xf32>
    %143 = vector.multi_reduction <maximumf>, %142, %cst_51 [1] : vector<8x8xf32> to vector<8xf32>
    %144 = vector.shape_cast %143 : vector<8xf32> to vector<8x1xf32>
    %145 = vector.broadcast %144 : vector<8x1xf32> to vector<8x8xf32>
    %146 = arith.subf %142, %145 : vector<8x8xf32>
    %147 = math.exp %146 : vector<8x8xf32>
    %cst_52 = arith.constant dense<0.000000e+00> : vector<8xf32>
    %148 = vector.multi_reduction <add>, %147, %cst_52 [1] : vector<8x8xf32> to vector<8xf32>
    %149 = vector.shape_cast %148 : vector<8xf32> to vector<8x1xf32>
    %150 = tpu.reciprocal %149 {approx = true} : vector<8x1xf32> -> vector<8x1xf32>
    %151 = vector.broadcast %150 : vector<8x1xf32> to vector<8x8xf32>
    %152 = arith.mulf %147, %151 : vector<8x8xf32>
    %cst_53 = arith.constant dense<0.000000e+00> : vector<8x8xf32>
    %153 = tpu.matmul %152, %140, %cst_53 {dimension_numbers = #tpu.dot_dimension_numbers<[1], [0], [0], [1], [0, 0, 1, 1], [], []>, precision = #tpu.contract_precision<fp32>} : vector<8x8xf32>, vector<8x8xf32>, vector<8x8xf32> -> vector<8x8xf32>
    %c8_54 = arith.constant 8 : index
    %c24_55 = arith.constant 24 : index
    %154 = vector.load %arg11[%c8_54, %c24_55] : memref<16x32xf32, #tpu.memory_space<vmem>>, vector<8x8xf32>
    tpu.vector_store %arg11[%c8_54, %c24_55], %153 {strides = array<i32>} : memref<16x32xf32, #tpu.memory_space<vmem>>, vector<8x8xf32>,
    %c0_56 = arith.constant 0 : index
    %c0_57 = arith.constant 0 : index
    %155 = vector.load %arg11[%c0_56, %c0_57] : memref<16x32xf32, #tpu.memory_space<vmem>>, vector<16x32xf32>
    %c0_58 = arith.constant 0 : index
    %c0_59 = arith.constant 0 : index
    %c0_60 = arith.constant 0 : index
    %156 = vector.load %arg4[%c0_58, %c0_59, %c0_60] : memref<2x32x32xf32, #tpu.memory_space<vmem>>, vector<1x32x32xf32>
    %157 = vector.shape_cast %156 : vector<1x32x32xf32> to vector<32x32xf32>
    %cst_61 = arith.constant dense<0.000000e+00> : vector<16x32xf32>
    %158 = tpu.matmul %155, %157, %cst_61 {dimension_numbers = #tpu.dot_dimension_numbers<[1], [0], [0], [1], [0, 0, 1, 1], [], []>, precision = #tpu.contract_precision<fp32>} : vector<16x32xf32>, vector<32x32xf32>, vector<16x32xf32> -> vector<16x32xf32>
    %159 = arith.addf %9, %158 : vector<16x32xf32>
    %c0_62 = arith.constant 0 : index
    %c0_63 = arith.constant 0 : index
    %c0_64 = arith.constant 0 : index
    %160 = vector.load %arg5[%c0_62, %c0_63, %c0_64] : memref<2x1x32xf32, #tpu.memory_space<vmem>>, vector<1x1x32xf32>
    %161 = vector.shape_cast %160 : vector<1x1x32xf32> to vector<1x32xf32>
    %162 = vector.broadcast %161 : vector<1x32xf32> to vector<16x32xf32>
    %163 = arith.addf %159, %162 : vector<16x32xf32>
    %c0_65 = arith.constant 0 : index
    %c0_66 = arith.constant 0 : index
    %c0_67 = arith.constant 0 : index
    %164 = vector.load %arg6[%c0_65, %c0_66, %c0_67] : memref<2x32x64xf32, #tpu.memory_space<vmem>>, vector<1x32x64xf32>
    %165 = vector.shape_cast %164 : vector<1x32x64xf32> to vector<32x64xf32>
    %cst_68 = arith.constant dense<0.000000e+00> : vector<16x64xf32>
    %166 = tpu.matmul %163, %165, %cst_68 {dimension_numbers = #tpu.dot_dimension_numbers<[1], [0], [0], [1], [0, 0, 1, 1], [], []>, precision = #tpu.contract_precision<fp32>} : vector<16x32xf32>, vector<32x64xf32>, vector<16x64xf32> -> vector<16x64xf32>
    %c0_69 = arith.constant 0 : index
    %c0_70 = arith.constant 0 : index
    %c0_71 = arith.constant 0 : index
    %167 = vector.load %arg7[%c0_69, %c0_70, %c0_71] : memref<2x1x64xf32, #tpu.memory_space<vmem>>, vector<1x1x64xf32>
    %168 = vector.shape_cast %167 : vector<1x1x64xf32> to vector<1x64xf32>
    %169 = vector.broadcast %168 : vector<1x64xf32> to vector<16x64xf32>
    %170 = arith.addf %166, %169 : vector<16x64xf32>
    %cst_72 = arith.constant 5.000000e-01 : f32
    %171 = vector.broadcast %cst_72 : f32 to vector<16x64xf32>
    %172 = arith.mulf %171, %170 : vector<16x64xf32>
    %cst_73 = arith.constant 4.471500e-02 : f32
    %173 = vector.broadcast %cst_73 : f32 to vector<16x64xf32>
    %174 = arith.mulf %173, %170 : vector<16x64xf32>
    %175 = arith.mulf %174, %170 : vector<16x64xf32>
    %176 = arith.mulf %175, %170 : vector<16x64xf32>
    %177 = arith.addf %170, %176 : vector<16x64xf32>
    %cst_74 = arith.constant 0.797884583 : f32
    %178 = vector.broadcast %cst_74 : f32 to vector<16x64xf32>
    %179 = arith.mulf %178, %177 : vector<16x64xf32>
    %180 = math.tanh %179 : vector<16x64xf32>
    %cst_75 = arith.constant 1.000000e+00 : f32
    %181 = vector.broadcast %cst_75 : f32 to vector<16x64xf32>
    %182 = arith.addf %181, %180 : vector<16x64xf32>
    %183 = arith.mulf %172, %182 : vector<16x64xf32>
    %c0_76 = arith.constant 0 : index
    %c0_77 = arith.constant 0 : index
    %c0_78 = arith.constant 0 : index
    %184 = vector.load %arg8[%c0_76, %c0_77, %c0_78] : memref<2x64x32xf32, #tpu.memory_space<vmem>>, vector<1x64x32xf32>
    %185 = vector.shape_cast %184 : vector<1x64x32xf32> to vector<64x32xf32>
    %cst_79 = arith.constant dense<0.000000e+00> : vector<16x32xf32>
    %186 = tpu.matmul %183, %185, %cst_79 {dimension_numbers = #tpu.dot_dimension_numbers<[1], [0], [0], [1], [0, 0, 1, 1], [], []>, precision = #tpu.contract_precision<fp32>} : vector<16x64xf32>, vector<64x32xf32>, vector<16x32xf32> -> vector<16x32xf32>
    %187 = arith.addf %163, %186 : vector<16x32xf32>
    %c0_80 = arith.constant 0 : index
    %c0_81 = arith.constant 0 : index
    %c0_82 = arith.constant 0 : index
    %188 = vector.load %arg9[%c0_80, %c0_81, %c0_82] : memref<2x1x32xf32, #tpu.memory_space<vmem>>, vector<1x1x32xf32>
    %189 = vector.shape_cast %188 : vector<1x1x32xf32> to vector<1x32xf32>
    %190 = vector.broadcast %189 : vector<1x32xf32> to vector<16x32xf32>
    %191 = arith.addf %187, %190 : vector<16x32xf32>
    %c1 = arith.constant 1 : index
    %c0_83 = arith.constant 0 : index
    %c0_84 = arith.constant 0 : index
    %192 = vector.load %arg3[%c1, %c0_83, %c0_84] : memref<2x32x96xf32, #tpu.memory_space<vmem>>, vector<1x32x96xf32>
    %193 = vector.shape_cast %192 : vector<1x32x96xf32> to vector<32x96xf32>
    %cst_85 = arith.constant dense<0.000000e+00> : vector<16x96xf32>
    %194 = tpu.matmul %191, %193, %cst_85 {dimension_numbers = #tpu.dot_dimension_numbers<[1], [0], [0], [1], [0, 0, 1, 1], [], []>, precision = #tpu.contract_precision<fp32>} : vector<16x32xf32>, vector<32x96xf32>, vector<16x96xf32> -> vector<16x96xf32>
    %195 = vector.extract_strided_slice %194 {offsets = [0, 0], sizes = [8, 8], strides = [1, 1]} : vector<16x96xf32> to vector<8x8xf32>
    %196 = vector.extract_strided_slice %194 {offsets = [0, 32], sizes = [8, 8], strides = [1, 1]} : vector<16x96xf32> to vector<8x8xf32>
    %197 = vector.extract_strided_slice %194 {offsets = [0, 64], sizes = [8, 8], strides = [1, 1]} : vector<16x96xf32> to vector<8x8xf32>
    %cst_86 = arith.constant dense<0.000000e+00> : vector<8x8xf32>
    %198 = tpu.matmul %195, %196, %cst_86 {dimension_numbers = #tpu.dot_dimension_numbers<[1], [1], [0], [0], [0, 0, 1, 0], [], []>, precision = #tpu.contract_precision<fp32>} : vector<8x8xf32>, vector<8x8xf32>, vector<8x8xf32> -> vector<8x8xf32>
    %199 = arith.addf %198, %15 : vector<8x8xf32>
    %cst_87 = arith.constant dense<0xFF800000> : vector<8xf32>
    %200 = vector.multi_reduction <maximumf>, %199, %cst_87 [1] : vector<8x8xf32> to vector<8xf32>
    %201 = vector.shape_cast %200 : vector<8xf32> to vector<8x1xf32>
    %202 = vector.broadcast %201 : vector<8x1xf32> to vector<8x8xf32>
    %203 = arith.subf %199, %202 : vector<8x8xf32>
    %204 = math.exp %203 : vector<8x8xf32>
    %cst_88 = arith.constant dense<0.000000e+00> : vector<8xf32>
    %205 = vector.multi_reduction <add>, %204, %cst_88 [1] : vector<8x8xf32> to vector<8xf32>
    %206 = vector.shape_cast %205 : vector<8xf32> to vector<8x1xf32>
    %207 = tpu.reciprocal %206 {approx = true} : vector<8x1xf32> -> vector<8x1xf32>
    %208 = vector.broadcast %207 : vector<8x1xf32> to vector<8x8xf32>
    %209 = arith.mulf %204, %208 : vector<8x8xf32>
    %cst_89 = arith.constant dense<0.000000e+00> : vector<8x8xf32>
    %210 = tpu.matmul %209, %197, %cst_89 {dimension_numbers = #tpu.dot_dimension_numbers<[1], [0], [0], [1], [0, 0, 1, 1], [], []>, precision = #tpu.contract_precision<fp32>} : vector<8x8xf32>, vector<8x8xf32>, vector<8x8xf32> -> vector<8x8xf32>
    %c0_90 = arith.constant 0 : index
    %c0_91 = arith.constant 0 : index
    %211 = vector.load %arg11[%c0_90, %c0_91] : memref<16x32xf32, #tpu.memory_space<vmem>>, vector<8x8xf32>
    tpu.vector_store %arg11[%c0_90, %c0_91], %210 {strides = array<i32>} : memref<16x32xf32, #tpu.memory_space<vmem>>, vector<8x8xf32>,
    %212 = vector.extract_strided_slice %194 {offsets = [0, 8], sizes = [8, 8], strides = [1, 1]} : vector<16x96xf32> to vector<8x8xf32>
    %213 = vector.extract_strided_slice %194 {offsets = [0, 40], sizes = [8, 8], strides = [1, 1]} : vector<16x96xf32> to vector<8x8xf32>
    %214 = vector.extract_strided_slice %194 {offsets = [0, 72], sizes = [8, 8], strides = [1, 1]} : vector<16x96xf32> to vector<8x8xf32>
    %cst_92 = arith.constant dense<0.000000e+00> : vector<8x8xf32>
    %215 = tpu.matmul %212, %213, %cst_92 {dimension_numbers = #tpu.dot_dimension_numbers<[1], [1], [0], [0], [0, 0, 1, 0], [], []>, precision = #tpu.contract_precision<fp32>} : vector<8x8xf32>, vector<8x8xf32>, vector<8x8xf32> -> vector<8x8xf32>
    %216 = arith.addf %215, %15 : vector<8x8xf32>
    %cst_93 = arith.constant dense<0xFF800000> : vector<8xf32>
    %217 = vector.multi_reduction <maximumf>, %216, %cst_93 [1] : vector<8x8xf32> to vector<8xf32>
    %218 = vector.shape_cast %217 : vector<8xf32> to vector<8x1xf32>
    %219 = vector.broadcast %218 : vector<8x1xf32> to vector<8x8xf32>
    %220 = arith.subf %216, %219 : vector<8x8xf32>
    %221 = math.exp %220 : vector<8x8xf32>
    %cst_94 = arith.constant dense<0.000000e+00> : vector<8xf32>
    %222 = vector.multi_reduction <add>, %221, %cst_94 [1] : vector<8x8xf32> to vector<8xf32>
    %223 = vector.shape_cast %222 : vector<8xf32> to vector<8x1xf32>
    %224 = tpu.reciprocal %223 {approx = true} : vector<8x1xf32> -> vector<8x1xf32>
    %225 = vector.broadcast %224 : vector<8x1xf32> to vector<8x8xf32>
    %226 = arith.mulf %221, %225 : vector<8x8xf32>
    %cst_95 = arith.constant dense<0.000000e+00> : vector<8x8xf32>
    %227 = tpu.matmul %226, %214, %cst_95 {dimension_numbers = #tpu.dot_dimension_numbers<[1], [0], [0], [1], [0, 0, 1, 1], [], []>, precision = #tpu.contract_precision<fp32>} : vector<8x8xf32>, vector<8x8xf32>, vector<8x8xf32> -> vector<8x8xf32>
    %c0_96 = arith.constant 0 : index
    %c8_97 = arith.constant 8 : index
    %228 = vector.load %arg11[%c0_96, %c8_97] : memref<16x32xf32, #tpu.memory_space<vmem>>, vector<8x8xf32>
    tpu.vector_store %arg11[%c0_96, %c8_97], %227 {strides = array<i32>} : memref<16x32xf32, #tpu.memory_space<vmem>>, vector<8x8xf32>,
    %229 = vector.extract_strided_slice %194 {offsets = [0, 16], sizes = [8, 8], strides = [1, 1]} : vector<16x96xf32> to vector<8x8xf32>
    %230 = vector.extract_strided_slice %194 {offsets = [0, 48], sizes = [8, 8], strides = [1, 1]} : vector<16x96xf32> to vector<8x8xf32>
    %231 = vector.extract_strided_slice %194 {offsets = [0, 80], sizes = [8, 8], strides = [1, 1]} : vector<16x96xf32> to vector<8x8xf32>
    %cst_98 = arith.constant dense<0.000000e+00> : vector<8x8xf32>
    %232 = tpu.matmul %229, %230, %cst_98 {dimension_numbers = #tpu.dot_dimension_numbers<[1], [1], [0], [0], [0, 0, 1, 0], [], []>, precision = #tpu.contract_precision<fp32>} : vector<8x8xf32>, vector<8x8xf32>, vector<8x8xf32> -> vector<8x8xf32>
    %233 = arith.addf %232, %15 : vector<8x8xf32>
    %cst_99 = arith.constant dense<0xFF800000> : vector<8xf32>
    %234 = vector.multi_reduction <maximumf>, %233, %cst_99 [1] : vector<8x8xf32> to vector<8xf32>
    %235 = vector.shape_cast %234 : vector<8xf32> to vector<8x1xf32>
    %236 = vector.broadcast %235 : vector<8x1xf32> to vector<8x8xf32>
    %237 = arith.subf %233, %236 : vector<8x8xf32>
    %238 = math.exp %237 : vector<8x8xf32>
    %cst_100 = arith.constant dense<0.000000e+00> : vector<8xf32>
    %239 = vector.multi_reduction <add>, %238, %cst_100 [1] : vector<8x8xf32> to vector<8xf32>
    %240 = vector.shape_cast %239 : vector<8xf32> to vector<8x1xf32>
    %241 = tpu.reciprocal %240 {approx = true} : vector<8x1xf32> -> vector<8x1xf32>
    %242 = vector.broadcast %241 : vector<8x1xf32> to vector<8x8xf32>
    %243 = arith.mulf %238, %242 : vector<8x8xf32>
    %cst_101 = arith.constant dense<0.000000e+00> : vector<8x8xf32>
    %244 = tpu.matmul %243, %231, %cst_101 {dimension_numbers = #tpu.dot_dimension_numbers<[1], [0], [0], [1], [0, 0, 1, 1], [], []>, precision = #tpu.contract_precision<fp32>} : vector<8x8xf32>, vector<8x8xf32>, vector<8x8xf32> -> vector<8x8xf32>
    %c0_102 = arith.constant 0 : index
    %c16_103 = arith.constant 16 : index
    %245 = vector.load %arg11[%c0_102, %c16_103] : memref<16x32xf32, #tpu.memory_space<vmem>>, vector<8x8xf32>
    tpu.vector_store %arg11[%c0_102, %c16_103], %244 {strides = array<i32>} : memref<16x32xf32, #tpu.memory_space<vmem>>, vector<8x8xf32>,
    %246 = vector.extract_strided_slice %194 {offsets = [0, 24], sizes = [8, 8], strides = [1, 1]} : vector<16x96xf32> to vector<8x8xf32>
    %247 = vector.extract_strided_slice %194 {offsets = [0, 56], sizes = [8, 8], strides = [1, 1]} : vector<16x96xf32> to vector<8x8xf32>
    %248 = vector.extract_strided_slice %194 {offsets = [0, 88], sizes = [8, 8], strides = [1, 1]} : vector<16x96xf32> to vector<8x8xf32>
    %cst_104 = arith.constant dense<0.000000e+00> : vector<8x8xf32>
    %249 = tpu.matmul %246, %247, %cst_104 {dimension_numbers = #tpu.dot_dimension_numbers<[1], [1], [0], [0], [0, 0, 1, 0], [], []>, precision = #tpu.contract_precision<fp32>} : vector<8x8xf32>, vector<8x8xf32>, vector<8x8xf32> -> vector<8x8xf32>
    %250 = arith.addf %249, %15 : vector<8x8xf32>
    %cst_105 = arith.constant dense<0xFF800000> : vector<8xf32>
    %251 = vector.multi_reduction <maximumf>, %250, %cst_105 [1] : vector<8x8xf32> to vector<8xf32>
    %252 = vector.shape_cast %251 : vector<8xf32> to vector<8x1xf32>
    %253 = vector.broadcast %252 : vector<8x1xf32> to vector<8x8xf32>
    %254 = arith.subf %250, %253 : vector<8x8xf32>
    %255 = math.exp %254 : vector<8x8xf32>
    %cst_106 = arith.constant dense<0.000000e+00> : vector<8xf32>
    %256 = vector.multi_reduction <add>, %255, %cst_106 [1] : vector<8x8xf32> to vector<8xf32>
    %257 = vector.shape_cast %256 : vector<8xf32> to vector<8x1xf32>
    %258 = tpu.reciprocal %257 {approx = true} : vector<8x1xf32> -> vector<8x1xf32>
    %259 = vector.broadcast %258 : vector<8x1xf32> to vector<8x8xf32>
    %260 = arith.mulf %255, %259 : vector<8x8xf32>
    %cst_107 = arith.constant dense<0.000000e+00> : vector<8x8xf32>
    %261 = tpu.matmul %260, %248, %cst_107 {dimension_numbers = #tpu.dot_dimension_numbers<[1], [0], [0], [1], [0, 0, 1, 1], [], []>, precision = #tpu.contract_precision<fp32>} : vector<8x8xf32>, vector<8x8xf32>, vector<8x8xf32> -> vector<8x8xf32>
    %c0_108 = arith.constant 0 : index
    %c24_109 = arith.constant 24 : index
    %262 = vector.load %arg11[%c0_108, %c24_109] : memref<16x32xf32, #tpu.memory_space<vmem>>, vector<8x8xf32>
    tpu.vector_store %arg11[%c0_108, %c24_109], %261 {strides = array<i32>} : memref<16x32xf32, #tpu.memory_space<vmem>>, vector<8x8xf32>,
    %263 = vector.extract_strided_slice %194 {offsets = [8, 0], sizes = [8, 8], strides = [1, 1]} : vector<16x96xf32> to vector<8x8xf32>
    %264 = vector.extract_strided_slice %194 {offsets = [8, 32], sizes = [8, 8], strides = [1, 1]} : vector<16x96xf32> to vector<8x8xf32>
    %265 = vector.extract_strided_slice %194 {offsets = [8, 64], sizes = [8, 8], strides = [1, 1]} : vector<16x96xf32> to vector<8x8xf32>
    %cst_110 = arith.constant dense<0.000000e+00> : vector<8x8xf32>
    %266 = tpu.matmul %263, %264, %cst_110 {dimension_numbers = #tpu.dot_dimension_numbers<[1], [1], [0], [0], [0, 0, 1, 0], [], []>, precision = #tpu.contract_precision<fp32>} : vector<8x8xf32>, vector<8x8xf32>, vector<8x8xf32> -> vector<8x8xf32>
    %267 = arith.addf %266, %15 : vector<8x8xf32>
    %cst_111 = arith.constant dense<0xFF800000> : vector<8xf32>
    %268 = vector.multi_reduction <maximumf>, %267, %cst_111 [1] : vector<8x8xf32> to vector<8xf32>
    %269 = vector.shape_cast %268 : vector<8xf32> to vector<8x1xf32>
    %270 = vector.broadcast %269 : vector<8x1xf32> to vector<8x8xf32>
    %271 = arith.subf %267, %270 : vector<8x8xf32>
    %272 = math.exp %271 : vector<8x8xf32>
    %cst_112 = arith.constant dense<0.000000e+00> : vector<8xf32>
    %273 = vector.multi_reduction <add>, %272, %cst_112 [1] : vector<8x8xf32> to vector<8xf32>
    %274 = vector.shape_cast %273 : vector<8xf32> to vector<8x1xf32>
    %275 = tpu.reciprocal %274 {approx = true} : vector<8x1xf32> -> vector<8x1xf32>
    %276 = vector.broadcast %275 : vector<8x1xf32> to vector<8x8xf32>
    %277 = arith.mulf %272, %276 : vector<8x8xf32>
    %cst_113 = arith.constant dense<0.000000e+00> : vector<8x8xf32>
    %278 = tpu.matmul %277, %265, %cst_113 {dimension_numbers = #tpu.dot_dimension_numbers<[1], [0], [0], [1], [0, 0, 1, 1], [], []>, precision = #tpu.contract_precision<fp32>} : vector<8x8xf32>, vector<8x8xf32>, vector<8x8xf32> -> vector<8x8xf32>
    %c8_114 = arith.constant 8 : index
    %c0_115 = arith.constant 0 : index
    %279 = vector.load %arg11[%c8_114, %c0_115] : memref<16x32xf32, #tpu.memory_space<vmem>>, vector<8x8xf32>
    tpu.vector_store %arg11[%c8_114, %c0_115], %278 {strides = array<i32>} : memref<16x32xf32, #tpu.memory_space<vmem>>, vector<8x8xf32>,
    %280 = vector.extract_strided_slice %194 {offsets = [8, 8], sizes = [8, 8], strides = [1, 1]} : vector<16x96xf32> to vector<8x8xf32>
    %281 = vector.extract_strided_slice %194 {offsets = [8, 40], sizes = [8, 8], strides = [1, 1]} : vector<16x96xf32> to vector<8x8xf32>
    %282 = vector.extract_strided_slice %194 {offsets = [8, 72], sizes = [8, 8], strides = [1, 1]} : vector<16x96xf32> to vector<8x8xf32>
    %cst_116 = arith.constant dense<0.000000e+00> : vector<8x8xf32>
    %283 = tpu.matmul %280, %281, %cst_116 {dimension_numbers = #tpu.dot_dimension_numbers<[1], [1], [0], [0], [0, 0, 1, 0], [], []>, precision = #tpu.contract_precision<fp32>} : vector<8x8xf32>, vector<8x8xf32>, vector<8x8xf32> -> vector<8x8xf32>
    %284 = arith.addf %283, %15 : vector<8x8xf32>
    %cst_117 = arith.constant dense<0xFF800000> : vector<8xf32>
    %285 = vector.multi_reduction <maximumf>, %284, %cst_117 [1] : vector<8x8xf32> to vector<8xf32>
    %286 = vector.shape_cast %285 : vector<8xf32> to vector<8x1xf32>
    %287 = vector.broadcast %286 : vector<8x1xf32> to vector<8x8xf32>
    %288 = arith.subf %284, %287 : vector<8x8xf32>
    %289 = math.exp %288 : vector<8x8xf32>
    %cst_118 = arith.constant dense<0.000000e+00> : vector<8xf32>
    %290 = vector.multi_reduction <add>, %289, %cst_118 [1] : vector<8x8xf32> to vector<8xf32>
    %291 = vector.shape_cast %290 : vector<8xf32> to vector<8x1xf32>
    %292 = tpu.reciprocal %291 {approx = true} : vector<8x1xf32> -> vector<8x1xf32>
    %293 = vector.broadcast %292 : vector<8x1xf32> to vector<8x8xf32>
    %294 = arith.mulf %289, %293 : vector<8x8xf32>
    %cst_119 = arith.constant dense<0.000000e+00> : vector<8x8xf32>
    %295 = tpu.matmul %294, %282, %cst_119 {dimension_numbers = #tpu.dot_dimension_numbers<[1], [0], [0], [1], [0, 0, 1, 1], [], []>, precision = #tpu.contract_precision<fp32>} : vector<8x8xf32>, vector<8x8xf32>, vector<8x8xf32> -> vector<8x8xf32>
    %c8_120 = arith.constant 8 : index
    %c8_121 = arith.constant 8 : index
    %296 = vector.load %arg11[%c8_120, %c8_121] : memref<16x32xf32, #tpu.memory_space<vmem>>, vector<8x8xf32>
    tpu.vector_store %arg11[%c8_120, %c8_121], %295 {strides = array<i32>} : memref<16x32xf32, #tpu.memory_space<vmem>>, vector<8x8xf32>,
    %297 = vector.extract_strided_slice %194 {offsets = [8, 16], sizes = [8, 8], strides = [1, 1]} : vector<16x96xf32> to vector<8x8xf32>
    %298 = vector.extract_strided_slice %194 {offsets = [8, 48], sizes = [8, 8], strides = [1, 1]} : vector<16x96xf32> to vector<8x8xf32>
    %299 = vector.extract_strided_slice %194 {offsets = [8, 80], sizes = [8, 8], strides = [1, 1]} : vector<16x96xf32> to vector<8x8xf32>
    %cst_122 = arith.constant dense<0.000000e+00> : vector<8x8xf32>
    %300 = tpu.matmul %297, %298, %cst_122 {dimension_numbers = #tpu.dot_dimension_numbers<[1], [1], [0], [0], [0, 0, 1, 0], [], []>, precision = #tpu.contract_precision<fp32>} : vector<8x8xf32>, vector<8x8xf32>, vector<8x8xf32> -> vector<8x8xf32>
    %301 = arith.addf %300, %15 : vector<8x8xf32>
    %cst_123 = arith.constant dense<0xFF800000> : vector<8xf32>
    %302 = vector.multi_reduction <maximumf>, %301, %cst_123 [1] : vector<8x8xf32> to vector<8xf32>
    %303 = vector.shape_cast %302 : vector<8xf32> to vector<8x1xf32>
    %304 = vector.broadcast %303 : vector<8x1xf32> to vector<8x8xf32>
    %305 = arith.subf %301, %304 : vector<8x8xf32>
    %306 = math.exp %305 : vector<8x8xf32>
    %cst_124 = arith.constant dense<0.000000e+00> : vector<8xf32>
    %307 = vector.multi_reduction <add>, %306, %cst_124 [1] : vector<8x8xf32> to vector<8xf32>
    %308 = vector.shape_cast %307 : vector<8xf32> to vector<8x1xf32>
    %309 = tpu.reciprocal %308 {approx = true} : vector<8x1xf32> -> vector<8x1xf32>
    %310 = vector.broadcast %309 : vector<8x1xf32> to vector<8x8xf32>
    %311 = arith.mulf %306, %310 : vector<8x8xf32>
    %cst_125 = arith.constant dense<0.000000e+00> : vector<8x8xf32>
    %312 = tpu.matmul %311, %299, %cst_125 {dimension_numbers = #tpu.dot_dimension_numbers<[1], [0], [0], [1], [0, 0, 1, 1], [], []>, precision = #tpu.contract_precision<fp32>} : vector<8x8xf32>, vector<8x8xf32>, vector<8x8xf32> -> vector<8x8xf32>
    %c8_126 = arith.constant 8 : index
    %c16_127 = arith.constant 16 : index
    %313 = vector.load %arg11[%c8_126, %c16_127] : memref<16x32xf32, #tpu.memory_space<vmem>>, vector<8x8xf32>
    tpu.vector_store %arg11[%c8_126, %c16_127], %312 {strides = array<i32>} : memref<16x32xf32, #tpu.memory_space<vmem>>, vector<8x8xf32>,
    %314 = vector.extract_strided_slice %194 {offsets = [8, 24], sizes = [8, 8], strides = [1, 1]} : vector<16x96xf32> to vector<8x8xf32>
    %315 = vector.extract_strided_slice %194 {offsets = [8, 56], sizes = [8, 8], strides = [1, 1]} : vector<16x96xf32> to vector<8x8xf32>
    %316 = vector.extract_strided_slice %194 {offsets = [8, 88], sizes = [8, 8], strides = [1, 1]} : vector<16x96xf32> to vector<8x8xf32>
    %cst_128 = arith.constant dense<0.000000e+00> : vector<8x8xf32>
    %317 = tpu.matmul %314, %315, %cst_128 {dimension_numbers = #tpu.dot_dimension_numbers<[1], [1], [0], [0], [0, 0, 1, 0], [], []>, precision = #tpu.contract_precision<fp32>} : vector<8x8xf32>, vector<8x8xf32>, vector<8x8xf32> -> vector<8x8xf32>
    %318 = arith.addf %317, %15 : vector<8x8xf32>
    %cst_129 = arith.constant dense<0xFF800000> : vector<8xf32>
    %319 = vector.multi_reduction <maximumf>, %318, %cst_129 [1] : vector<8x8xf32> to vector<8xf32>
    %320 = vector.shape_cast %319 : vector<8xf32> to vector<8x1xf32>
    %321 = vector.broadcast %320 : vector<8x1xf32> to vector<8x8xf32>
    %322 = arith.subf %318, %321 : vector<8x8xf32>
    %323 = math.exp %322 : vector<8x8xf32>
    %cst_130 = arith.constant dense<0.000000e+00> : vector<8xf32>
    %324 = vector.multi_reduction <add>, %323, %cst_130 [1] : vector<8x8xf32> to vector<8xf32>
    %325 = vector.shape_cast %324 : vector<8xf32> to vector<8x1xf32>
    %326 = tpu.reciprocal %325 {approx = true} : vector<8x1xf32> -> vector<8x1xf32>
    %327 = vector.broadcast %326 : vector<8x1xf32> to vector<8x8xf32>
    %328 = arith.mulf %323, %327 : vector<8x8xf32>
    %cst_131 = arith.constant dense<0.000000e+00> : vector<8x8xf32>
    %329 = tpu.matmul %328, %316, %cst_131 {dimension_numbers = #tpu.dot_dimension_numbers<[1], [0], [0], [1], [0, 0, 1, 1], [], []>, precision = #tpu.contract_precision<fp32>} : vector<8x8xf32>, vector<8x8xf32>, vector<8x8xf32> -> vector<8x8xf32>
    %c8_132 = arith.constant 8 : index
    %c24_133 = arith.constant 24 : index
    %330 = vector.load %arg11[%c8_132, %c24_133] : memref<16x32xf32, #tpu.memory_space<vmem>>, vector<8x8xf32>
    tpu.vector_store %arg11[%c8_132, %c24_133], %329 {strides = array<i32>} : memref<16x32xf32, #tpu.memory_space<vmem>>, vector<8x8xf32>,
    %c0_134 = arith.constant 0 : index
    %c0_135 = arith.constant 0 : index
    %331 = vector.load %arg11[%c0_134, %c0_135] : memref<16x32xf32, #tpu.memory_space<vmem>>, vector<16x32xf32>
    %c1_136 = arith.constant 1 : index
    %c0_137 = arith.constant 0 : index
    %c0_138 = arith.constant 0 : index
    %332 = vector.load %arg4[%c1_136, %c0_137, %c0_138] : memref<2x32x32xf32, #tpu.memory_space<vmem>>, vector<1x32x32xf32>
    %333 = vector.shape_cast %332 : vector<1x32x32xf32> to vector<32x32xf32>
    %cst_139 = arith.constant dense<0.000000e+00> : vector<16x32xf32>
    %334 = tpu.matmul %331, %333, %cst_139 {dimension_numbers = #tpu.dot_dimension_numbers<[1], [0], [0], [1], [0, 0, 1, 1], [], []>, precision = #tpu.contract_precision<fp32>} : vector<16x32xf32>, vector<32x32xf32>, vector<16x32xf32> -> vector<16x32xf32>
    %335 = arith.addf %191, %334 : vector<16x32xf32>
    %c1_140 = arith.constant 1 : index
    %c0_141 = arith.constant 0 : index
    %c0_142 = arith.constant 0 : index
    %336 = vector.load %arg5[%c1_140, %c0_141, %c0_142] : memref<2x1x32xf32, #tpu.memory_space<vmem>>, vector<1x1x32xf32>
    %337 = vector.shape_cast %336 : vector<1x1x32xf32> to vector<1x32xf32>
    %338 = vector.broadcast %337 : vector<1x32xf32> to vector<16x32xf32>
    %339 = arith.addf %335, %338 : vector<16x32xf32>
    %c1_143 = arith.constant 1 : index
    %c0_144 = arith.constant 0 : index
    %c0_145 = arith.constant 0 : index
    %340 = vector.load %arg6[%c1_143, %c0_144, %c0_145] : memref<2x32x64xf32, #tpu.memory_space<vmem>>, vector<1x32x64xf32>
    %341 = vector.shape_cast %340 : vector<1x32x64xf32> to vector<32x64xf32>
    %cst_146 = arith.constant dense<0.000000e+00> : vector<16x64xf32>
    %342 = tpu.matmul %339, %341, %cst_146 {dimension_numbers = #tpu.dot_dimension_numbers<[1], [0], [0], [1], [0, 0, 1, 1], [], []>, precision = #tpu.contract_precision<fp32>} : vector<16x32xf32>, vector<32x64xf32>, vector<16x64xf32> -> vector<16x64xf32>
    %c1_147 = arith.constant 1 : index
    %c0_148 = arith.constant 0 : index
    %c0_149 = arith.constant 0 : index
    %343 = vector.load %arg7[%c1_147, %c0_148, %c0_149] : memref<2x1x64xf32, #tpu.memory_space<vmem>>, vector<1x1x64xf32>
    %344 = vector.shape_cast %343 : vector<1x1x64xf32> to vector<1x64xf32>
    %345 = vector.broadcast %344 : vector<1x64xf32> to vector<16x64xf32>
    %346 = arith.addf %342, %345 : vector<16x64xf32>
    %cst_150 = arith.constant 5.000000e-01 : f32
    %347 = vector.broadcast %cst_150 : f32 to vector<16x64xf32>
    %348 = arith.mulf %347, %346 : vector<16x64xf32>
    %cst_151 = arith.constant 4.471500e-02 : f32
    %349 = vector.broadcast %cst_151 : f32 to vector<16x64xf32>
    %350 = arith.mulf %349, %346 : vector<16x64xf32>
    %351 = arith.mulf %350, %346 : vector<16x64xf32>
    %352 = arith.mulf %351, %346 : vector<16x64xf32>
    %353 = arith.addf %346, %352 : vector<16x64xf32>
    %cst_152 = arith.constant 0.797884583 : f32
    %354 = vector.broadcast %cst_152 : f32 to vector<16x64xf32>
    %355 = arith.mulf %354, %353 : vector<16x64xf32>
    %356 = math.tanh %355 : vector<16x64xf32>
    %cst_153 = arith.constant 1.000000e+00 : f32
    %357 = vector.broadcast %cst_153 : f32 to vector<16x64xf32>
    %358 = arith.addf %357, %356 : vector<16x64xf32>
    %359 = arith.mulf %348, %358 : vector<16x64xf32>
    %c1_154 = arith.constant 1 : index
    %c0_155 = arith.constant 0 : index
    %c0_156 = arith.constant 0 : index
    %360 = vector.load %arg8[%c1_154, %c0_155, %c0_156] : memref<2x64x32xf32, #tpu.memory_space<vmem>>, vector<1x64x32xf32>
    %361 = vector.shape_cast %360 : vector<1x64x32xf32> to vector<64x32xf32>
    %cst_157 = arith.constant dense<0.000000e+00> : vector<16x32xf32>
    %362 = tpu.matmul %359, %361, %cst_157 {dimension_numbers = #tpu.dot_dimension_numbers<[1], [0], [0], [1], [0, 0, 1, 1], [], []>, precision = #tpu.contract_precision<fp32>} : vector<16x64xf32>, vector<64x32xf32>, vector<16x32xf32> -> vector<16x32xf32>
    %363 = arith.addf %339, %362 : vector<16x32xf32>
    %c1_158 = arith.constant 1 : index
    %c0_159 = arith.constant 0 : index
    %c0_160 = arith.constant 0 : index
    %364 = vector.load %arg9[%c1_158, %c0_159, %c0_160] : memref<2x1x32xf32, #tpu.memory_space<vmem>>, vector<1x1x32xf32>
    %365 = vector.shape_cast %364 : vector<1x1x32xf32> to vector<1x32xf32>
    %366 = vector.broadcast %365 : vector<1x32xf32> to vector<16x32xf32>
    %367 = arith.addf %363, %366 : vector<16x32xf32>
    %cst_161 = arith.constant dense<0.000000e+00> : vector<16x128xf32>
    %368 = tpu.matmul %367, %6, %cst_161 {dimension_numbers = #tpu.dot_dimension_numbers<[1], [1], [0], [0], [0, 0, 1, 0], [], []>, precision = #tpu.contract_precision<fp32>} : vector<16x32xf32>, vector<128x32xf32>, vector<16x128xf32> -> vector<16x128xf32>
    %c0_162 = arith.constant 0 : index
    %c0_163 = arith.constant 0 : index
    %369 = vector.load %arg10[%c0_162, %c0_163] : memref<16x128xf32, #tpu.memory_space<vmem>>, vector<16x128xf32>
    tpu.vector_store %arg10[%c0_162, %c0_163], %368 {strides = array<i32>} : memref<16x128xf32, #tpu.memory_space<vmem>>, vector<16x128xf32>,
    return
  }
}

</mosaic_0001>

<bundles_post_ra>
// kernel: tpu_custom_call.1
= control target key start
LH: loop header
LB: loop body
LE: loop exit
PB: predicated region body
PF: predicated region fallthrough
CT: control target
= control target key end

     0   :  { %v25190_v2 = vmov 0   ;;  %s27310_s0 = inlined_call_operand.vmem [shape: s32[16,1], index: 0, kind: input, shape index: {}]   ;;  %s27311_s1 = inlined_call_operand.vmem [shape: f32[128,32], index: 1, kind: input, shape index: {}]   ;;  %s27312_s2 = inlined_call_operand.vmem [shape: f32[16,32], index: 2, kind: input, shape index: {}]   ;;  %s27313_s3 = inlined_call_operand.vmem [shape: f32[2,32,96], index: 3, kind: input, shape index: {}]   ;;  %s27314_s4 = inlined_call_operand.vmem [shape: f32[2,32,32], index: 4, kind: input, shape index: {}]   ;;  %s27315_s5 = inlined_call_operand.vmem [shape: f32[2,1,32], index: 5, kind: input, shape index: {}]   ;;  %s27316_s6 = inlined_call_operand.vmem [shape: f32[2,32,64], index: 6, kind: input, shape index: {}]   ;;  %s27317_s7 = inlined_call_operand.vmem [shape: f32[2,1,64], index: 7, kind: input, shape index: {}]   ;;  %s27318_s8 = inlined_call_operand.vmem [shape: f32[2,64,32], index: 8, kind: input, shape index: {}]   ;;  %s27319_s9 = inlined_call_operand.vmem [shape: f32[2,1,32], index: 9, kind: input, shape index: {}]   ;;  %s27320_s10 = inlined_call_operand.hbm [shape: f32[16,128], index: 10, kind: output, shape index: {}]  }
   0x1   :  { %v36_v0 = vld [vmem:[%s27310_s0] sm:$0xff]  ;;  %25077 = vset.pattern.permute.xlu0 %v25190_v2  ;;  %v53_v3 = vld [vmem:[%s27311_s1 + $0x8] sm:$0xff]  ;;  %v54_v5 = vld [vmem:[%s27311_s1 + $0x10] sm:$0xff] }
   0x2   :  { %v52_v1 = vld [vmem:[%s27311_s1] sm:$0xff]  ;;  %v55_v6 = vld [vmem:[%s27311_s1 + $0x18] sm:$0xff]  ;;  %41 = vperm.xlu0 %25077, %v36_v0   ;;  %v74_v7 = vand.u32 4294901760, %v53_v3  ;;  %v77_v8 = vand.u32 4294901760, %v54_v5  ;;  %v57_v11 = vld [vmem:[%s27311_s1 + $0x28] sm:$0xff] }
   0x3   :  { %v71_v4 = vand.u32 4294901760, %v52_v1  ;;  %v80_v9 = vand.u32 4294901760, %v55_v6  ;;  %v56_v10 = vld [vmem:[%s27311_s1 + $0x20] sm:$0xff]  ;;  %v37_v12 = vld [vmem:[%s27310_s0 + $0x8] sm:$0xff]  ;;  %v86_v16 = vand.u32 4294901760, %v57_v11  ;;  %v58_v17 = vld [vmem:[%s27311_s1 + $0x30] sm:$0xff] }
   0x4   :  { %v83_v15 = vand.u32 4294901760, %v56_v10  ;;  %v59_v18 = vld [vmem:[%s27311_s1 + $0x38] sm:$0xff] }
   0x5   :  { %v25290_v13 = vpack.c.bf16 %v74_v7, %v71_v4  ;;  %v25292_v14 = vpack.c.bf16 %v80_v9, %v77_v8 }
   0x6   :  { %15 = vsyncpa [#allocation4], 0  ;;  %44 = vperm.xlu0 %25077, %v37_v12   ;;  %v25303_v19 = vpack.c.bf16 %v86_v16, %v83_v15  ;;  %v89_v20 = vand.u32 4294901760, %v58_v17  ;;  %v92_v21 = vand.u32 4294901760, %v59_v18  ;;  %v60_v22 = vld [vmem:[%s27311_s1 + $0x40] sm:$0xff]  ;;  %v61_v23 = vld [vmem:[%s27311_s1 + $0x48] sm:$0xff]  ;;  %v25311_v24 = vsub.f32 %v54_v5, %v77_v8 }
   0x7   :  { %23751 = vmatprep.subr.bf16.mxu0 %v25290_v13  ;;  %v25313_v25 = vsub.f32 %v55_v6, %v80_v9  ;;  %v95_v26 = vand.u32 4294901760, %v60_v22  ;;  %v62_v27 = vld [vmem:[%s27311_s1 + $0x50] sm:$0xff]  ;;  %v98_v29 = vand.u32 4294901760, %v61_v23  ;;  %v63_v30 = vld [vmem:[%s27311_s1 + $0x58] sm:$0xff]  ;;  %v25330_v34 = vld [vmem:[%s27311_s1 + $0x60] sm:$0xff]  ;;  %v25338_v37 = vsub.f32 %v56_v10, %v83_v15  ;;  %s25196_s19 = smov 120  }
   0x8   :  { %23753 = vmatpush3.bf16.msra.mxu0 %v25290_v13  ;;  %v25320_v28 = vpack.c.bf16 %v92_v21, %v89_v20  ;;  %v188_v31 = vand.u32 4294901760, %v25311_v24  ;;  %v101_v33 = vand.u32 4294901760, %v62_v27  ;;  %v104_v38 = vand.u32 4294901760, %v63_v30  ;;  %v65_v43 = vld [vmem:[%s27311_s1 + $0x68] sm:$0xff]  ;;  %v66_v49 = vld [vmem:[%s27311_s1 + $0x70] sm:$0xff]  ;;  %v67_v50 = vld [vmem:[%s27311_s1 + $0x78] sm:$0xff] }
   0x9   :  { %23755 = vmatprep.subr.bf16.mxu0 %v25292_v14  ;;  %v195_v32 = vand.u32 4294901760, %v25313_v25  ;;  %v25341_v39 = vsub.f32 %v52_v1, %v71_v4  ;;  %v25343_v40 = vsub.f32 %v53_v3, %v74_v7  ;;  %v25345_v41 = vsub.f32 %v57_v11, %v86_v16  ;;  %s25197_s20 = smov 88   ;;  %s25198_s21 = smov 64  }
   0xa   :  { %v189_v35 = vsub.f32 %v25311_v24, %v188_v31  ;;  %v25348_v42 = vpack.c.bf16 %v98_v29, %v95_v26  ;;  %v202_v46 = vand.u32 4294901760, %v25338_v37  ;;  %v107_v47 = vand.u32 4294901760, %v25330_v34  ;;  %s25199_s22 = smov 56   ;;  %s25200_s23 = smov 80  }
   0xb   :  { %v196_v36 = vsub.f32 %v25313_v25, %v195_v32  ;;  %v209_v48 = vand.u32 4294901760, %v25345_v41  ;;  %v25367_v53 = vsub.f32 %v58_v17, %v89_v20  ;;  %v25369_v54 = vsub.f32 %v59_v18, %v92_v21  ;;  %s25201_s24 = smov 72   ;;  %s25202_s25 = smov 112  }
   0xc   :  { %23757 = vmatpush3.bf16.msra.mxu0 %v25292_v14  ;;  %v190_v44 = vand.u32 4294901760, %v189_v35  ;;  %v203_v52 = vsub.f32 %v25338_v37, %v202_v46  ;;  %v110_v55 = vand.u32 4294901760, %v65_v43  ;;  %v174_v56 = vand.u32 4294901760, %v25341_v39  ;;  %s25203_s26 = smov 104   ;;  %s25204_s27 = smov 48  }
   0xd   :  { %23759 = vmatprep.subr.bf16.mxu0 %v25303_v19  ;;  %v197_v45 = vand.u32 4294901760, %v196_v36  ;;  %v181_v57 = vand.u32 4294901760, %v25343_v40  ;;  %v210_v58 = vsub.f32 %v25345_v41, %v209_v48  ;;  %v25378_v59 = vpack.c.bf16 %v104_v38, %v101_v33  ;;  %s25205_s28 = smov 40   ;;  %s25206_s29 = smov 8  }
   0xe   :  { %v204_v60 = vand.u32 4294901760, %v203_v52  ;;  %v216_v61 = vand.u32 4294901760, %v25367_v53  ;;  %v223_v62 = vand.u32 4294901760, %v25369_v54  ;;  %v113_v63 = vand.u32 4294901760, %v66_v49  ;;  %s27330_s30 = smov 16   ;;  %s27328_s11 = smov 24  }
   0xf   :  { %v25362_v51 = vpack.c.bf16 %v197_v45, %v190_v44  ;;  %v116_v0 = vand.u32 4294901760, %v67_v50  ;;  %v211_v1 = vand.u32 4294901760, %v210_v58  ;;  %v25388_v4 = vsub.f32 %v60_v22, %v95_v26 }
  0x10   :  { %23761 = vmatpush3.bf16.msra.mxu0 %v25303_v19  ;;  %v217_v2 = vsub.f32 %v25367_v53, %v216_v61  ;;  %v224_v3 = vsub.f32 %v25369_v54, %v223_v62  ;;  %v25390_v5 = vsub.f32 %v61_v23, %v98_v29  ;;  %v25393_v6 = vpack.c.bf16 %v110_v55, %v107_v47 }
  0x11   :  { %23763 = vmatprep.subr.bf16.mxu0 %v25320_v28  ;;  %v175_v7 = vsub.f32 %v25341_v39, %v174_v56  ;;  %v182_v8 = vsub.f32 %v25343_v40, %v181_v57  ;;  %v25401_v9 = vpack.c.bf16 %v211_v1, %v204_v60  ;;  %v230_v12 = vand.u32 4294901760, %v25388_v4 }
  0x12   :  { %v218_v10 = vand.u32 4294901760, %v217_v2  ;;  %v225_v11 = vand.u32 4294901760, %v224_v3  ;;  %v237_v15 = vand.u32 4294901760, %v25390_v5  ;;  %v25414_v20 = vsub.f32 %v62_v27, %v101_v33 }
  0x13   :  { %v231_v17 = vsub.f32 %v25388_v4, %v230_v12  ;;  %v25417_v21 = vpack.c.bf16 %v116_v0, %v113_v63  ;;  %v176_v22 = vand.u32 4294901760, %v175_v7  ;;  %v25419_v23 = vsub.f32 %v63_v30, %v104_v38 }
  0x14   :  { %23765 = vmatpush3.bf16.msra.mxu0 %v25320_v28  ;;  %v25406_v16 = vpack.c.bf16 %v225_v11, %v218_v10  ;;  %v238_v18 = vsub.f32 %v25390_v5, %v237_v15  ;;  %v183_v26 = vand.u32 4294901760, %v182_v8  ;;  %v27327_v36 = vand.u32 4294901760, %v25414_v20 }
  0x15   :  { %23767 = vmatprep.subr.bf16.mxu0 %v25348_v42  ;;  %v232_v29 = vand.u32 4294901760, %v231_v17  ;;  %v27326_v44 = vand.u32 4294901760, %v25419_v23  ;;  %v25430_v33 = vsub.f32 %v25330_v34, %v107_v47  ;;  %v25432_v30 = vsub.f32 %v65_v43, %v110_v55 }
  0x16   :  { %v239_v35 = vand.u32 4294901760, %v238_v18  ;;  %v245_v27 = vsub.f32 %v25414_v20, %v27327_v36  ;;  %v23782_v52 = vpack.c.bf16 %v183_v26, %v176_v22  ;;  %v25447_v47 = vsub.f32 %v66_v49, %v113_v63 }
  0x17   :  { %v252_v38 = vsub.f32 %v25419_v23, %v27326_v44  ;;  %v27325_v60 = vand.u32 4294901760, %v25430_v33  ;;  %v27324_v1 = vand.u32 4294901760, %v25432_v30  ;;  %v25449_v55 = vsub.f32 %v67_v50, %v116_v0 }
  0x18   :  { %23769 = vmatpush3.bf16.msra.mxu0 %v25348_v42  ;;  %v25424_v45 = vpack.c.bf16 %v239_v35, %v232_v29  ;;  %v246_v58 = vand.u32 4294901760, %v245_v27  ;;  %v27323_v10 = vand.u32 4294901760, %v25447_v47  ;;  %v23814_v22 = vpack.c.bf16 %v25343_v40, %v25341_v39 }
  0x19   :  { %23771 = vmatprep.subr.bf16.mxu0 %v25378_v59  ;;  %v253_v2 = vand.u32 4294901760, %v252_v38  ;;  %v259_v34 = vsub.f32 %v25430_v33, %v27325_v60  ;;  %v266_v43 = vsub.f32 %v25432_v30, %v27324_v1  ;;  %v27322_v11 = vand.u32 4294901760, %v25449_v55 }
  0x1a   :  { %v273_v18 = vsub.f32 %v25447_v47, %v27323_v10  ;;  %v23818_v26 = vpack.c.bf16 %v25313_v25, %v25311_v24  ;;  %v23822_v29 = vpack.c.bf16 %v25345_v41, %v25338_v37  ;;  %v23826_v35 = vpack.c.bf16 %v25369_v54, %v25367_v53 }
  0x1b   :  { %v23802_v3 = vpack.c.bf16 %v253_v2, %v246_v58  ;;  %v260_v7 = vand.u32 4294901760, %v259_v34  ;;  %v267_v8 = vand.u32 4294901760, %v266_v43  ;;  %v280_v49 = vsub.f32 %v25449_v55, %v27322_v11 }
  0x1c   :  { %23773 = vmatpush3.bf16.msra.mxu0 %v25378_v59  ;;  %v274_v50 = vand.u32 4294901760, %v273_v18  ;;  %v23830_v27 = vpack.c.bf16 %v25390_v5, %v25388_v4  ;;  %v23834_v38 = vpack.c.bf16 %v25419_v23, %v25414_v20  ;;  %v23838_v58 = vpack.c.bf16 %v25432_v30, %v25430_v33 }
  0x1d   :  { %23775 = vmatprep.subr.bf16.mxu0 %v25393_v6  ;;  %v23806_v17 = vpack.c.bf16 %v267_v8, %v260_v7  ;;  %v281_v63 = vand.u32 4294901760, %v280_v49  ;;  %v23842_v2 = vpack.c.bf16 %v25449_v55, %v25447_v47  ;;  %v27321_v34 = vlaneseq }
  0x1e   :  { %v25191_v8 = vmov 0.0   ;;  %v25192_v36 = vmov 1.0   ;;  %v23886_v39 = vpack.c.bf16 %v209_v48, %v202_v46  ;;  %v23890_v24 = vpack.c.bf16 %v223_v62, %v216_v61 }
  0x1f   :  { %v23810_v0 = vpack.c.bf16 %v281_v63, %v274_v50  ;;  %v25477_v43 = vand.u32 127, %v27321_v34  ;;  %v23894_v25 = vpack.c.bf16 %v237_v15, %v230_v12  ;;  %v27334_v40 = vand.u32 4294901760, %v25430_v33 }
  0x20   :  { %23777 = vmatpush3.bf16.msra.mxu0 %v25393_v6  ;;  %v27335_v41 = vand.u32 4294901760, %v25432_v30  ;;  %v27336_v48 = vand.u32 4294901760, %v25447_v47  ;;  %v27337_v53 = vand.u32 4294901760, %v25449_v55  ;;  %vm762_vm2 = vcmask 261120  }
  0x21   :  { %23779 = vmatprep.subr.bf16.mxu0 %v25417_v21  ;;  %vm25193_vm3 = vmmov 0   ;;  %vm1300_vm4 = vcmask 64512   ;;  %vm3136_vm6 = vcmask 130112   ;;  %vm4059_vm7 = vcmask 195712  }
  0x22   :  { %v23902_v46 = vpack.c.bf16 %v27335_v41, %v27334_v40  ;;  %v23906_v54 = vpack.c.bf16 %v27337_v53, %v27336_v48  ;;  %vm4982_vm8 = vcmask 261312   ;;  %vm9789_vm9 = vcmask 523264  }
  0x24   :  { %23781 = vmatpush3.bf16.msra.mxu0 %v25417_v21 }
  0x25   :  { %23783 = vmatprep.subr.bf16.mxu0 %v23782_v52 }
  0x81   :  { %v25479_v7 = vpop.permute.xlu0 %41 }
  0x82   :  { %vm46_vm0 = vcmp.eq.s32.totalorder %v25477_v43, %v25479_v7 }
  0x83   :  { %v20773_v18 = vsel %vm46_vm0, 1.0, %v25191_v8 }
  0x84   :  { %v152_v49 = vsub.f32 %v20773_v18, %v20773_v18 }
  0x85   :  { %v25487_v50 = vpop.permute.xlu0 %44 }
  0x86   :  { %vm47_vm1 = vcmp.eq.s32.totalorder %v25477_v43, %v25487_v50  ;;  %v153_v63 = vand.u32 4294901760, %v152_v49 }
  0x87   :  { %v20774_v34 = vsel %vm47_vm1, 1.0, %v25191_v8 }
  0x88   :  { %v25495_v11 = vsub.f32 %v20774_v34, %v20774_v34  ;;  %v154_v10 = vsub.f32 %v152_v49, %v153_v63 }
  0x8a   :  { %v155_v1 = vand.u32 4294901760, %v154_v10  ;;  %v163_v60 = vand.u32 4294901760, %v25495_v11 }
  0x8c   :  { %21778 = vmatprep.mubr.f32.mxu0 %v155_v1  ;;  %v164_v18 = vsub.f32 %v25495_v11, %v163_v60 }
  0x8e   :  { %v165_v44 = vand.u32 4294901760, %v164_v18 }
  0x90   :  { %21779 = vmatmul.mubr.f32.vlgmr.msra.gmra.mrb[0].mxu0 %v165_v44 }
  0x91   :  { %23785 = vmatpush3.bf16.msra.mxu0 %v23782_v52  ;;  %21813 = vmatprep.mubr.msk.f32.mxu0 %vm46_vm0, %v25192_v36 }
  0x92   :  { %23787 = vmatprep.subr.bf16.mxu0 %v25362_v51 }
  0x95   :  { %23789 = vmatpush3.bf16.msra.mxu0 %v25362_v51  ;;  %v23878_v51 = vpack.c.bf16 %v181_v57, %v174_v56  ;;  %v760_v57 = vld [vmem:[%s27313_s3 + $0x10] sm:$0xff] }
  0x96   :  { %23791 = vmatprep.subr.bf16.mxu0 %v25401_v9  ;;  %v776_v62 = vand.u32 4294901760, %v760_v57 }
  0x98   :  { %v874_v5 = vsub.f32 %v760_v57, %v776_v62 }
  0x99   :  { %23793 = vmatpush3.bf16.msra.mxu0 %v25401_v9  ;;  %v23882_v9 = vpack.c.bf16 %v195_v32, %v188_v31  ;;  %v27332_v31 = vand.u32 4294901760, %v25414_v20  ;;  %v27333_v32 = vand.u32 4294901760, %v25419_v23 }
  0x9a   :  { %23795 = vmatprep.subr.bf16.mxu0 %v25406_v16  ;;  %v875_v33 = vand.u32 4294901760, %v874_v5 }
  0x9b   :  { %v23898_v37 = vpack.c.bf16 %v27333_v32, %v27332_v31 }
  0x9d   :  { %23797 = vmatpush3.bf16.msra.mxu0 %v25406_v16 }
  0x9e   :  { %23799 = vmatprep.subr.bf16.mxu0 %v25424_v45 }
  0xa1   :  { %23801 = vmatpush3.bf16.msra.mxu0 %v25424_v45 }
  0xa2   :  { %23803 = vmatprep.subr.bf16.mxu0 %v23802_v3 }
  0xa5   :  { %23805 = vmatpush3.bf16.msra.mxu0 %v23802_v3 }
  0xa6   :  { %23807 = vmatprep.subr.bf16.mxu0 %v23806_v17 }
  0xa9   :  { %23809 = vmatpush3.bf16.msra.mxu0 %v23806_v17  ;;  %v69_v17 = vld [vmem:[%s27312_s2 + $0x8] sm:$0xff] }
  0xaa   :  { %23811 = vmatprep.subr.bf16.mxu0 %v23810_v0 }
  0xad   :  { %23813 = vmatpush3.bf16.msra.mxu0 %v23810_v0  ;;  %v68_v0 = vld [vmem:[%s27312_s2] sm:$0xff]  ;;  %s25194_s2 = smov 96  }
  0xae   :  { %23815 = vmatprep.subr.bf16.mxu0 %v23814_v22 }
  0xb0   :  { %21814 = vmatmul.mubr.msk.f32.vlgmr.msra.gmra.mrb[0].mxu0 %vm47_vm1, %v25192_v36 }
  0xb1   :  { %23817 = vmatpush3.bf16.msra.mxu0 %v23814_v22  ;;  %21848 = vmatprep.mubr.f32.mxu0 %v152_v49 }
  0xb2   :  { %23819 = vmatprep.subr.bf16.mxu0 %v23818_v26 }
  0xb5   :  { %23821 = vmatpush3.bf16.msra.mxu0 %v23818_v26 }
  0xb6   :  { %23823 = vmatprep.subr.bf16.mxu0 %v23822_v29 }
  0xb9   :  { %23825 = vmatpush3.bf16.msra.mxu0 %v23822_v29 }
  0xba   :  { %23827 = vmatprep.subr.bf16.mxu0 %v23826_v35 }
  0xbd   :  { %23829 = vmatpush3.bf16.msra.mxu0 %v23826_v35 }
  0xbe   :  { %23831 = vmatprep.subr.bf16.mxu0 %v23830_v27 }
  0xc1   :  { %23833 = vmatpush3.bf16.msra.mxu0 %v23830_v27 }
  0xc2   :  { %23835 = vmatprep.subr.bf16.mxu0 %v23834_v38 }
  0xc5   :  { %23837 = vmatpush3.bf16.msra.mxu0 %v23834_v38 }
  0xc6   :  { %23839 = vmatprep.subr.bf16.mxu0 %v23838_v58 }
  0xc9   :  { %23841 = vmatpush3.bf16.msra.mxu0 %v23838_v58 }
  0xca   :  { %23843 = vmatprep.subr.bf16.mxu0 %v23842_v2 }
  0xcd   :  { %23845 = vmatpush3.bf16.msra.mxu0 %v23842_v2 }
  0xce   :  { %23847 = vmatprep.subr.bf16.mxu0 %v25290_v13 }
  0xd0   :  { %21849 = vmatmul.mubr.f32.vlgmr.msra.gmra.mrb[0].mxu0 %v25495_v11 }
  0xd1   :  { %23849 = vmatpush3.bf16.msra.mxu0 %v25290_v13  ;;  %21883 = vmatprep.mubr.f32.mxu0 %v153_v63 }
  0xd2   :  { %23851 = vmatprep.subr.bf16.mxu0 %v25292_v14 }
  0xd5   :  { %23853 = vmatpush3.bf16.msra.mxu0 %v25292_v14 }
  0xd6   :  { %23855 = vmatprep.subr.bf16.mxu0 %v25303_v19 }
  0xd9   :  { %23857 = vmatpush3.bf16.msra.mxu0 %v25303_v19 }
  0xda   :  { %23859 = vmatprep.subr.bf16.mxu0 %v25320_v28 }
  0xdd   :  { %23861 = vmatpush3.bf16.msra.mxu0 %v25320_v28 }
  0xde   :  { %23863 = vmatprep.subr.bf16.mxu0 %v25348_v42 }
  0xe1   :  { %23865 = vmatpush3.bf16.msra.mxu0 %v25348_v42 }
  0xe2   :  { %23867 = vmatprep.subr.bf16.mxu0 %v25378_v59 }
  0xe5   :  { %23869 = vmatpush3.bf16.msra.mxu0 %v25378_v59 }
  0xe6   :  { %23871 = vmatprep.subr.bf16.mxu0 %v25393_v6 }
  0xe9   :  { %23873 = vmatpush3.bf16.msra.mxu0 %v25393_v6 }
  0xea   :  { %23875 = vmatprep.subr.bf16.mxu0 %v25417_v21 }
  0xed   :  { %23877 = vmatpush3.bf16.msra.mxu0 %v25417_v21 }
  0xee   :  { %23879 = vmatprep.subr.bf16.mxu0 %v23878_v51 }
  0xf0   :  { %21884 = vmatmul.mubr.f32.vlgmr.msra.gmra.mrb[0].mxu0 %v163_v60  ;;  %v876_v60 = vsub.f32 %v874_v5, %v875_v33 }
  0xf1   :  { %23881 = vmatpush3.bf16.msra.mxu0 %v23878_v51  ;;  %21918 = vmatprep.mubr.msk.f32.mxu0 %vm46_vm0, %v25192_v36 }
  0xf2   :  { %23883 = vmatprep.subr.bf16.mxu0 %v23882_v9  ;;  %v877_v55 = vand.u32 4294901760, %v876_v60 }
  0xf5   :  { %23885 = vmatpush3.bf16.msra.mxu0 %v23882_v9 }
  0xf6   :  { %23887 = vmatprep.subr.bf16.mxu0 %v23886_v39 }
  0xf9   :  { %23889 = vmatpush3.bf16.msra.mxu0 %v23886_v39 }
  0xfa   :  { %23891 = vmatprep.subr.bf16.mxu0 %v23890_v24 }
  0xfd   :  { %23893 = vmatpush3.bf16.msra.mxu0 %v23890_v24 }
  0xfe   :  { %23895 = vmatprep.subr.bf16.mxu0 %v23894_v25 }
 0x101   :  { %23897 = vmatpush3.bf16.msra.mxu0 %v23894_v25 }
 0x102   :  { %23899 = vmatprep.subr.bf16.mxu0 %v23898_v37 }
 0x105   :  { %23901 = vmatpush3.bf16.msra.mxu0 %v23898_v37 }
 0x106   :  { %23903 = vmatprep.subr.bf16.mxu0 %v23902_v46 }
 0x109   :  { %23905 = vmatpush3.bf16.msra.mxu0 %v23902_v46 }
 0x10a   :  { %23907 = vmatprep.subr.bf16.mxu0 %v23906_v54 }
 0x10d   :  { %23909 = vmatpush3.bf16.msra.mxu0 %v23906_v54 }
 0x10e   :  { %23911 = vmatprep.subr.bf16.mxu0 %v25290_v13 }
 0x110   :  { %21919 = vmatmul.mubr.msk.f32.vlgmr.msra.gmra.mrb[0].mxu0 %vm47_vm1, %v25192_v36 }
 0x111   :  { %23913 = vmatpush3.bf16.msra.mxu0 %v25290_v13  ;;  %21953 = vmatprep.mubr.msk.f32.mxu0 %vm46_vm0, %v25192_v36  ;;  %v758_v13 = vld [vmem:[%s27313_s3] sm:$0xff] }
 0x112   :  { %23915 = vmatprep.subr.bf16.mxu0 %v25292_v14 }
 0x115   :  { %23917 = vmatpush3.bf16.msra.mxu0 %v25292_v14  ;;  %v759_v14 = vld [vmem:[%s27313_s3 + $0x8] sm:$0xff] }
 0x116   :  { %23919 = vmatprep.subr.bf16.mxu0 %v25303_v19 }
 0x119   :  { %23921 = vmatpush3.bf16.msra.mxu0 %v25303_v19  ;;  %v770_v19 = vand.u32 4294901760, %v758_v13 }
 0x11a   :  { %23923 = vmatprep.subr.bf16.mxu0 %v25320_v28 }
 0x11d   :  { %23925 = vmatpush3.bf16.msra.mxu0 %v25320_v28  ;;  %v773_v28 = vand.u32 4294901760, %v759_v14 }
 0x11e   :  { %23927 = vmatprep.subr.bf16.mxu0 %v25348_v42 }
 0x11f   :  { %v867_v56 = vsub.f32 %v759_v14, %v773_v28  ;;  %v25608_v15 = vpack.c.bf16 %v773_v28, %v770_v19 }
 0x121   :  { %23929 = vmatpush3.bf16.msra.mxu0 %v25348_v42  ;;  %v860_v42 = vsub.f32 %v758_v13, %v770_v19 }
 0x122   :  { %23931 = vmatprep.subr.bf16.mxu0 %v25378_v59 }
 0x123   :  { %v23958_v61 = vpack.c.bf16 %v867_v56, %v860_v42  ;;  %v861_v20 = vand.u32 4294901760, %v860_v42 }
 0x125   :  { %23933 = vmatpush3.bf16.msra.mxu0 %v25378_v59  ;;  %v761_v59 = vld [vmem:[%s27313_s3 + $0x18] sm:$0xff]  ;;  %23959 = vmatprep.subr.bf16.mxu1 %v23958_v61  ;;  %v862_v23 = vsub.f32 %v860_v42, %v861_v20 }
 0x126   :  { %23935 = vmatprep.subr.bf16.mxu0 %v25393_v6  ;;  %v779_v4 = vand.u32 4294901760, %v761_v59  ;;  %23961 = vmatpush3.bf16.msra.mxu1 %v23958_v61 }
 0x127   :  { %v863_v44 = vand.u32 4294901760, %v862_v23 }
 0x128   :  { %v25610_v16 = vpack.c.bf16 %v779_v4, %v776_v62  ;;  %v25195_v62 = vmov -1e+30  }
 0x129   :  { %23937 = vmatpush3.bf16.msra.mxu0 %v25393_v6  ;;  %v881_v6 = vsub.f32 %v761_v59, %v779_v4  ;;  %v27338_v59 = vlaneseq }
 0x12a   :  { %23939 = vmatprep.subr.bf16.mxu0 %v25417_v21 }
 0x12b   :  { %v23962_v12 = vpack.c.bf16 %v881_v6, %v874_v5  ;;  %v882_v30 = vand.u32 4294901760, %v881_v6  ;;  %v755_v61 = vshrl.u32 %v27338_v59, 7 }
 0x12d   :  { %23941 = vmatpush3.bf16.msra.mxu0 %v25417_v21  ;;  %23963 = vmatprep.subr.bf16.mxu1 %v23962_v12  ;;  %v868_v21 = vand.u32 4294901760, %v867_v56  ;;  %v883_v1 = vsub.f32 %v881_v6, %v882_v30  ;;  %v23978_v11 = vpack.c.bf16 %v882_v30, %v875_v33  ;;  %vm756_vm5 = vcmp.ge.s32.totalorder %v755_v61, %v25477_v43 }
 0x12e   :  { %23965 = vmatpush3.bf16.msra.mxu1 %v23962_v12  ;;  %23943 = vmatprep.subr.bf16.mxu0 %v25608_v15  ;;  %v25673_v4 = vsel %vm756_vm5, 0.0, %v25195_v62 }
 0x12f   :  { %23967 = vmatprep.subr.bf16.mxu1 %v25608_v15  ;;  %v23974_v47 = vpack.c.bf16 %v868_v21, %v861_v20  ;;  %v884_v3 = vand.u32 4294901760, %v883_v1 }
 0x130   :  { %21954 = vmatmul.mubr.msk.f32.vlgmr.msra.gmra.mrb[0].mxu0 %vm47_vm1, %v25192_v36  ;;  %v869_v36 = vsub.f32 %v867_v56, %v868_v21 }
 0x131   :  { %23945 = vmatpush3.bf16.msra.mxu0 %v25608_v15  ;;  %v23954_v10 = vpack.c.bf16 %v884_v3, %v877_v55 }
 0x132   :  { %23947 = vmatprep.subr.bf16.mxu0 %v25610_v16  ;;  %v870_v45 = vand.u32 4294901760, %v869_v36 }
 0x134   :  { %v23950_v52 = vpack.c.bf16 %v870_v45, %v863_v44 }
 0x135   :  { %23949 = vmatpush3.bf16.msra.mxu0 %v25610_v16 }
 0x136   :  { %23951 = vmatprep.subr.bf16.mxu0 %v23950_v52 }
 0x203   :  { %v21955_v22 = vpop.f32.mrb[0].mxu0 }
 0x204   :  { %v25623_v26 = vadd.f32 %v21955_v22, %v69_v17  ;;  %v744_v29 = vpop.f32.mrb[1].mxu0 }
 0x205   :  { %v25625_v35 = vadd.f32 %v744_v29, %v68_v0 }
 0x206   :  { %v767_v27 = vsel %vm762_vm2, %v25623_v26, 0 }
 0x207   :  { %v848_v38 = vand.u32 4294901760, %v767_v27  ;;  %v764_v58 = vsel %vm762_vm2, %v25625_v35, 0 }
 0x208   :  { %v838_v2 = vand.u32 4294901760, %v764_v58 }
 0x209   :  { %v849_v34 = vsub.f32 %v767_v27, %v848_v38 }
 0x20a   :  { %v839_v7 = vsub.f32 %v764_v58, %v838_v2 }
 0x20b   :  { %v850_v49 = vand.u32 4294901760, %v849_v34 }
 0x20c   :  { %21986 = vmatprep.mubr.f32.mxu1 %v839_v7  ;;  %v840_v50 = vand.u32 4294901760, %v839_v7 }
 0x20d   :  { %21987 = vmatmul.mubr.f32.vlgmr.msra.gmra.mrb[0].mxu1 %v849_v34  ;;  %v851_v63 = vsub.f32 %v849_v34, %v850_v49 }
 0x20e   :  { %23969 = vmatpush3.bf16.msra.mxu1 %v25608_v15  ;;  %21997 = vmatprep.mubr.f32.mxu1 %v840_v50  ;;  %v841_v18 = vsub.f32 %v839_v7, %v840_v50 }
 0x20f   :  { %23971 = vmatprep.subr.bf16.mxu1 %v25610_v16  ;;  %v852_v9 = vand.u32 4294901760, %v851_v63 }
 0x210   :  { %v842_v51 = vand.u32 4294901760, %v841_v18 }
 0x212   :  { %21964 = vmatprep.mubr.f32.mxu0 %v842_v51  ;;  %23973 = vmatpush3.bf16.msra.mxu1 %v25610_v16 }
 0x213   :  { %21965 = vmatmul.mubr.f32.vlgmr.msra.gmra.mrb[2].mxu0 %v852_v9  ;;  %23975 = vmatprep.subr.bf16.mxu1 %v23974_v47 }
 0x214   :  { %23953 = vmatpush3.bf16.msra.mxu0 %v23950_v52  ;;  %21975 = vmatprep.mubr.f32.mxu0 %v838_v2 }
 0x215   :  { %21998 = vmatmul.mubr.f32.vlgmr.msra.gmra.mrb[0].mxu1 %v850_v49  ;;  %23955 = vmatprep.subr.bf16.mxu0 %v23954_v10 }
 0x216   :  { %23977 = vmatpush3.bf16.msra.mxu1 %v23974_v47  ;;  %22008 = vmatprep.mubr.f32.mxu1 %v838_v2 }
 0x217   :  { %23979 = vmatprep.subr.bf16.mxu1 %v23978_v11 }
 0x218   :  { %23957 = vmatpush3.bf16.msra.mxu0 %v23954_v10 }
 0x219   :  { %22202 = vmatprep.subr.mxu0 %v25191_v8 }
 0x21a   :  { %23981 = vmatpush3.bf16.msra.mxu1 %v23978_v11 }
 0x21b   :  { %21976 = vmatmul.mubr.f32.vlgmr.msra.gmra.mrb[2].mxu0 %v848_v38  ;;  %23983 = vmatprep.subr.bf16.mxu1 %v25608_v15 }
 0x21c   :  { %22204 = vmatprep.mubr.msk.f32.mxu0 %vm25193_vm3, %v25191_v8 }
 0x21d   :  { %22009 = vmatmul.mubr.f32.vlgmr.msra.gmra.mrb[0].mxu1 %v848_v38 }
 0x21e   :  { %23985 = vmatpush3.bf16.msra.mxu1 %v25608_v15  ;;  %22019 = vmatprep.mubr.f32.mxu1 %v838_v2 }
 0x21f   :  { %23987 = vmatprep.subr.bf16.mxu1 %v25610_v16 }
 0x222   :  { %23989 = vmatpush3.bf16.msra.mxu1 %v25610_v16 }
 0x223   :  { %22022 = vmatprep.subr.mxu1 %v25191_v8 }
 0x225   :  { %22020 = vmatmul.mubr.f32.vlgmr.msra.gmra.mrb[0].mxu1 %v848_v38 }
 0x226   :  { %22024 = vmatprep.mubr.msk.f32.mxu1 %vm25193_vm3, %v25191_v8 }
 0x2ee   :  { %v21977_v39 = vpop.f32.mrb[2].mxu0 }
 0x2ef   :  { %v945_v24 = vpop.f32.mrb[3].mxu0 }
 0x2f8   :  { %v22021_v25 = vpop.f32.mrb[0].mxu1 }
 0x2f9   :  { %v25644_v31 = vadd.f32 %v22021_v25, %v21977_v39  ;;  %v1287_v32 = vpop.f32.mrb[1].mxu1 }
 0x2fa   :  { %v25646_v37 = vadd.f32 %v1287_v32, %v945_v24 }
 0x2fc   :  { %1298 = vrot.lane.b32.xlu1 %v25646_v37, %s25194_s2  ;;  %v1301_v40 = vsel %vm1300_vm4, %v25646_v37, 0 }
 0x2fd   :  { %v1371_v41 = vand.u32 4294901760, %v1301_v40 }
 0x2ff   :  { %v1372_v46 = vsub.f32 %v1301_v40, %v1371_v41 }
 0x301   :  { %v1373_v48 = vand.u32 4294901760, %v1372_v46 }
 0x303   :  { %v1374_v13 = vsub.f32 %v1372_v46, %v1373_v48 }
 0x305   :  { %v1375_v28 = vand.u32 4294901760, %v1374_v13 }
 0x36e   :  { %v1299_v53 = vpop.permute.xlu1 %1298 }
 0x36f   :  { %v1303_v54 = vsel %vm1300_vm4, %v1299_v53, 0 }
 0x370   :  { %v1306_v14 = vand.u32 4294901760, %v1303_v54 }
 0x372   :  { %v1383_v19 = vsub.f32 %v1303_v54, %v1306_v14  ;;  %22023 = vmatpush3.xpose.msra.mxu1 %v1306_v14 }
 0x373   :  { %22027 = vmatprep.subr.mxu1 %v25191_v8 }
 0x374   :  { %v1384_v42 = vand.u32 4294901760, %v1383_v19 }
 0x375   :  { %22025 = vmatmul.mubr.f32.vlgmr.msra.gmra.mrb[2].mxu1 %v1375_v28 }
 0x376   :  { %v1385_v56 = vsub.f32 %v1383_v19, %v1384_v42  ;;  %22029 = vmatprep.mubr.msk.f32.mxu1 %vm25193_vm3, %v25191_v8 }
 0x378   :  { %v1386_v57 = vand.u32 4294901760, %v1385_v56 }
 0x37a   :  { %22028 = vmatpush3.xpose.msra.mxu1 %v1386_v57 }
 0x37b   :  { %22032 = vmatprep.subr.mxu1 %v25191_v8 }
 0x37d   :  { %22030 = vmatmul.mubr.f32.vlgmr.msra.gmra.mrb[2].mxu1 %v1371_v41 }
 0x37e   :  { %22033 = vmatpush3.xpose.msra.mxu1 %v1383_v19  ;;  %22034 = vmatprep.mubr.msk.f32.mxu1 %vm25193_vm3, %v25191_v8 }
 0x37f   :  { %22037 = vmatprep.subr.mxu1 %v25191_v8 }
 0x385   :  { %22035 = vmatmul.mubr.f32.vlgmr.msra.gmra.mrb[2].mxu1 %v1372_v46 }
 0x386   :  { %22038 = vmatpush3.xpose.msra.mxu1 %v1306_v14  ;;  %22039 = vmatprep.mubr.msk.f32.mxu1 %vm25193_vm3, %v25191_v8 }
 0x387   :  { %22042 = vmatprep.subr.mxu1 %v25191_v8 }
 0x38d   :  { %22040 = vmatmul.mubr.f32.vlgmr.msra.gmra.mrb[2].mxu1 %v1373_v48 }
 0x38e   :  { %22043 = vmatpush3.xpose.msra.mxu1 %v1384_v42  ;;  %22044 = vmatprep.mubr.msk.f32.mxu1 %vm25193_vm3, %v25191_v8 }
 0x38f   :  { %22047 = vmatprep.subr.mxu1 %v25191_v8 }
 0x395   :  { %22045 = vmatmul.mubr.f32.vlgmr.msra.gmra.mrb[2].mxu1 %v1371_v41 }
 0x396   :  { %22048 = vmatpush3.xpose.msra.mxu1 %v1306_v14  ;;  %22049 = vmatprep.mubr.msk.f32.mxu1 %vm25193_vm3, %v25191_v8 }
 0x397   :  { %22052 = vmatprep.subr.mxu1 %v25191_v8 }
 0x39d   :  { %22050 = vmatmul.mubr.f32.vlgmr.msra.gmra.mrb[2].mxu1 %v1371_v41 }
 0x39e   :  { %22054 = vmatprep.mubr.msk.f32.mxu1 %vm25193_vm3, %v25191_v8 }
 0x470   :  { %v1747_v5 = vpop.f32.mrb[2].mxu1 }
 0x471   :  { %v24618_v6 = vadd.f32 %v1747_v5, %v25673_v4  ;;  %v22051_v12 = vpop.f32.mrb[3].mxu1 }
 0x473   :  { %v1751_v15 = vsel %vm1300_vm4, %v24618_v6, -inf }
 0x474   :  { %1752 = vmax.xlane.f32.xlu1 %v1751_v15 }
 0x485   :  { %2215 = vrot.lane.b32.xlu1 %v25646_v37, %s25196_s19 }
 0x489   :  { %2217 = vrot.lane.b32.xlu1 %v25646_v37, %s25197_s20 }
 0x501   :  { %v1753_v16 = vpop.xlane.xlu1 %1752 }
 0x502   :  { %v1754_v43 = vsub.f32 %v24618_v6, %v1753_v16 }
 0x504   :  { %v1755_v20 = vmul.f32 1.442695, %v1754_v43 }
 0x505   :  { %v2216_v22 = vpop.permute.xlu1 %2215 }
 0x506   :  { %25078 = vpow2.f32 %v1755_v20  ;;  %v2219_v27 = vsel %vm1300_vm4, %v2216_v22, 0 }
 0x507   :  { %v2289_v58 = vand.u32 4294901760, %v2219_v27 }
 0x509   :  { %v2218_v29 = vpop.permute.xlu1 %2217  ;;  %v2290_v34 = vsub.f32 %v2219_v27, %v2289_v58 }
 0x50a   :  { %v2221_v38 = vsel %vm1300_vm4, %v2218_v29, 0 }
 0x50b   :  { %v2224_v2 = vand.u32 4294901760, %v2221_v38  ;;  %v2291_v49 = vand.u32 4294901760, %v2290_v34 }
 0x50d   :  { %v2301_v7 = vsub.f32 %v2221_v38, %v2224_v2  ;;  %v2292_v63 = vsub.f32 %v2290_v34, %v2291_v49 }
 0x50f   :  { %v2302_v50 = vand.u32 4294901760, %v2301_v7  ;;  %v2293_v51 = vand.u32 4294901760, %v2292_v63 }
 0x510   :  { %v25079_v21 = vpop.eup %25078 }
 0x511   :  { %v1757_v23 = vsel %vm1300_vm4, %v25079_v21, 0.0  ;;  %v2303_v18 = vsub.f32 %v2301_v7, %v2302_v50 }
 0x512   :  { %1758 = vadd.xlane.f32.xlu0 %v1757_v23 }
 0x513   :  { %v2304_v9 = vand.u32 4294901760, %v2303_v18 }
 0x528   :  { %1762 = vrot.lane.b32.xlu0 %v25646_v37, %s25198_s21 }
 0x59f   :  { %v1759_v36 = vpop.xlane.xlu0 %1758 }
 0x5a0   :  { %25080 = vrcp.f32 %v1759_v36 }
 0x5a3   :  { %v1763_v44 = vpop.permute.xlu0 %1762 }
 0x5a4   :  { %v1769_v45 = vand.u32 4294901760, %v1763_v44 }
 0x5a6   :  { %22053 = vmatpush3.msra.mxu1 %v1769_v45  ;;  %v1846_v52 = vsub.f32 %v1763_v44, %v1769_v45 }
 0x5a7   :  { %22057 = vmatprep.subr.mxu1 %v25191_v8 }
 0x5a8   :  { %v1847_v47 = vand.u32 4294901760, %v1846_v52 }
 0x5aa   :  { %v25081_v33 = vpop.eup %25080  ;;  %v1848_v10 = vsub.f32 %v1846_v52, %v1847_v47 }
 0x5ab   :  { %v1761_v30 = vmul.f32 %v25081_v33, %v25079_v21 }
 0x5ac   :  { %v1849_v0 = vand.u32 4294901760, %v1848_v10 }
 0x5ad   :  { %v1766_v60 = vsel %vm1300_vm4, %v1761_v30, 0 }
 0x5ae   :  { %v1834_v1 = vand.u32 4294901760, %v1766_v60 }
 0x5b0   :  { %v1835_v55 = vsub.f32 %v1766_v60, %v1834_v1 }
 0x5b2   :  { %v1836_v3 = vand.u32 4294901760, %v1835_v55 }
 0x5b4   :  { %v1837_v11 = vsub.f32 %v1835_v55, %v1836_v3 }
 0x5b6   :  { %v1838_v17 = vand.u32 4294901760, %v1837_v11 }
 0x5b8   :  { %22055 = vmatmul.mubr.f32.vlgmr.msra.gmra.mrb[4].mxu1 %v1838_v17 }
 0x5b9   :  { %22058 = vmatpush3.msra.mxu1 %v1849_v0  ;;  %22059 = vmatprep.mubr.msk.f32.mxu1 %vm25193_vm3, %v25191_v8  ;;  %v4987_v0 = vsel %vm1300_vm4, %v25644_v31, 0 }
 0x5ba   :  { %22062 = vmatprep.subr.mxu1 %v25191_v8  ;;  %v25800_v29 = vand.u32 4294901760, %v4987_v0 }
 0x5c0   :  { %22060 = vmatmul.mubr.f32.vlgmr.msra.gmra.mrb[4].mxu1 %v1834_v1 }
 0x5c1   :  { %22063 = vmatpush3.msra.mxu1 %v1846_v52  ;;  %22064 = vmatprep.mubr.msk.f32.mxu1 %vm25193_vm3, %v25191_v8 }
 0x5c2   :  { %22067 = vmatprep.subr.mxu1 %v25191_v8 }
 0x5c8   :  { %22065 = vmatmul.mubr.f32.vlgmr.msra.gmra.mrb[4].mxu1 %v1835_v55 }
 0x5c9   :  { %22068 = vmatpush3.msra.mxu1 %v1769_v45  ;;  %22069 = vmatprep.mubr.msk.f32.mxu1 %vm25193_vm3, %v25191_v8 }
 0x5ca   :  { %22072 = vmatprep.subr.mxu1 %v25191_v8 }
 0x5d0   :  { %22070 = vmatmul.mubr.f32.vlgmr.msra.gmra.mrb[4].mxu1 %v1836_v3 }
 0x5d1   :  { %22073 = vmatpush3.msra.mxu1 %v1847_v47  ;;  %22074 = vmatprep.mubr.msk.f32.mxu1 %vm25193_vm3, %v25191_v8 }
 0x5d2   :  { %22077 = vmatprep.subr.mxu1 %v25191_v8 }
 0x5d8   :  { %22075 = vmatmul.mubr.f32.vlgmr.msra.gmra.mrb[4].mxu1 %v1834_v1 }
 0x5d9   :  { %22078 = vmatpush3.msra.mxu1 %v1769_v45  ;;  %22079 = vmatprep.mubr.msk.f32.mxu1 %vm25193_vm3, %v25191_v8 }
 0x5da   :  { %22082 = vmatprep.subr.mxu1 %v25191_v8 }
 0x5e0   :  { %22080 = vmatmul.mubr.f32.vlgmr.msra.gmra.mrb[4].mxu1 %v1834_v1 }
 0x5e1   :  { %22083 = vmatpush3.xpose.msra.mxu1 %v2224_v2  ;;  %22084 = vmatprep.mubr.msk.f32.mxu1 %vm25193_vm3, %v25191_v8 }
 0x5e2   :  { %22087 = vmatprep.subr.mxu1 %v25191_v8 }
 0x5e4   :  { %22085 = vmatmul.mubr.f32.vlgmr.msra.gmra.mrb[6].mxu1 %v2293_v51 }
 0x5e5   :  { %22088 = vmatpush3.xpose.msra.mxu1 %v2304_v9  ;;  %22089 = vmatprep.mubr.msk.f32.mxu1 %vm25193_vm3, %v25191_v8 }
 0x5e6   :  { %22092 = vmatprep.subr.mxu1 %v25191_v8 }
 0x5ec   :  { %22090 = vmatmul.mubr.f32.vlgmr.msra.gmra.mrb[6].mxu1 %v2289_v58 }
 0x5ed   :  { %22093 = vmatpush3.xpose.msra.mxu1 %v2301_v7  ;;  %22094 = vmatprep.mubr.msk.f32.mxu1 %vm25193_vm3, %v25191_v8 }
 0x5ee   :  { %22097 = vmatprep.subr.mxu1 %v25191_v8 }
 0x5f4   :  { %22095 = vmatmul.mubr.f32.vlgmr.msra.gmra.mrb[6].mxu1 %v2290_v34 }
 0x5f5   :  { %22098 = vmatpush3.xpose.msra.mxu1 %v2224_v2  ;;  %22099 = vmatprep.mubr.msk.f32.mxu1 %vm25193_vm3, %v25191_v8 }
 0x5f6   :  { %22102 = vmatprep.subr.mxu1 %v25191_v8 }
 0x5fc   :  { %22100 = vmatmul.mubr.f32.vlgmr.msra.gmra.mrb[6].mxu1 %v2291_v49 }
 0x5fd   :  { %22103 = vmatpush3.xpose.msra.mxu1 %v2302_v50  ;;  %22104 = vmatprep.mubr.msk.f32.mxu1 %vm25193_vm3, %v25191_v8 }
 0x5fe   :  { %22107 = vmatprep.subr.mxu1 %v25191_v8 }
 0x604   :  { %22105 = vmatmul.mubr.f32.vlgmr.msra.gmra.mrb[6].mxu1 %v2289_v58 }
 0x605   :  { %22108 = vmatpush3.xpose.msra.mxu1 %v2224_v2  ;;  %22109 = vmatprep.mubr.msk.f32.mxu1 %vm25193_vm3, %v25191_v8  ;;  %v25810_v2 = vsub.f32 %v4987_v0, %v25800_v29 }
 0x606   :  { %22112 = vmatprep.subr.mxu1 %v25191_v8 }
 0x607   :  { %v5059_v50 = vand.u32 4294901760, %v25810_v2 }
 0x609   :  { %v5060_v9 = vsub.f32 %v25810_v2, %v5059_v50 }
 0x60c   :  { %22110 = vmatmul.mubr.f32.vlgmr.msra.gmra.mrb[6].mxu1 %v2289_v58 }
 0x60d   :  { %22114 = vmatprep.mubr.msk.f32.mxu1 %vm25193_vm3, %v25191_v8 }
 0x6b3   :  { %v2210_v39 = vpop.f32.mrb[4].mxu1 }
 0x6b4   :  { %2214 = vst.msk [vmem:[#allocation2] sm:$0xff] %vm1300_vm4, %v2210_v39  ;;  %v22081_v24 = vpop.f32.mrb[5].mxu1 }
 0x6df   :  { %v2665_v25 = vpop.f32.mrb[6].mxu1 }
 0x6e0   :  { %v24619_v32 = vadd.f32 %v2665_v25, %v25673_v4  ;;  %v22111_v40 = vpop.f32.mrb[7].mxu1 }
 0x6e2   :  { %v2669_v41 = vsel %vm1300_vm4, %v24619_v32, -inf }
 0x6e3   :  { %2670 = vmax.xlane.f32.xlu0 %v2669_v41 }
 0x6f9   :  { %2680 = vrot.lane.b32.xlu0 %v25646_v37, %s25199_s22 }
 0x6fd   :  { %3140 = vrot.lane.b32.xlu0 %v25646_v37, %s25200_s23 }
 0x701   :  { %4063 = vrot.lane.b32.xlu0 %v25646_v37, %s25201_s24 }
 0x705   :  { %5901 = vrot.lane.b32.xlu0 %v25644_v31, %s25196_s19 }
 0x709   :  { %6823 = vrot.lane.b32.xlu0 %v25644_v31, %s25202_s25 }
 0x70d   :  { %7745 = vrot.lane.b32.xlu0 %v25644_v31, %s25203_s26 }
 0x770   :  { %v2671_v46 = vpop.xlane.xlu0 %2670 }
 0x771   :  { %v2672_v48 = vsub.f32 %v24619_v32, %v2671_v46  ;;  %v5061_v32 = vand.u32 4294901760, %v5060_v9 }
 0x773   :  { %v2673_v53 = vmul.f32 1.442695, %v2672_v48 }
 0x774   :  { %v2681_v54 = vpop.permute.xlu0 %2680 }
 0x775   :  { %25082 = vpow2.f32 %v2673_v53  ;;  %v25738_v13 = vand.u32 4294901760, %v2681_v54 }
 0x777   :  { %22113 = vmatpush3.msra.mxu1 %v25738_v13  ;;  %v2764_v43 = vsub.f32 %v2681_v54, %v25738_v13 }
 0x778   :  { %v25741_v14 = vpop.permute.xlu0 %3140  ;;  %22117 = vmatprep.subr.mxu1 %v25191_v8 }
 0x779   :  { %v2765_v33 = vand.u32 4294901760, %v2764_v43  ;;  %v3144_v58 = vsel %vm1300_vm4, %v25741_v14, 0 }
 0x77a   :  { %v25816_v49 = vand.u32 4294901760, %v3144_v58 }
 0x77b   :  { %v2766_v55 = vsub.f32 %v2764_v43, %v2765_v33 }
 0x77c   :  { %v4064_v19 = vpop.permute.xlu0 %4063  ;;  %v3224_v51 = vsub.f32 %v3144_v58, %v25816_v49 }
 0x77d   :  { %v4067_v28 = vsel %vm1300_vm4, %v4064_v19, 0  ;;  %v2767_v11 = vand.u32 4294901760, %v2766_v55 }
 0x77e   :  { %v25745_v42 = vand.u32 4294901760, %v4067_v28  ;;  %v3225_v25 = vand.u32 4294901760, %v3224_v51 }
 0x77f   :  { %v25083_v56 = vpop.eup %25082 }
 0x780   :  { %22203 = vmatpush3.xpose.msra.mxu0 %v25745_v42  ;;  %v2675_v57 = vsel %vm1300_vm4, %v25083_v56, 0.0  ;;  %v4147_v62 = vsub.f32 %v4067_v28, %v25745_v42  ;;  %v3226_v46 = vsub.f32 %v3224_v51, %v3225_v25  ;;  %v5902_v54 = vpop.permute.xlu0 %5901 }
 0x781   :  { %2676 = vadd.xlane.f32.xlu1 %v2675_v57  ;;  %22207 = vmatprep.subr.mxu0 %v25191_v8  ;;  %v5905_v14 = vsel %vm1300_vm4, %v5902_v54, 0 }
 0x782   :  { %v4148_v16 = vand.u32 4294901760, %v4147_v62  ;;  %v3227_v53 = vand.u32 4294901760, %v3226_v46  ;;  %v5975_v28 = vand.u32 4294901760, %v5905_v14 }
 0x784   :  { %v4149_v44 = vsub.f32 %v4147_v62, %v4148_v16 }
 0x786   :  { %v4150_v1 = vand.u32 4294901760, %v4149_v44 }
 0x792   :  { %3138 = vrot.lane.b32.xlu1 %v25646_v37, %s25202_s25 }
 0x796   :  { %4061 = vrot.lane.b32.xlu1 %v25646_v37, %s25203_s26 }
 0x79a   :  { %4985 = vrot.lane.b32.xlu1 %v25644_v31, %s25194_s2 }
 0x79e   :  { %5903 = vrot.lane.b32.xlu1 %v25644_v31, %s25197_s20 }
 0x7a2   :  { %6825 = vrot.lane.b32.xlu1 %v25644_v31, %s25200_s23 }
 0x7a6   :  { %7747 = vrot.lane.b32.xlu1 %v25644_v31, %s25201_s24 }
 0x80e   :  { %v2677_v59 = vpop.xlane.xlu1 %2676 }
 0x80f   :  { %25084 = vrcp.f32 %v2677_v59 }
 0x812   :  { %v3139_v61 = vpop.permute.xlu1 %3138 }
 0x813   :  { %v3142_v38 = vsel %vm1300_vm4, %v3139_v61, 0 }
 0x814   :  { %v25812_v34 = vand.u32 4294901760, %v3142_v38 }
 0x816   :  { %v4062_v5 = vpop.permute.xlu1 %4061  ;;  %v3213_v63 = vsub.f32 %v3142_v38, %v25812_v34 }
 0x817   :  { %v4065_v6 = vsel %vm1300_vm4, %v4062_v5, 0 }
 0x818   :  { %v25764_v12 = vand.u32 4294901760, %v4065_v6  ;;  %v3214_v39 = vand.u32 4294901760, %v3213_v63 }
 0x819   :  { %v25085_v15 = vpop.eup %25084 }
 0x81a   :  { %v2679_v20 = vmul.f32 %v25085_v15, %v25083_v56  ;;  %v4136_v21 = vsub.f32 %v4065_v6, %v25764_v12  ;;  %v4986_v17 = vpop.permute.xlu1 %4985  ;;  %v3215_v40 = vsub.f32 %v3213_v63, %v3214_v39  ;;  %v5976_v56 = vsub.f32 %v5905_v14, %v5975_v28  ;;  %v6824_v15 = vpop.permute.xlu0 %6823 }
 0x81b   :  { %v4989_v22 = vsel %vm1300_vm4, %v4986_v17, 0 }
 0x81c   :  { %v4137_v23 = vand.u32 4294901760, %v4136_v21  ;;  %v2684_v36 = vsel %vm1300_vm4, %v2679_v20, 0  ;;  %v25802_v27 = vand.u32 4294901760, %v4989_v22  ;;  %v3216_v48 = vand.u32 4294901760, %v3215_v40 }
 0x81d   :  { %v25769_v45 = vand.u32 4294901760, %v2684_v36  ;;  %v5977_v59 = vand.u32 4294901760, %v5976_v56 }
 0x81e   :  { %v4138_v30 = vsub.f32 %v4136_v21, %v4137_v23  ;;  %v5069_v7 = vsub.f32 %v4989_v22, %v25802_v27 }
 0x81f   :  { %v2753_v52 = vsub.f32 %v2684_v36, %v25769_v45 }
 0x820   :  { %v4139_v60 = vand.u32 4294901760, %v4138_v30  ;;  %v5070_v18 = vand.u32 4294901760, %v5069_v7 }
 0x821   :  { %v2754_v47 = vand.u32 4294901760, %v2753_v52 }
 0x822   :  { %22205 = vmatmul.mubr.f32.vlgmr.msra.gmra.mrb[4].mxu0 %v4139_v60  ;;  %v5071_v24 = vsub.f32 %v5069_v7, %v5070_v18 }
 0x823   :  { %22208 = vmatpush3.xpose.msra.mxu0 %v4150_v1  ;;  %v2755_v3 = vsub.f32 %v2753_v52, %v2754_v47  ;;  %22209 = vmatprep.mubr.msk.f32.mxu0 %vm25193_vm3, %v25191_v8 }
 0x824   :  { %22212 = vmatprep.subr.mxu0 %v25191_v8  ;;  %v5072_v41 = vand.u32 4294901760, %v5071_v24 }
 0x825   :  { %v2756_v10 = vand.u32 4294901760, %v2755_v3 }
 0x827   :  { %22115 = vmatmul.mubr.f32.vlgmr.msra.gmra.mrb[8].mxu1 %v2756_v10 }
 0x828   :  { %22118 = vmatpush3.msra.mxu1 %v2767_v11  ;;  %22119 = vmatprep.mubr.msk.f32.mxu1 %vm25193_vm3, %v25191_v8 }
 0x829   :  { %22122 = vmatprep.subr.mxu1 %v25191_v8 }
 0x82a   :  { %22210 = vmatmul.mubr.f32.vlgmr.msra.gmra.mrb[4].mxu0 %v25764_v12 }
 0x82b   :  { %22213 = vmatpush3.xpose.msra.mxu0 %v4147_v62  ;;  %22214 = vmatprep.mubr.msk.f32.mxu0 %vm25193_vm3, %v25191_v8  ;;  %v5978_v62 = vsub.f32 %v5976_v56, %v5977_v59 }
 0x82c   :  { %22217 = vmatprep.subr.mxu0 %v25191_v8 }
 0x82d   :  { %v5979_v6 = vand.u32 4294901760, %v5978_v62 }
 0x82f   :  { %22120 = vmatmul.mubr.f32.vlgmr.msra.gmra.mrb[8].mxu1 %v25769_v45 }
 0x830   :  { %22123 = vmatpush3.msra.mxu1 %v2764_v43  ;;  %22124 = vmatprep.mubr.msk.f32.mxu1 %vm25193_vm3, %v25191_v8  ;;  %v6827_v43 = vsel %vm1300_vm4, %v6824_v15, 0 }
 0x831   :  { %22127 = vmatprep.subr.mxu1 %v25191_v8 }
 0x832   :  { %22215 = vmatmul.mubr.f32.vlgmr.msra.gmra.mrb[4].mxu0 %v4136_v21  ;;  %v6897_v21 = vand.u32 4294901760, %v6827_v43 }
 0x833   :  { %22218 = vmatpush3.xpose.msra.mxu0 %v25745_v42  ;;  %22219 = vmatprep.mubr.msk.f32.mxu0 %vm25193_vm3, %v25191_v8 }
 0x834   :  { %22222 = vmatprep.subr.mxu0 %v25191_v8  ;;  %v6898_v36 = vsub.f32 %v6827_v43, %v6897_v21 }
 0x837   :  { %22125 = vmatmul.mubr.f32.vlgmr.msra.gmra.mrb[8].mxu1 %v2753_v52 }
 0x838   :  { %22128 = vmatpush3.msra.mxu1 %v25738_v13  ;;  %22129 = vmatprep.mubr.msk.f32.mxu1 %vm25193_vm3, %v25191_v8 }
 0x839   :  { %22132 = vmatprep.subr.mxu1 %v25191_v8 }
 0x83a   :  { %22220 = vmatmul.mubr.f32.vlgmr.msra.gmra.mrb[4].mxu0 %v4137_v23 }
 0x83b   :  { %22223 = vmatpush3.xpose.msra.mxu0 %v4148_v16  ;;  %22224 = vmatprep.mubr.msk.f32.mxu0 %vm25193_vm3, %v25191_v8 }
 0x83c   :  { %22227 = vmatprep.subr.mxu0 %v25191_v8 }
 0x83f   :  { %22130 = vmatmul.mubr.f32.vlgmr.msra.gmra.mrb[8].mxu1 %v2754_v47  ;;  %v7746_v47 = vpop.permute.xlu0 %7745 }
 0x840   :  { %22133 = vmatpush3.msra.mxu1 %v2765_v33  ;;  %22134 = vmatprep.mubr.msk.f32.mxu1 %vm25193_vm3, %v25191_v8  ;;  %v7749_v3 = vsel %vm1300_vm4, %v7746_v47, 0 }
 0x841   :  { %22137 = vmatprep.subr.mxu1 %v25191_v8  ;;  %v7819_v11 = vand.u32 4294901760, %v7749_v3 }
 0x842   :  { %22225 = vmatmul.mubr.f32.vlgmr.msra.gmra.mrb[4].mxu0 %v25764_v12 }
 0x843   :  { %22228 = vmatpush3.xpose.msra.mxu0 %v25745_v42  ;;  %22229 = vmatprep.mubr.msk.f32.mxu0 %vm25193_vm3, %v25191_v8  ;;  %v7820_v0 = vsub.f32 %v7749_v3, %v7819_v11 }
 0x844   :  { %22262 = vmatprep.subr.mxu0 %v25191_v8 }
 0x847   :  { %22135 = vmatmul.mubr.f32.vlgmr.msra.gmra.mrb[8].mxu1 %v25769_v45 }
 0x848   :  { %22138 = vmatpush3.msra.mxu1 %v25738_v13  ;;  %22139 = vmatprep.mubr.msk.f32.mxu1 %vm25193_vm3, %v25191_v8  ;;  %v5904_v13 = vpop.permute.xlu1 %5903 }
 0x849   :  { %22142 = vmatprep.subr.mxu1 %v25191_v8  ;;  %v5907_v19 = vsel %vm1300_vm4, %v5904_v13, 0 }
 0x84a   :  { %22230 = vmatmul.mubr.f32.vlgmr.msra.gmra.mrb[4].mxu0 %v25764_v12  ;;  %v5910_v42 = vand.u32 4294901760, %v5907_v19 }
 0x84b   :  { %22263 = vmatpush3.xpose.msra.mxu0 %v25802_v27  ;;  %22264 = vmatprep.mubr.msk.f32.mxu0 %vm25193_vm3, %v25191_v8 }
 0x84c   :  { %22267 = vmatprep.subr.mxu0 %v25191_v8  ;;  %v5987_v57 = vsub.f32 %v5907_v19, %v5910_v42  ;;  %v6826_v16 = vpop.permute.xlu1 %6825 }
 0x84d   :  { %v6829_v20 = vsel %vm1300_vm4, %v6826_v16, 0 }
 0x84e   :  { %22265 = vmatmul.mubr.f32.vlgmr.msra.gmra.mrb[6].mxu0 %v5061_v32  ;;  %v5988_v61 = vand.u32 4294901760, %v5987_v57  ;;  %v6832_v23 = vand.u32 4294901760, %v6829_v20 }
 0x84f   :  { %22268 = vmatpush3.xpose.msra.mxu0 %v5072_v41  ;;  %22140 = vmatmul.mubr.f32.vlgmr.msra.gmra.mrb[8].mxu1 %v25769_v45  ;;  %v6899_v45 = vand.u32 4294901760, %v6898_v36 }
 0x850   :  { %22143 = vmatpush3.xpose.msra.mxu1 %v25816_v49  ;;  %22144 = vmatprep.mubr.msk.f32.mxu1 %vm25193_vm3, %v25191_v8  ;;  %v5989_v5 = vsub.f32 %v5987_v57, %v5988_v61  ;;  %v6909_v44 = vsub.f32 %v6829_v20, %v6832_v23  ;;  %v7748_v55 = vpop.permute.xlu1 %7747 }
 0x851   :  { %22147 = vmatprep.subr.mxu1 %v25191_v8  ;;  %22269 = vmatprep.mubr.msk.f32.mxu0 %vm25193_vm3, %v25191_v8  ;;  %v6900_v30 = vsub.f32 %v6898_v36, %v6899_v45  ;;  %v7751_v10 = vsel %vm1300_vm4, %v7748_v55, 0 }
 0x852   :  { %22272 = vmatprep.subr.mxu0 %v25191_v8  ;;  %v5990_v12 = vand.u32 4294901760, %v5989_v5  ;;  %v6910_v33 = vand.u32 4294901760, %v6909_v44  ;;  %v7754_v17 = vand.u32 4294901760, %v7751_v10 }
 0x853   :  { %22145 = vmatmul.mubr.f32.vlgmr.msra.gmra.mrb[10].mxu1 %v3216_v48  ;;  %v6901_v60 = vand.u32 4294901760, %v6900_v30 }
 0x854   :  { %22148 = vmatpush3.xpose.msra.mxu1 %v3227_v53  ;;  %22149 = vmatprep.mubr.msk.f32.mxu1 %vm25193_vm3, %v25191_v8  ;;  %v6911_v52 = vsub.f32 %v6909_v44, %v6910_v33  ;;  %v7831_v22 = vsub.f32 %v7751_v10, %v7754_v17 }
 0x855   :  { %22152 = vmatprep.subr.mxu1 %v25191_v8 }
 0x856   :  { %22270 = vmatmul.mubr.f32.vlgmr.msra.gmra.mrb[6].mxu0 %v25800_v29  ;;  %v6912_v1 = vand.u32 4294901760, %v6911_v52 }
 0x857   :  { %22273 = vmatpush3.xpose.msra.mxu0 %v5069_v7  ;;  %22274 = vmatprep.mubr.msk.f32.mxu0 %vm25193_vm3, %v25191_v8 }
 0x858   :  { %22277 = vmatprep.subr.mxu0 %v25191_v8 }
 0x85b   :  { %22150 = vmatmul.mubr.f32.vlgmr.msra.gmra.mrb[10].mxu1 %v25812_v34 }
 0x85c   :  { %22153 = vmatpush3.xpose.msra.mxu1 %v3224_v51  ;;  %22154 = vmatprep.mubr.msk.f32.mxu1 %vm25193_vm3, %v25191_v8 }
 0x85d   :  { %22157 = vmatprep.subr.mxu1 %v25191_v8 }
 0x85e   :  { %22275 = vmatmul.mubr.f32.vlgmr.msra.gmra.mrb[6].mxu0 %v25810_v2 }
 0x85f   :  { %22278 = vmatpush3.xpose.msra.mxu0 %v25802_v27  ;;  %22279 = vmatprep.mubr.msk.f32.mxu0 %vm25193_vm3, %v25191_v8 }
 0x860   :  { %22282 = vmatprep.subr.mxu0 %v25191_v8 }
 0x863   :  { %22155 = vmatmul.mubr.f32.vlgmr.msra.gmra.mrb[10].mxu1 %v3213_v63 }
 0x864   :  { %22158 = vmatpush3.xpose.msra.mxu1 %v25816_v49  ;;  %22159 = vmatprep.mubr.msk.f32.mxu1 %vm25193_vm3, %v25191_v8 }
 0x865   :  { %22162 = vmatprep.subr.mxu1 %v25191_v8 }
 0x866   :  { %22280 = vmatmul.mubr.f32.vlgmr.msra.gmra.mrb[6].mxu0 %v5059_v50 }
 0x867   :  { %22283 = vmatpush3.xpose.msra.mxu0 %v5070_v18  ;;  %22284 = vmatprep.mubr.msk.f32.mxu0 %vm25193_vm3, %v25191_v8 }
 0x868   :  { %22287 = vmatprep.subr.mxu0 %v25191_v8 }
 0x86b   :  { %22160 = vmatmul.mubr.f32.vlgmr.msra.gmra.mrb[10].mxu1 %v3214_v39 }
 0x86c   :  { %22163 = vmatpush3.xpose.msra.mxu1 %v3225_v25  ;;  %22164 = vmatprep.mubr.msk.f32.mxu1 %vm25193_vm3, %v25191_v8 }
 0x86d   :  { %22167 = vmatprep.subr.mxu1 %v25191_v8 }
 0x86e   :  { %22285 = vmatmul.mubr.f32.vlgmr.msra.gmra.mrb[6].mxu0 %v25800_v29 }
 0x86f   :  { %22288 = vmatpush3.xpose.msra.mxu0 %v25802_v27  ;;  %22289 = vmatprep.mubr.msk.f32.mxu0 %vm25193_vm3, %v25191_v8  ;;  %v7832_v27 = vand.u32 4294901760, %v7831_v22 }
 0x870   :  { %22322 = vmatprep.subr.mxu0 %v25191_v8 }
 0x871   :  { %v7833_v58 = vsub.f32 %v7831_v22, %v7832_v27 }
 0x873   :  { %22165 = vmatmul.mubr.f32.vlgmr.msra.gmra.mrb[10].mxu1 %v25812_v34 }
 0x874   :  { %22168 = vmatpush3.xpose.msra.mxu1 %v25816_v49  ;;  %22169 = vmatprep.mubr.msk.f32.mxu1 %vm25193_vm3, %v25191_v8 }
 0x875   :  { %22172 = vmatprep.subr.mxu1 %v25191_v8 }
 0x876   :  { %22290 = vmatmul.mubr.f32.vlgmr.msra.gmra.mrb[6].mxu0 %v25800_v29  ;;  %v7821_v29 = vand.u32 4294901760, %v7820_v0 }
 0x877   :  { %22323 = vmatpush3.xpose.msra.mxu0 %v5910_v42  ;;  %22324 = vmatprep.mubr.msk.f32.mxu0 %vm25193_vm3, %v25191_v8 }
 0x878   :  { %22327 = vmatprep.subr.mxu0 %v25191_v8  ;;  %v7822_v38 = vsub.f32 %v7820_v0, %v7821_v29 }
 0x87a   :  { %22325 = vmatmul.mubr.f32.vlgmr.msra.gmra.mrb[8].mxu0 %v5979_v6  ;;  %v7823_v2 = vand.u32 4294901760, %v7822_v38 }
 0x87b   :  { %22328 = vmatpush3.xpose.msra.mxu0 %v5990_v12  ;;  %22170 = vmatmul.mubr.f32.vlgmr.msra.gmra.mrb[10].mxu1 %v25812_v34  ;;  %v7834_v34 = vand.u32 4294901760, %v7833_v58 }
 0x87c   :  { %22329 = vmatprep.mubr.msk.f32.mxu0 %vm25193_vm3, %v25191_v8  ;;  %22332 = vmatprep.subr.mxu0 %v25191_v8 }
 0x87d   :  { %22174 = vmatprep.mubr.msk.f32.mxu1 %vm25193_vm3, %v25191_v8 }
 0x882   :  { %22330 = vmatmul.mubr.f32.vlgmr.msra.gmra.mrb[8].mxu0 %v5975_v28 }
 0x883   :  { %22333 = vmatpush3.xpose.msra.mxu0 %v5987_v57  ;;  %22334 = vmatprep.mubr.msk.f32.mxu0 %vm25193_vm3, %v25191_v8 }
 0x884   :  { %22337 = vmatprep.subr.mxu0 %v25191_v8 }
 0x88a   :  { %22335 = vmatmul.mubr.f32.vlgmr.msra.gmra.mrb[8].mxu0 %v5976_v56 }
 0x88b   :  { %22338 = vmatpush3.xpose.msra.mxu0 %v5910_v42  ;;  %22339 = vmatprep.mubr.msk.f32.mxu0 %vm25193_vm3, %v25191_v8 }
 0x88c   :  { %22342 = vmatprep.subr.mxu0 %v25191_v8 }
 0x892   :  { %22340 = vmatmul.mubr.f32.vlgmr.msra.gmra.mrb[8].mxu0 %v5977_v59 }
 0x893   :  { %22343 = vmatpush3.xpose.msra.mxu0 %v5988_v61  ;;  %22344 = vmatprep.mubr.msk.f32.mxu0 %vm25193_vm3, %v25191_v8 }
 0x894   :  { %22347 = vmatprep.subr.mxu0 %v25191_v8 }
 0x89a   :  { %22345 = vmatmul.mubr.f32.vlgmr.msra.gmra.mrb[8].mxu0 %v5975_v28 }
 0x89b   :  { %22348 = vmatpush3.xpose.msra.mxu0 %v5910_v42  ;;  %22349 = vmatprep.mubr.msk.f32.mxu0 %vm25193_vm3, %v25191_v8 }
 0x89c   :  { %22382 = vmatprep.subr.mxu0 %v25191_v8 }
 0x8a2   :  { %22350 = vmatmul.mubr.f32.vlgmr.msra.gmra.mrb[8].mxu0 %v5975_v28 }
 0x8a3   :  { %22383 = vmatpush3.xpose.msra.mxu0 %v6832_v23  ;;  %22384 = vmatprep.mubr.msk.f32.mxu0 %vm25193_vm3, %v25191_v8 }
 0x8a4   :  { %22387 = vmatprep.subr.mxu0 %v25191_v8 }
 0x8a6   :  { %22385 = vmatmul.mubr.f32.vlgmr.msra.gmra.mrb[10].mxu0 %v6901_v60 }
 0x8a7   :  { %22388 = vmatpush3.xpose.msra.mxu0 %v6912_v1  ;;  %22389 = vmatprep.mubr.msk.f32.mxu0 %vm25193_vm3, %v25191_v8 }
 0x8a8   :  { %22392 = vmatprep.subr.mxu0 %v25191_v8 }
 0x8ae   :  { %22390 = vmatmul.mubr.f32.vlgmr.msra.gmra.mrb[10].mxu0 %v6897_v21 }
 0x8af   :  { %22393 = vmatpush3.xpose.msra.mxu0 %v6909_v44  ;;  %22394 = vmatprep.mubr.msk.f32.mxu0 %vm25193_vm3, %v25191_v8 }
 0x8b0   :  { %22397 = vmatprep.subr.mxu0 %v25191_v8 }
 0x8b6   :  { %22395 = vmatmul.mubr.f32.vlgmr.msra.gmra.mrb[10].mxu0 %v6898_v36 }
 0x8b7   :  { %22398 = vmatpush3.xpose.msra.mxu0 %v6832_v23  ;;  %22399 = vmatprep.mubr.msk.f32.mxu0 %vm25193_vm3, %v25191_v8 }
 0x8b8   :  { %22402 = vmatprep.subr.mxu0 %v25191_v8 }
 0x8be   :  { %22400 = vmatmul.mubr.f32.vlgmr.msra.gmra.mrb[10].mxu0 %v6899_v45 }
 0x8bf   :  { %22403 = vmatpush3.xpose.msra.mxu0 %v6910_v33  ;;  %22404 = vmatprep.mubr.msk.f32.mxu0 %vm25193_vm3, %v25191_v8 }
 0x8c0   :  { %22407 = vmatprep.subr.mxu0 %v25191_v8 }
 0x8c6   :  { %22405 = vmatmul.mubr.f32.vlgmr.msra.gmra.mrb[10].mxu0 %v6897_v21 }
 0x8c7   :  { %22408 = vmatpush3.xpose.msra.mxu0 %v6832_v23  ;;  %22409 = vmatprep.mubr.msk.f32.mxu0 %vm25193_vm3, %v25191_v8 }
 0x8c8   :  { %22442 = vmatprep.subr.mxu0 %v25191_v8 }
 0x8ce   :  { %22410 = vmatmul.mubr.f32.vlgmr.msra.gmra.mrb[10].mxu0 %v6897_v21 }
 0x8cf   :  { %22443 = vmatpush3.xpose.msra.mxu0 %v7754_v17  ;;  %22444 = vmatprep.mubr.msk.f32.mxu0 %vm25193_vm3, %v25191_v8 }
 0x8d0   :  { %22447 = vmatprep.subr.mxu0 %v25191_v8 }
 0x8d2   :  { %22445 = vmatmul.mubr.f32.vlgmr.msra.gmra.mrb[12].mxu0 %v7823_v2 }
 0x8d3   :  { %22448 = vmatpush3.xpose.msra.mxu0 %v7834_v34  ;;  %22449 = vmatprep.mubr.msk.f32.mxu0 %vm25193_vm3, %v25191_v8 }
 0x8d4   :  { %22452 = vmatprep.subr.mxu0 %v25191_v8 }
 0x8da   :  { %22450 = vmatmul.mubr.f32.vlgmr.msra.gmra.mrb[12].mxu0 %v7819_v11 }
 0x8db   :  { %22453 = vmatpush3.xpose.msra.mxu0 %v7831_v22  ;;  %22454 = vmatprep.mubr.msk.f32.mxu0 %vm25193_vm3, %v25191_v8 }
 0x8dc   :  { %22457 = vmatprep.subr.mxu0 %v25191_v8 }
 0x8e2   :  { %22455 = vmatmul.mubr.f32.vlgmr.msra.gmra.mrb[12].mxu0 %v7820_v0 }
 0x8e3   :  { %22458 = vmatpush3.xpose.msra.mxu0 %v7754_v17  ;;  %22459 = vmatprep.mubr.msk.f32.mxu0 %vm25193_vm3, %v25191_v8 }
 0x8e4   :  { %22462 = vmatprep.subr.mxu0 %v25191_v8 }
 0x8ea   :  { %22460 = vmatmul.mubr.f32.vlgmr.msra.gmra.mrb[12].mxu0 %v7821_v29 }
 0x8eb   :  { %22463 = vmatpush3.xpose.msra.mxu0 %v7832_v27  ;;  %22464 = vmatprep.mubr.msk.f32.mxu0 %vm25193_vm3, %v25191_v8 }
 0x8ec   :  { %22467 = vmatprep.subr.mxu0 %v25191_v8 }
 0x8f2   :  { %22465 = vmatmul.mubr.f32.vlgmr.msra.gmra.mrb[12].mxu0 %v7819_v11 }
 0x8f3   :  { %22468 = vmatpush3.xpose.msra.mxu0 %v7754_v17  ;;  %22469 = vmatprep.mubr.msk.f32.mxu0 %vm25193_vm3, %v25191_v8 }
 0x8fa   :  { %22470 = vmatmul.mubr.f32.vlgmr.msra.gmra.mrb[12].mxu0 %v7819_v11 }
 0x91d   :  { %v4511_v7 = vpop.f32.mrb[4].mxu0 }
 0x91e   :  { %v24621_v49 = vadd.f32 %v4511_v7, %v25673_v4  ;;  %v22231_v50 = vpop.f32.mrb[5].mxu0 }
 0x920   :  { %v4515_v63 = vsel %vm1300_vm4, %v24621_v49, -inf }
 0x921   :  { %4516 = vmax.xlane.f32.xlu1 %v4515_v63 }
 0x922   :  { %v25946_v18 = vpop.f32.mrb[8].mxu1 }
 0x923   :  { %v22141_v51 = vpop.f32.mrb[9].mxu1 }
 0x932   :  { %3603 = vrot.lane.b32.xlu1 %v25646_v37, %s25204_s27 }
 0x949   :  { %v5433_v9 = vpop.f32.mrb[6].mxu0 }
 0x94a   :  { %v22291_v39 = vpop.f32.mrb[7].mxu0  ;;  %v24622_v5 = vadd.f32 %v5433_v9, %v25673_v4 }
 0x94c   :  { %v5437_v12 = vsel %vm1300_vm4, %v24622_v5, -inf }
 0x94e   :  { %v3588_v24 = vpop.f32.mrb[10].mxu1 }
 0x94f   :  { %v24620_v25 = vadd.f32 %v3588_v24, %v25673_v4  ;;  %v22171_v32 = vpop.f32.mrb[11].mxu1 }
 0x951   :  { %v3592_v40 = vsel %vm1300_vm4, %v24620_v25, -inf }
 0x952   :  { %3593 = vmax.xlane.f32.xlu0 %v3592_v40 }
 0x975   :  { %v6351_v41 = vpop.f32.mrb[8].mxu0 }
 0x976   :  { %v22351_v46 = vpop.f32.mrb[9].mxu0  ;;  %v24623_v16 = vadd.f32 %v6351_v41, %v25673_v4 }
 0x978   :  { %v6355_v20 = vsel %vm1300_vm4, %v24623_v16, -inf }
 0x9a1   :  { %v7273_v48 = vpop.f32.mrb[10].mxu0 }
 0x9a2   :  { %v22411_v53 = vpop.f32.mrb[11].mxu0  ;;  %v25965_v21 = vadd.f32 %v7273_v48, %v25673_v4 }
 0x9a4   :  { %v7277_v23 = vsel %vm1300_vm4, %v25965_v21, -inf }
 0x9ae   :  { %v4517_v54 = vpop.xlane.xlu1 %4516 }
 0x9af   :  { %v4518_v57 = vsub.f32 %v24621_v49, %v4517_v54 }
 0x9b1   :  { %v4519_v61 = vmul.f32 1.442695, %v4518_v57 }
 0x9b2   :  { %v3604_v13 = vpop.permute.xlu1 %3603 }
 0x9b3   :  { %v25952_v14 = vand.u32 4294901760, %v3604_v13 }
 0x9b5   :  { %22173 = vmatpush3.msra.mxu1 %v25952_v14  ;;  %v3687_v60 = vsub.f32 %v3604_v13, %v25952_v14 }
 0x9b6   :  { %22177 = vmatprep.subr.mxu1 %v25191_v8 }
 0x9b7   :  { %v3688_v11 = vand.u32 4294901760, %v3687_v60 }
 0x9b9   :  { %v3689_v29 = vsub.f32 %v3687_v60, %v3688_v11 }
 0x9bb   :  { %v3690_v2 = vand.u32 4294901760, %v3689_v29 }
 0x9cd   :  { %v8195_v19 = vpop.f32.mrb[12].mxu0 }
 0x9ce   :  { %v22471_v28 = vpop.f32.mrb[13].mxu0  ;;  %v25981_v7 = vadd.f32 %v8195_v19, %v25673_v4 }
 0x9d0   :  { %v8199_v50 = vsel %vm1300_vm4, %v25981_v7, -inf }
 0x9df   :  { %v3594_v42 = vpop.xlane.xlu0 %3593 }
 0x9e0   :  { %v3595_v56 = vsub.f32 %v24620_v25, %v3594_v42 }
 0x9e2   :  { %v3596_v59 = vmul.f32 1.442695, %v3595_v56 }
 0x9e4   :  { %25086 = vpow2.f32 %v3596_v59 }
 0x9e5   :  { %25088 = vpow2.f32 %v4519_v61 }
 0x9ee   :  { %v25087_v62 = vpop.eup %25086 }
 0x9ef   :  { %v3598_v6 = vsel %vm1300_vm4, %v25087_v62, 0.0  ;;  %v25089_v15 = vpop.eup %25088 }
 0x9f0   :  { %3599 = vadd.xlane.f32.xlu0 %v3598_v6  ;;  %v4521_v43 = vsel %vm1300_vm4, %v25089_v15, 0.0 }
 0x9f4   :  { %5438 = vmax.xlane.f32.xlu0 %v5437_v12 }
 0x9f8   :  { %4522 = vadd.xlane.f32.xlu0 %v4521_v43 }
 0x9fc   :  { %6356 = vmax.xlane.f32.xlu0 %v6355_v20 }
 0xa12   :  { %4526 = vrot.lane.b32.xlu0 %v25646_v37, %s25205_s28 }
 0xa31   :  { %7278 = vmax.xlane.f32.xlu0 %v7277_v23 }
 0xa7d   :  { %v3600_v36 = vpop.xlane.xlu0 %3599 }
 0xa7e   :  { %25090 = vrcp.f32 %v3600_v36 }
 0xa81   :  { %v5439_v44 = vpop.xlane.xlu0 %5438 }
 0xa82   :  { %v5440_v45 = vsub.f32 %v24622_v5, %v5439_v44 }
 0xa84   :  { %v5441_v33 = vmul.f32 1.442695, %v5440_v45 }
 0xa85   :  { %v4523_v30 = vpop.xlane.xlu0 %4522 }
 0xa86   :  { %25092 = vpow2.f32 %v5441_v33 }
 0xa88   :  { %v25091_v52 = vpop.eup %25090 }
 0xa89   :  { %v3602_v1 = vmul.f32 %v25091_v52, %v25087_v62  ;;  %v6357_v47 = vpop.xlane.xlu0 %6356 }
 0xa8a   :  { %v6358_v37 = vsub.f32 %v24623_v16, %v6357_v47 }
 0xa8b   :  { %v3607_v55 = vsel %vm1300_vm4, %v3602_v1, 0 }
 0xa8c   :  { %v6359_v3 = vmul.f32 1.442695, %v6358_v37  ;;  %v3675_v10 = vand.u32 4294901760, %v3607_v55 }
 0xa8d   :  { %v4527_v39 = vpop.permute.xlu0 %4526 }
 0xa8e   :  { %25094 = vpow2.f32 %v6359_v3  ;;  %v3676_v17 = vsub.f32 %v3607_v55, %v3675_v10  ;;  %v4533_v25 = vand.u32 4294901760, %v4527_v39 }
 0xa8f   :  { %25096 = vrcp.f32 %v4523_v30 }
 0xa90   :  { %v25971_v0 = vpop.eup %25092  ;;  %v3677_v22 = vand.u32 4294901760, %v3676_v17  ;;  %v4610_v40 = vsub.f32 %v4527_v39, %v4533_v25 }
 0xa91   :  { %v5443_v27 = vsel %vm1300_vm4, %v25971_v0, 0.0 }
 0xa92   :  { %5444 = vadd.xlane.f32.xlu1 %v5443_v27  ;;  %v3678_v38 = vsub.f32 %v3676_v17, %v3677_v22  ;;  %v4611_v46 = vand.u32 4294901760, %v4610_v40 }
 0xa94   :  { %v3679_v58 = vand.u32 4294901760, %v3678_v38  ;;  %v4612_v48 = vsub.f32 %v4610_v40, %v4611_v46 }
 0xa96   :  { %22175 = vmatmul.mubr.f32.vlgmr.msra.gmra.mrb[12].mxu1 %v3679_v58 }
 0xa97   :  { %22178 = vmatpush3.msra.mxu1 %v3690_v2  ;;  %22179 = vmatprep.mubr.msk.f32.mxu1 %vm25193_vm3, %v25191_v8 }
 0xa98   :  { %v25977_v34 = vpop.eup %25094  ;;  %22182 = vmatprep.subr.mxu1 %v25191_v8 }
 0xa99   :  { %v6361_v49 = vsel %vm1300_vm4, %v25977_v34, 0.0  ;;  %v25097_v63 = vpop.eup %25096 }
 0xa9a   :  { %6362 = vadd.xlane.f32.xlu0 %v6361_v49  ;;  %v4525_v51 = vmul.f32 %v25097_v63, %v25089_v15 }
 0xa9c   :  { %v4530_v9 = vsel %vm1300_vm4, %v4525_v51, 0 }
 0xa9d   :  { %v4598_v24 = vand.u32 4294901760, %v4530_v9 }
 0xa9e   :  { %22180 = vmatmul.mubr.f32.vlgmr.msra.gmra.mrb[12].mxu1 %v3675_v10  ;;  %8200 = vmax.xlane.f32.xlu0 %v8199_v50 }
 0xa9f   :  { %22183 = vmatpush3.msra.mxu1 %v3687_v60  ;;  %22184 = vmatprep.mubr.msk.f32.mxu1 %vm25193_vm3, %v25191_v8  ;;  %v4599_v32 = vsub.f32 %v4530_v9, %v4598_v24 }
 0xaa0   :  { %22187 = vmatprep.subr.mxu1 %v25191_v8 }
 0xaa1   :  { %v4600_v41 = vand.u32 4294901760, %v4599_v32 }
 0xaa3   :  { %5448 = vrot.lane.b32.xlu1 %v25644_v31, %s25198_s21 }
 0xaa6   :  { %22185 = vmatmul.mubr.f32.vlgmr.msra.gmra.mrb[12].mxu1 %v3676_v17 }
 0xaa7   :  { %22188 = vmatpush3.msra.mxu1 %v25952_v14  ;;  %6366 = vrot.lane.b32.xlu1 %v25644_v31, %s25199_s22 }
 0xaa8   :  { %22189 = vmatprep.mubr.msk.f32.mxu1 %vm25193_vm3, %v25191_v8  ;;  %22192 = vmatprep.subr.mxu1 %v25191_v8 }
 0xaab   :  { %7288 = vrot.lane.b32.xlu1 %v25644_v31, %s25204_s27 }
 0xaae   :  { %22190 = vmatmul.mubr.f32.vlgmr.msra.gmra.mrb[12].mxu1 %v3677_v22 }
 0xaaf   :  { %22193 = vmatpush3.msra.mxu1 %v3688_v11  ;;  %8210 = vrot.lane.b32.xlu1 %v25644_v31, %s25205_s28  ;;  %v4601_v31 = vsub.f32 %v4599_v32, %v4600_v41 }
 0xab0   :  { %22194 = vmatprep.mubr.msk.f32.mxu1 %vm25193_vm3, %v25191_v8  ;;  %22197 = vmatprep.subr.mxu1 %v25191_v8 }
 0xab1   :  { %v4602_v13 = vand.u32 4294901760, %v4601_v31 }
 0xab6   :  { %22195 = vmatmul.mubr.f32.vlgmr.msra.gmra.mrb[12].mxu1 %v3675_v10 }
 0xab7   :  { %22198 = vmatpush3.msra.mxu1 %v25952_v14  ;;  %22199 = vmatprep.mubr.msk.f32.mxu1 %vm25193_vm3, %v25191_v8  ;;  %v4613_v14 = vand.u32 4294901760, %v4612_v48 }
 0xab8   :  { %22232 = vmatprep.subr.mxu1 %v25191_v8 }
 0xabe   :  { %22200 = vmatmul.mubr.f32.vlgmr.msra.gmra.mrb[12].mxu1 %v3675_v10  ;;  %v7279_v53 = vpop.xlane.xlu0 %7278 }
 0xabf   :  { %22233 = vmatpush3.msra.mxu1 %v4533_v25  ;;  %v7280_v54 = vsub.f32 %v25965_v21, %v7279_v53  ;;  %22234 = vmatprep.mubr.msk.f32.mxu1 %vm25193_vm3, %v25191_v8 }
 0xac0   :  { %22237 = vmatprep.subr.mxu1 %v25191_v8 }
 0xac1   :  { %v7281_v19 = vmul.f32 1.442695, %v7280_v54 }
 0xac2   :  { %22235 = vmatmul.mubr.f32.vlgmr.msra.gmra.mrb[14].mxu1 %v4602_v13 }
 0xac3   :  { %25098 = vpow2.f32 %v7281_v19  ;;  %22238 = vmatpush3.msra.mxu1 %v4613_v14  ;;  %22239 = vmatprep.mubr.msk.f32.mxu1 %vm25193_vm3, %v25191_v8 }
 0xac4   :  { %22242 = vmatprep.subr.mxu1 %v25191_v8 }
 0xaca   :  { %22240 = vmatmul.mubr.f32.vlgmr.msra.gmra.mrb[14].mxu1 %v4598_v24 }
 0xacb   :  { %22243 = vmatpush3.msra.mxu1 %v4610_v40  ;;  %22244 = vmatprep.mubr.msk.f32.mxu1 %vm25193_vm3, %v25191_v8 }
 0xacc   :  { %22247 = vmatprep.subr.mxu1 %v25191_v8 }
 0xacd   :  { %v26020_v28 = vpop.eup %25098 }
 0xace   :  { %v7283_v42 = vsel %vm1300_vm4, %v26020_v28, 0.0 }
 0xacf   :  { %7284 = vadd.xlane.f32.xlu0 %v7283_v42 }
 0xad2   :  { %22245 = vmatmul.mubr.f32.vlgmr.msra.gmra.mrb[14].mxu1 %v4599_v32 }
 0xad3   :  { %22248 = vmatpush3.msra.mxu1 %v4533_v25  ;;  %22249 = vmatprep.mubr.msk.f32.mxu1 %vm25193_vm3, %v25191_v8 }
 0xad4   :  { %22252 = vmatprep.subr.mxu1 %v25191_v8 }
 0xada   :  { %22250 = vmatmul.mubr.f32.vlgmr.msra.gmra.mrb[14].mxu1 %v4600_v41 }
 0xadb   :  { %22253 = vmatpush3.msra.mxu1 %v4611_v46  ;;  %22254 = vmatprep.mubr.msk.f32.mxu1 %vm25193_vm3, %v25191_v8 }
 0xadc   :  { %22257 = vmatprep.subr.mxu1 %v25191_v8 }
 0xae2   :  { %22255 = vmatmul.mubr.f32.vlgmr.msra.gmra.mrb[14].mxu1 %v4598_v24 }
 0xae3   :  { %22258 = vmatpush3.msra.mxu1 %v4533_v25  ;;  %22259 = vmatprep.mubr.msk.f32.mxu1 %vm25193_vm3, %v25191_v8 }
 0xae4   :  { %22292 = vmatprep.subr.mxu1 %v25191_v8 }
 0xaea   :  { %22260 = vmatmul.mubr.f32.vlgmr.msra.gmra.mrb[14].mxu1 %v4598_v24 }
 0xaeb   :  { %22294 = vmatprep.mubr.msk.f32.mxu1 %vm25193_vm3, %v25191_v8 }
 0xb1f   :  { %v5445_v56 = vpop.xlane.xlu1 %5444 }
 0xb20   :  { %25100 = vrcp.f32 %v5445_v56 }
 0xb23   :  { %v5449_v57 = vpop.permute.xlu1 %5448 }
 0xb24   :  { %v5455_v59 = vand.u32 4294901760, %v5449_v57 }
 0xb26   :  { %22293 = vmatpush3.msra.mxu1 %v5455_v59  ;;  %v5532_v12 = vsub.f32 %v5449_v57, %v5455_v59 }
 0xb27   :  { %v6363_v61 = vpop.xlane.xlu0 %6362  ;;  %22297 = vmatprep.subr.mxu1 %v25191_v8  ;;  %v6367_v55 = vpop.permute.xlu1 %6366 }
 0xb28   :  { %v5533_v21 = vand.u32 4294901760, %v5532_v12  ;;  %v6373_v10 = vand.u32 4294901760, %v6367_v55 }
 0xb2a   :  { %v25101_v62 = vpop.eup %25100  ;;  %v5534_v44 = vsub.f32 %v5532_v12, %v5533_v21  ;;  %v6450_v17 = vsub.f32 %v6367_v55, %v6373_v10 }
 0xb2b   :  { %v5447_v5 = vmul.f32 %v25101_v62, %v25971_v0  ;;  %v8201_v6 = vpop.xlane.xlu0 %8200  ;;  %v7289_v49 = vpop.permute.xlu1 %7288 }
 0xb2c   :  { %v8202_v15 = vsub.f32 %v25981_v7, %v8201_v6  ;;  %v5535_v30 = vand.u32 4294901760, %v5534_v44  ;;  %v6451_v22 = vand.u32 4294901760, %v6450_v17  ;;  %v7295_v63 = vand.u32 4294901760, %v7289_v49 }
 0xb2d   :  { %v5452_v16 = vsel %vm1300_vm4, %v5447_v5, 0 }
 0xb2e   :  { %v8203_v43 = vmul.f32 1.442695, %v8202_v15  ;;  %v5520_v20 = vand.u32 4294901760, %v5452_v16  ;;  %v7372_v9 = vsub.f32 %v7289_v49, %v7295_v63 }
 0xb2f   :  { %v8211_v48 = vpop.permute.xlu1 %8210 }
 0xb30   :  { %25102 = vpow2.f32 %v8203_v43  ;;  %v5521_v23 = vsub.f32 %v5452_v16, %v5520_v20  ;;  %v7373_v24 = vand.u32 4294901760, %v7372_v9  ;;  %v8217_v53 = vand.u32 4294901760, %v8211_v48 }
 0xb31   :  { %25104 = vrcp.f32 %v6363_v61 }
 0xb32   :  { %v5522_v36 = vand.u32 4294901760, %v5521_v23  ;;  %v7374_v32 = vsub.f32 %v7372_v9, %v7373_v24  ;;  %v8294_v42 = vsub.f32 %v8211_v48, %v8217_v53 }
 0xb34   :  { %v5523_v45 = vsub.f32 %v5521_v23, %v5522_v36  ;;  %v7375_v41 = vand.u32 4294901760, %v7374_v32  ;;  %v8295_v61 = vand.u32 4294901760, %v8294_v42 }
 0xb36   :  { %v5524_v33 = vand.u32 4294901760, %v5523_v45  ;;  %v8296_v6 = vsub.f32 %v8294_v42, %v8295_v61 }
 0xb38   :  { %22295 = vmatmul.mubr.f32.vlgmr.msra.gmra.mrb[16].mxu1 %v5524_v33  ;;  %v8297_v16 = vand.u32 4294901760, %v8296_v6 }
 0xb39   :  { %22298 = vmatpush3.msra.mxu1 %v5535_v30  ;;  %22299 = vmatprep.mubr.msk.f32.mxu1 %vm25193_vm3, %v25191_v8 }
 0xb3a   :  { %v26039_v52 = vpop.eup %25102  ;;  %22302 = vmatprep.subr.mxu1 %v25191_v8 }
 0xb3b   :  { %v8205_v60 = vsel %vm1300_vm4, %v26039_v52, 0.0  ;;  %v25105_v1 = vpop.eup %25104 }
 0xb3c   :  { %8206 = vadd.xlane.f32.xlu0 %v8205_v60  ;;  %v6365_v47 = vmul.f32 %v25105_v1, %v25977_v34 }
 0xb3e   :  { %v6370_v37 = vsel %vm1300_vm4, %v6365_v47, 0 }
 0xb3f   :  { %v6438_v3 = vand.u32 4294901760, %v6370_v37 }
 0xb40   :  { %22300 = vmatmul.mubr.f32.vlgmr.msra.gmra.mrb[16].mxu1 %v5520_v20 }
 0xb41   :  { %22303 = vmatpush3.msra.mxu1 %v5532_v12  ;;  %22304 = vmatprep.mubr.msk.f32.mxu1 %vm25193_vm3, %v25191_v8  ;;  %v6439_v11 = vsub.f32 %v6370_v37, %v6438_v3 }
 0xb42   :  { %22307 = vmatprep.subr.mxu1 %v25191_v8 }
 0xb43   :  { %v6440_v0 = vand.u32 4294901760, %v6439_v11 }
 0xb45   :  { %v6441_v29 = vsub.f32 %v6439_v11, %v6440_v0 }
 0xb47   :  { %v6442_v27 = vand.u32 4294901760, %v6441_v29 }
 0xb48   :  { %22305 = vmatmul.mubr.f32.vlgmr.msra.gmra.mrb[16].mxu1 %v5521_v23 }
 0xb49   :  { %22308 = vmatpush3.msra.mxu1 %v5455_v59  ;;  %22309 = vmatprep.mubr.msk.f32.mxu1 %vm25193_vm3, %v25191_v8 }
 0xb4a   :  { %22312 = vmatprep.subr.mxu1 %v25191_v8 }
 0xb50   :  { %22310 = vmatmul.mubr.f32.vlgmr.msra.gmra.mrb[16].mxu1 %v5522_v36 }
 0xb51   :  { %22313 = vmatpush3.msra.mxu1 %v5533_v21  ;;  %22314 = vmatprep.mubr.msk.f32.mxu1 %vm25193_vm3, %v25191_v8 }
 0xb52   :  { %3133 = vrot.lane.b32.xlu0 %v25946_v18, %s25206_s29  ;;  %22317 = vmatprep.subr.mxu1 %v25191_v8  ;;  %v6452_v18 = vsub.f32 %v6450_v17, %v6451_v22 }
 0xb54   :  { %v6453_v38 = vand.u32 4294901760, %v6452_v18 }
 0xb58   :  { %22315 = vmatmul.mubr.f32.vlgmr.msra.gmra.mrb[16].mxu1 %v5520_v20 }
 0xb59   :  { %22318 = vmatpush3.msra.mxu1 %v5455_v59  ;;  %22319 = vmatprep.mubr.msk.f32.mxu1 %vm25193_vm3, %v25191_v8 }
 0xb5a   :  { %22352 = vmatprep.subr.mxu1 %v25191_v8 }
 0xb5c   :  { %v7285_v58 = vpop.xlane.xlu0 %7284 }
 0xb5d   :  { %25106 = vrcp.f32 %v7285_v58 }
 0xb60   :  { %22320 = vmatmul.mubr.f32.vlgmr.msra.gmra.mrb[16].mxu1 %v5520_v20 }
 0xb61   :  { %22353 = vmatpush3.msra.mxu1 %v6373_v10  ;;  %22354 = vmatprep.mubr.msk.f32.mxu1 %vm25193_vm3, %v25191_v8 }
 0xb62   :  { %22357 = vmatprep.subr.mxu1 %v25191_v8 }
 0xb64   :  { %22355 = vmatmul.mubr.f32.vlgmr.msra.gmra.mrb[18].mxu1 %v6442_v27 }
 0xb65   :  { %22358 = vmatpush3.msra.mxu1 %v6453_v38  ;;  %22359 = vmatprep.mubr.msk.f32.mxu1 %vm25193_vm3, %v25191_v8 }
 0xb66   :  { %22362 = vmatprep.subr.mxu1 %v25191_v8 }
 0xb67   :  { %v25107_v2 = vpop.eup %25106 }
 0xb68   :  { %v7287_v34 = vmul.f32 %v25107_v2, %v26020_v28 }
 0xb6a   :  { %v7292_v7 = vsel %vm1300_vm4, %v7287_v34, 0 }
 0xb6b   :  { %v7360_v50 = vand.u32 4294901760, %v7292_v7 }
 0xb6c   :  { %22360 = vmatmul.mubr.f32.vlgmr.msra.gmra.mrb[18].mxu1 %v6438_v3 }
 0xb6d   :  { %22363 = vmatpush3.msra.mxu1 %v6450_v17  ;;  %22364 = vmatprep.mubr.msk.f32.mxu1 %vm25193_vm3, %v25191_v8  ;;  %v7361_v51 = vsub.f32 %v7292_v7, %v7360_v50 }
 0xb6e   :  { %22367 = vmatprep.subr.mxu1 %v25191_v8 }
 0xb6f   :  { %v7362_v39 = vand.u32 4294901760, %v7361_v51 }
 0xb71   :  { %v7363_v25 = vsub.f32 %v7361_v51, %v7362_v39 }
 0xb73   :  { %v7364_v40 = vand.u32 4294901760, %v7363_v25 }
 0xb74   :  { %22365 = vmatmul.mubr.f32.vlgmr.msra.gmra.mrb[18].mxu1 %v6439_v11  ;;  %v8671_v11 = vld [vmem:[%s27314_s4 + $0x10] sm:$0xff] }
 0xb75   :  { %22368 = vmatpush3.msra.mxu1 %v6373_v10  ;;  %22369 = vmatprep.mubr.msk.f32.mxu1 %vm25193_vm3, %v25191_v8  ;;  %v8686_v29 = vand.u32 4294901760, %v8671_v11 }
 0xb76   :  { %22372 = vmatprep.subr.mxu1 %v25191_v8 }
 0xb7c   :  { %22370 = vmatmul.mubr.f32.vlgmr.msra.gmra.mrb[18].mxu1 %v6440_v0 }
 0xb7d   :  { %22373 = vmatpush3.msra.mxu1 %v6451_v22  ;;  %22374 = vmatprep.mubr.msk.f32.mxu1 %vm25193_vm3, %v25191_v8  ;;  %v8672_v22 = vld [vmem:[%s27314_s4 + $0x18] sm:$0xff] }
 0xb7e   :  { %22377 = vmatprep.subr.mxu1 %v25191_v8  ;;  %v8689_v27 = vand.u32 4294901760, %v8672_v22 }
 0xb80   :  { %v26152_v58 = vpack.c.bf16 %v8689_v27, %v8686_v29 }
 0xb84   :  { %22375 = vmatmul.mubr.f32.vlgmr.msra.gmra.mrb[18].mxu1 %v6438_v3 }
 0xb85   :  { %22378 = vmatpush3.msra.mxu1 %v6373_v10  ;;  %22379 = vmatprep.mubr.msk.f32.mxu1 %vm25193_vm3, %v25191_v8  ;;  %v8670_v10 = vld [vmem:[%s27314_s4 + $0x8] sm:$0xff] }
 0xb86   :  { %22412 = vmatprep.subr.mxu1 %v25191_v8  ;;  %v8683_v0 = vand.u32 4294901760, %v8670_v10 }
 0xb88   :  { %v8777_v34 = vsub.f32 %v8670_v10, %v8683_v0 }
 0xb8c   :  { %22380 = vmatmul.mubr.f32.vlgmr.msra.gmra.mrb[18].mxu1 %v6438_v3  ;;  %v8669_v3 = vld [vmem:[%s27314_s4] sm:$0xff] }
 0xb8d   :  { %22413 = vmatpush3.msra.mxu1 %v7295_v63  ;;  %22414 = vmatprep.mubr.msk.f32.mxu1 %vm25193_vm3, %v25191_v8  ;;  %v8680_v17 = vand.u32 4294901760, %v8669_v3 }
 0xb8e   :  { %22417 = vmatprep.subr.mxu1 %v25191_v8 }
 0xb8f   :  { %v26150_v38 = vpack.c.bf16 %v8683_v0, %v8680_v17  ;;  %v8770_v2 = vsub.f32 %v8669_v3, %v8680_v17 }
 0xb90   :  { %22415 = vmatmul.mubr.f32.vlgmr.msra.gmra.mrb[20].mxu1 %v7364_v40 }
 0xb91   :  { %v4051_v46 = vpop.f32.mrb[12].mxu1  ;;  %22418 = vmatpush3.msra.mxu1 %v7375_v41  ;;  %22419 = vmatprep.mubr.msk.f32.mxu1 %vm25193_vm3, %v25191_v8 }
 0xb92   :  { %4056 = vrot.lane.b32.xlu1 %v4051_v46, %s27330_s30  ;;  %v22201_v31 = vpop.f32.mrb[13].mxu1  ;;  %22422 = vmatprep.subr.mxu1 %v25191_v8 }
 0xb93   :  { %23991 = vmatprep.subr.bf16.mxu0 %v26150_v38 }
 0xb94   :  { %23993 = vmatpush3.bf16.msra.mxu0 %v26150_v38 }
 0xb95   :  { %23995 = vmatprep.subr.bf16.mxu0 %v26152_v58 }
 0xb98   :  { %22420 = vmatmul.mubr.f32.vlgmr.msra.gmra.mrb[20].mxu1 %v7360_v50  ;;  %23997 = vmatpush3.bf16.msra.mxu0 %v26152_v58 }
 0xb99   :  { %22423 = vmatpush3.msra.mxu1 %v7372_v9  ;;  %22424 = vmatprep.mubr.msk.f32.mxu1 %vm25193_vm3, %v25191_v8 }
 0xb9a   :  { %22427 = vmatprep.subr.mxu1 %v25191_v8 }
 0xba0   :  { %22425 = vmatmul.mubr.f32.vlgmr.msra.gmra.mrb[20].mxu1 %v7361_v51 }
 0xba1   :  { %22428 = vmatpush3.msra.mxu1 %v7295_v63  ;;  %22429 = vmatprep.mubr.msk.f32.mxu1 %vm25193_vm3, %v25191_v8 }
 0xba2   :  { %22432 = vmatprep.subr.mxu1 %v25191_v8 }
 0xba8   :  { %22430 = vmatmul.mubr.f32.vlgmr.msra.gmra.mrb[20].mxu1 %v7362_v39  ;;  %v8784_v39 = vsub.f32 %v8671_v11, %v8686_v29 }
 0xba9   :  { %22433 = vmatpush3.msra.mxu1 %v7373_v24  ;;  %22434 = vmatprep.mubr.msk.f32.mxu1 %vm25193_vm3, %v25191_v8  ;;  %v8791_v24 = vsub.f32 %v8672_v22, %v8689_v27 }
 0xbaa   :  { %22437 = vmatprep.subr.mxu1 %v25191_v8  ;;  %v8785_v40 = vand.u32 4294901760, %v8784_v39 }
 0xbab   :  { %v8792_v41 = vand.u32 4294901760, %v8791_v24 }
 0xbac   :  { %v8786_v31 = vsub.f32 %v8784_v39, %v8785_v40 }
 0xbad   :  { %v8793_v48 = vsub.f32 %v8791_v24, %v8792_v41 }
 0xbb0   :  { %22435 = vmatmul.mubr.f32.vlgmr.msra.gmra.mrb[20].mxu1 %v7360_v50 }
 0xbb1   :  { %22438 = vmatpush3.msra.mxu1 %v7295_v63  ;;  %22439 = vmatprep.mubr.msk.f32.mxu1 %vm25193_vm3, %v25191_v8  ;;  %v8778_v63 = vand.u32 4294901760, %v8777_v34 }
 0xbb2   :  { %22472 = vmatprep.subr.mxu1 %v25191_v8 }
 0xbb3   :  { %v8779_v9 = vsub.f32 %v8777_v34, %v8778_v63 }
 0xbb5   :  { %v8780_v32 = vand.u32 4294901760, %v8779_v9 }
 0xbb8   :  { %22440 = vmatmul.mubr.f32.vlgmr.msra.gmra.mrb[20].mxu1 %v7360_v50  ;;  %v8771_v50 = vand.u32 4294901760, %v8770_v2 }
 0xbb9   :  { %22473 = vmatpush3.msra.mxu1 %v8217_v53  ;;  %22474 = vmatprep.mubr.msk.f32.mxu1 %vm25193_vm3, %v25191_v8 }
 0xbba   :  { %22477 = vmatprep.subr.mxu1 %v25191_v8  ;;  %v8772_v51 = vsub.f32 %v8770_v2, %v8771_v50 }
 0xbbc   :  { %v8773_v25 = vand.u32 4294901760, %v8772_v51  ;;  %v20781_v51 = vld [vmem:[%s27315_s5] ss:$0 sm:$0xff] }
 0xbbd   :  { %v4974_v54 = vpop.f32.mrb[14].mxu1 }
 0xbbe   :  { %4979 = vrot.lane.b32.xlu1 %v4974_v54, %s27328_s11  ;;  %v22261_v13 = vpop.f32.mrb[15].mxu1  ;;  %v23998_v46 = vpack.c.bf16 %v8780_v32, %v8773_v25  ;;  %v8794_v54 = vand.u32 4294901760, %v8793_v48 }
 0xbc0   :  { %23999 = vmatprep.subr.bf16.mxu0 %v23998_v46 }
 0xbc9   :  { %v8207_v14 = vpop.xlane.xlu0 %8206 }
 0xbca   :  { %25108 = vrcp.f32 %v8207_v14  ;;  %v24006_v14 = vpack.c.bf16 %v8777_v34, %v8770_v2 }
 0xbcd   :  { %v3134_v19 = vpop.permute.xlu0 %3133 }
 0xbce   :  { %3137 = vst.msk [vmem:[#allocation2] sm:$0xff] %vm3136_vm6, %v3134_v19  ;;  %v24010_v19 = vpack.c.bf16 %v8791_v24, %v8784_v39 }
 0xbd4   :  { %v25109_v28 = vpop.eup %25108 }
 0xbd5   :  { %v8209_v56 = vmul.f32 %v25109_v28, %v26039_v52  ;;  %v24022_v28 = vpack.c.bf16 %v8778_v63, %v8771_v50 }
 0xbd7   :  { %v8214_v57 = vsel %vm1300_vm4, %v8209_v56, 0 }
 0xbd8   :  { %v8282_v59 = vand.u32 4294901760, %v8214_v57 }
 0xbda   :  { %v8283_v62 = vsub.f32 %v8214_v57, %v8282_v59 }
 0xbdc   :  { %v8284_v5 = vand.u32 4294901760, %v8283_v62 }
 0xbde   :  { %v8285_v12 = vsub.f32 %v8283_v62, %v8284_v5 }
 0xbe0   :  { %v8286_v15 = vand.u32 4294901760, %v8285_v12 }
 0xbe2   :  { %22475 = vmatmul.mubr.f32.vlgmr.msra.gmra.mrb[22].mxu1 %v8286_v15 }
 0xbe3   :  { %22478 = vmatpush3.msra.mxu1 %v8297_v16  ;;  %22479 = vmatprep.mubr.msk.f32.mxu1 %vm25193_vm3, %v25191_v8  ;;  %v9218_v16 = vld [vmem:[%s27316_s6] sm:$0xff] }
 0xbe4   :  { %22482 = vmatprep.subr.mxu1 %v25191_v8 }
 0xbea   :  { %22480 = vmatmul.mubr.f32.vlgmr.msra.gmra.mrb[22].mxu1 %v8282_v59 }
 0xbeb   :  { %22483 = vmatpush3.msra.mxu1 %v8294_v42  ;;  %22484 = vmatprep.mubr.msk.f32.mxu1 %vm25193_vm3, %v25191_v8  ;;  %v24026_v42 = vpack.c.bf16 %v8792_v41, %v8785_v40 }
 0xbec   :  { %22487 = vmatprep.subr.mxu1 %v25191_v8 }
 0xbf2   :  { %22485 = vmatmul.mubr.f32.vlgmr.msra.gmra.mrb[22].mxu1 %v8283_v62 }
 0xbf3   :  { %22488 = vmatpush3.msra.mxu1 %v8217_v53  ;;  %22489 = vmatprep.mubr.msk.f32.mxu1 %vm25193_vm3, %v25191_v8 }
 0xbf4   :  { %22492 = vmatprep.subr.mxu1 %v25191_v8 }
 0xbfa   :  { %22490 = vmatmul.mubr.f32.vlgmr.msra.gmra.mrb[22].mxu1 %v8284_v5 }
 0xbfb   :  { %22493 = vmatpush3.msra.mxu1 %v8295_v61  ;;  %22494 = vmatprep.mubr.msk.f32.mxu1 %vm25193_vm3, %v25191_v8 }
 0xbfc   :  { %22497 = vmatprep.subr.mxu1 %v25191_v8 }
 0xc02   :  { %22495 = vmatmul.mubr.f32.vlgmr.msra.gmra.mrb[22].mxu1 %v8282_v59 }
 0xc03   :  { %22498 = vmatpush3.msra.mxu1 %v8217_v53  ;;  %22499 = vmatprep.mubr.msk.f32.mxu1 %vm25193_vm3, %v25191_v8  ;;  %v8787_v53 = vand.u32 4294901760, %v8786_v31 }
 0xc04   :  { %v4057_v43 = vpop.permute.xlu1 %4056 }
 0xc05   :  { %4060 = vst.msk [vmem:[#allocation2] sm:$0xff] %vm4059_vm7, %v4057_v43  ;;  %v24002_v13 = vpack.c.bf16 %v8794_v54, %v8787_v53  ;;  %v9219_v43 = vld [vmem:[%s27316_s6 + $0x8] sm:$0xff] }
 0xc0a   :  { %22500 = vmatmul.mubr.f32.vlgmr.msra.gmra.mrb[22].mxu1 %v8282_v59 }
 0xc30   :  { %v4980_v20 = vpop.permute.xlu1 %4979 }
 0xc31   :  { %4983 = vst.msk [vmem:[#allocation2] sm:$0xff] %vm4982_vm8, %v4980_v20  ;;  %v9236_v20 = vand.u32 4294901760, %v9218_v16 }
 0xc33   :  { %v5896_v21 = vpop.f32.mrb[16].mxu1 }
 0xc34   :  { %5900 = vst.msk [vmem:[#allocation2 + $0x8] sm:$0xff] %vm1300_vm4, %v5896_v21  ;;  %v22321_v23 = vpop.f32.mrb[17].mxu1  ;;  %v9239_v21 = vand.u32 4294901760, %v9219_v43 }
 0xc35   :  { %v9220_v23 = vld [vmem:[%s27316_s6 + $0x10] sm:$0xff] }
 0xc38   :  { %v8667_v36 = vld [vmem:[#allocation2] sm:$0xff] }
 0xc39   :  { %v8674_v44 = vsel %vm762_vm2, %v8667_v36, 0  ;;  %v9221_v36 = vld [vmem:[%s27316_s6 + $0x18] sm:$0xff] }
 0xc3a   :  { %v26126_v45 = vand.u32 4294901760, %v8674_v44 }
 0xc3c   :  { %v26129_v33 = vsub.f32 %v8674_v44, %v26126_v45  ;;  %v26188_v44 = vpack.c.bf16 %v9239_v21, %v9236_v20 }
 0xc3e   :  { %v8750_v30 = vand.u32 4294901760, %v26129_v33  ;;  %24039 = vmatprep.subr.bf16.mxu1 %v26188_v44 }
 0xc3f   :  { %24041 = vmatpush3.bf16.msra.mxu1 %v26188_v44 }
 0xc40   :  { %v8751_v52 = vsub.f32 %v26129_v33, %v8750_v30 }
 0xc42   :  { %v8752_v60 = vand.u32 4294901760, %v8751_v52  ;;  %v9333_v52 = vsub.f32 %v9219_v43, %v9239_v21  ;;  %v9788_v21 = vld [vmem:[%s27318_s8 + $0x38] sm:$0xff] }
 0xc44   :  { %22510 = vmatprep.mubr.f32.mxu0 %v8752_v60 }
 0xc5f   :  { %v6814_v1 = vpop.f32.mrb[18].mxu1 }
 0xc60   :  { %6819 = vrot.lane.b32.xlu1 %v6814_v1, %s25206_s29  ;;  %v22381_v47 = vpop.f32.mrb[19].mxu1 }
 0xc61   :  { %v9334_v47 = vand.u32 4294901760, %v9333_v52 }
 0xc63   :  { %v9335_v10 = vsub.f32 %v9333_v52, %v9334_v47 }
 0xc65   :  { %v9336_v22 = vand.u32 4294901760, %v9335_v10 }
 0xc8b   :  { %v7736_v37 = vpop.f32.mrb[20].mxu1 }
 0xc8c   :  { %7741 = vrot.lane.b32.xlu1 %v7736_v37, %s27330_s30  ;;  %v22441_v55 = vpop.f32.mrb[21].mxu1 }
 0xcd2   :  { %v6820_v18 = vpop.permute.xlu1 %6819 }
 0xcd3   :  { %6822 = vst.msk [vmem:[#allocation2 + $0x8] sm:$0xff] %vm3136_vm6, %v6820_v18 }
 0xcdd   :  { %v8658_v7 = vpop.f32.mrb[22].mxu1 }
 0xcde   :  { %8663 = vrot.lane.b32.xlu1 %v8658_v7, %s27328_s11  ;;  %v22501_v49 = vpop.f32.mrb[23].mxu1 }
 0xcfe   :  { %v7742_v56 = vpop.permute.xlu1 %7741 }
 0xcff   :  { %7744 = vst.msk [vmem:[#allocation2 + $0x8] sm:$0xff] %vm4059_vm7, %v7742_v56 }
 0xd50   :  { %v8664_v57 = vpop.permute.xlu1 %8663 }
 0xd51   :  { %8666 = vst.msk [vmem:[#allocation2 + $0x8] sm:$0xff] %vm4982_vm8, %v8664_v57 }
 0xd58   :  { %v8668_v59 = vld [vmem:[#allocation2 + $0x8] sm:$0xff] }
 0xd59   :  { %v8677_v61 = vsel %vm762_vm2, %v8668_v59, 0 }
 0xd5a   :  { %v8758_v62 = vand.u32 4294901760, %v8677_v61 }
 0xd5c   :  { %v8759_v5 = vsub.f32 %v8677_v61, %v8758_v62  ;;  %v9783_v61 = vld [vmem:[%s27318_s8 + $0x10] sm:$0xff] }
 0xd5e   :  { %v8760_v6 = vand.u32 4294901760, %v8759_v5 }
 0xd60   :  { %v8761_v12 = vsub.f32 %v8759_v5, %v8760_v6 }
 0xd62   :  { %v8762_v15 = vand.u32 4294901760, %v8761_v12  ;;  %v9785_v12 = vld [vmem:[%s27318_s8 + $0x20] sm:$0xff] }
 0xd63   :  { %v9809_v43 = vand.u32 4294901760, %v9785_v12 }
 0xd64   :  { %22511 = vmatmul.mubr.f32.vlgmr.msra.gmra.mrb[14].mxu0 %v8762_v15  ;;  %v9786_v15 = vld [vmem:[%s27318_s8 + $0x28] sm:$0xff] }
 0xd65   :  { %24001 = vmatpush3.bf16.msra.mxu0 %v23998_v46  ;;  %22521 = vmatprep.mubr.f32.mxu0 %v26126_v45 }
 0xd66   :  { %24003 = vmatprep.subr.bf16.mxu0 %v24002_v13 }
 0xd69   :  { %24005 = vmatpush3.bf16.msra.mxu0 %v24002_v13 }
 0xd6a   :  { %24007 = vmatprep.subr.bf16.mxu0 %v24006_v14 }
 0xd6c   :  { %22522 = vmatmul.mubr.f32.vlgmr.msra.gmra.mrb[14].mxu0 %v8758_v62 }
 0xd6d   :  { %24009 = vmatpush3.bf16.msra.mxu0 %v24006_v14  ;;  %22532 = vmatprep.mubr.f32.mxu0 %v26129_v33  ;;  %v9245_v33 = vand.u32 4294901760, %v9221_v36 }
 0xd6e   :  { %24011 = vmatprep.subr.bf16.mxu0 %v24010_v19 }
 0xd6f   :  { %v9347_v3 = vsub.f32 %v9221_v36, %v9245_v33 }
 0xd71   :  { %24013 = vmatpush3.bf16.msra.mxu0 %v24010_v19  ;;  %v9348_v0 = vand.u32 4294901760, %v9347_v3 }
 0xd72   :  { %24015 = vmatprep.subr.bf16.mxu0 %v26150_v38 }
 0xd73   :  { %v9349_v18 = vsub.f32 %v9347_v3, %v9348_v0 }
 0xd74   :  { %22533 = vmatmul.mubr.f32.vlgmr.msra.gmra.mrb[14].mxu0 %v8759_v5  ;;  %v9803_v5 = vand.u32 4294901760, %v9783_v61 }
 0xd75   :  { %24017 = vmatpush3.bf16.msra.mxu0 %v26150_v38  ;;  %22543 = vmatprep.mubr.f32.mxu0 %v8750_v30  ;;  %v9326_v30 = vsub.f32 %v9218_v16, %v9236_v20  ;;  %v9787_v16 = vld [vmem:[%s27318_s8 + $0x30] sm:$0xff]  ;;  %v9812_v20 = vand.u32 4294901760, %v9786_v15 }
 0xd76   :  { %24019 = vmatprep.subr.bf16.mxu0 %v26152_v58  ;;  %v9815_v36 = vand.u32 4294901760, %v9787_v16 }
 0xd77   :  { %v9327_v1 = vand.u32 4294901760, %v9326_v30  ;;  %v24054_v34 = vpack.c.bf16 %v9333_v52, %v9326_v30 }
 0xd79   :  { %24021 = vmatpush3.bf16.msra.mxu0 %v26152_v58  ;;  %v9328_v37 = vsub.f32 %v9326_v30, %v9327_v1  ;;  %v24070_v49 = vpack.c.bf16 %v9334_v47, %v9327_v1 }
 0xd7a   :  { %24023 = vmatprep.subr.bf16.mxu0 %v24022_v28 }
 0xd7b   :  { %v9329_v11 = vand.u32 4294901760, %v9328_v37 }
 0xd7c   :  { %22544 = vmatmul.mubr.f32.vlgmr.msra.gmra.mrb[14].mxu0 %v8760_v6 }
 0xd7d   :  { %24025 = vmatpush3.bf16.msra.mxu0 %v24022_v28  ;;  %22554 = vmatprep.mubr.f32.mxu0 %v26126_v45  ;;  %v24046_v27 = vpack.c.bf16 %v9336_v22, %v9329_v11  ;;  %v9781_v28 = vld [vmem:[%s27318_s8] sm:$0xff] }
 0xd7e   :  { %24027 = vmatprep.subr.bf16.mxu0 %v24026_v42  ;;  %v9797_v56 = vand.u32 4294901760, %v9781_v28 }
 0xd80   :  { %v9891_v30 = vsub.f32 %v9781_v28, %v9797_v56 }
 0xd81   :  { %24029 = vmatpush3.bf16.msra.mxu0 %v24026_v42  ;;  %v9782_v42 = vld [vmem:[%s27318_s8 + $0x8] sm:$0xff] }
 0xd82   :  { %24031 = vmatprep.subr.bf16.mxu0 %v26150_v38  ;;  %v9800_v57 = vand.u32 4294901760, %v9782_v42 }
 0xd84   :  { %22555 = vmatmul.mubr.f32.vlgmr.msra.gmra.mrb[14].mxu0 %v8758_v62  ;;  %v26223_v59 = vpack.c.bf16 %v9800_v57, %v9797_v56  ;;  %v9898_v52 = vsub.f32 %v9782_v42, %v9800_v57 }
 0xd85   :  { %24033 = vmatpush3.bf16.msra.mxu0 %v26150_v38  ;;  %22565 = vmatprep.mubr.f32.mxu0 %v26126_v45  ;;  %v9242_v45 = vand.u32 4294901760, %v9220_v23 }
 0xd86   :  { %24035 = vmatprep.subr.bf16.mxu0 %v26152_v58  ;;  %v9899_v1 = vand.u32 4294901760, %v9898_v52 }
 0xd87   :  { %v26191_v60 = vpack.c.bf16 %v9245_v33, %v9242_v45  ;;  %v9340_v55 = vsub.f32 %v9220_v23, %v9242_v45  ;;  %v26247_v45 = vpack.c.bf16 %v9812_v20, %v9809_v43 }
 0xd88   :  { %v9900_v37 = vsub.f32 %v9898_v52, %v9899_v1 }
 0xd89   :  { %24037 = vmatpush3.bf16.msra.mxu0 %v26152_v58  ;;  %24043 = vmatprep.subr.bf16.mxu1 %v26191_v60  ;;  %v9341_v17 = vand.u32 4294901760, %v9340_v55  ;;  %v9350_v58 = vand.u32 4294901760, %v9349_v18  ;;  %v24058_v7 = vpack.c.bf16 %v9347_v3, %v9340_v55 }
 0xd8a   :  { %24045 = vmatpush3.bf16.msra.mxu1 %v26191_v60  ;;  %24087 = vmatprep.subr.bf16.mxu0 %v26223_v59  ;;  %v9901_v11 = vand.u32 4294901760, %v9900_v37 }
 0xd8b   :  { %v9342_v29 = vsub.f32 %v9340_v55, %v9341_v17  ;;  %24047 = vmatprep.subr.bf16.mxu1 %v24046_v27  ;;  %v24074_v50 = vpack.c.bf16 %v9348_v0, %v9341_v17  ;;  %v9905_v55 = vsub.f32 %v9783_v61, %v9803_v5  ;;  %v20782_v61 = vld [vmem:[%s27317_s7] ss:$0 sm:$0xff] }
 0xd8c   :  { %22566 = vmatmul.mubr.f32.vlgmr.msra.gmra.mrb[14].mxu0 %v8758_v62  ;;  %v9784_v62 = vld [vmem:[%s27318_s8 + $0x18] sm:$0xff] }
 0xd8d   :  { %v9343_v38 = vand.u32 4294901760, %v9342_v29  ;;  %v9806_v6 = vand.u32 4294901760, %v9784_v62  ;;  %24089 = vmatpush3.bf16.msra.mxu0 %v26223_v59  ;;  %v9906_v17 = vand.u32 4294901760, %v9905_v55 }
 0xd8f   :  { %v24050_v2 = vpack.c.bf16 %v9350_v58, %v9343_v38  ;;  %v26245_v23 = vpack.c.bf16 %v9806_v6, %v9803_v5  ;;  %v9912_v3 = vsub.f32 %v9784_v62, %v9806_v6  ;;  %v9907_v29 = vsub.f32 %v9905_v55, %v9906_v17 }
 0xd90   :  { %v9926_v38 = vsub.f32 %v9786_v15, %v9812_v20 }
 0xd91   :  { %24091 = vmatprep.subr.bf16.mxu0 %v26245_v23  ;;  %v9913_v0 = vand.u32 4294901760, %v9912_v3  ;;  %v9908_v58 = vand.u32 4294901760, %v9907_v29 }
 0xd92   :  { %24093 = vmatpush3.bf16.msra.mxu0 %v26245_v23 }
 0xd93   :  { %24095 = vmatprep.subr.bf16.mxu0 %v26247_v45  ;;  %v9914_v18 = vsub.f32 %v9912_v3, %v9913_v0  ;;  %v26264_v42 = vpack.c.bf16 %v9913_v0, %v9906_v17 }
 0xd96   :  { %24097 = vmatpush3.bf16.msra.mxu0 %v26247_v45 }
 0xe5f   :  { %v22567_v63 = vpop.f32.mrb[14].mxu0 }
 0xe60   :  { %v9208_v9 = vadd.f32 %v25623_v26, %v22567_v63  ;;  %v9197_v39 = vpop.f32.mrb[15].mxu0  ;;  %v9933_v63 = vsub.f32 %v9787_v16, %v9815_v36 }
 0xe61   :  { %v9207_v24 = vadd.f32 %v25625_v35, %v9197_v39 }
 0xe62   :  { %v26201_v25 = vadd.f32 %v20781_v51, %v9208_v9 }
 0xe63   :  { %v26203_v32 = vadd.f32 %v20781_v51, %v9207_v24  ;;  %v9934_v24 = vand.u32 4294901760, %v9933_v63 }
 0xe64   :  { %v9233_v40 = vsel %vm762_vm2, %v26201_v25, 0 }
 0xe65   :  { %v9314_v41 = vand.u32 4294901760, %v9233_v40  ;;  %v9230_v46 = vsel %vm762_vm2, %v26203_v32, 0 }
 0xe66   :  { %v9304_v31 = vand.u32 4294901760, %v9230_v46 }
 0xe67   :  { %v9315_v48 = vsub.f32 %v9233_v40, %v9314_v41 }
 0xe68   :  { %v9305_v53 = vsub.f32 %v9230_v46, %v9304_v31  ;;  %v9935_v46 = vsub.f32 %v9933_v63, %v9934_v24 }
 0xe69   :  { %v9316_v54 = vand.u32 4294901760, %v9315_v48 }
 0xe6a   :  { %v9306_v13 = vand.u32 4294901760, %v9305_v53 }
 0xe6b   :  { %v9317_v26 = vsub.f32 %v9315_v48, %v9316_v54 }
 0xe6c   :  { %v9307_v14 = vsub.f32 %v9305_v53, %v9306_v13 }
 0xe6d   :  { %v9318_v35 = vand.u32 4294901760, %v9317_v26  ;;  %v24118_v26 = vpack.c.bf16 %v9898_v52, %v9891_v30 }
 0xe6e   :  { %v9308_v19 = vand.u32 4294901760, %v9307_v14  ;;  %v24122_v14 = vpack.c.bf16 %v9912_v3, %v9905_v55 }
 0xe70   :  { %22576 = vmatprep.mubr.f32.mxu1 %v9308_v19 }
 0xe71   :  { %22577 = vmatmul.mubr.f32.vlgmr.msra.gmra.mrb[24].mxu1 %v9318_v35 }
 0xe72   :  { %24049 = vmatpush3.bf16.msra.mxu1 %v24046_v27  ;;  %22587 = vmatprep.mubr.f32.mxu1 %v9304_v31  ;;  %v9919_v27 = vsub.f32 %v9785_v12, %v9809_v43 }
 0xe73   :  { %24051 = vmatprep.subr.bf16.mxu1 %v24050_v2 }
 0xe74   :  { %v24126_v19 = vpack.c.bf16 %v9926_v38, %v9919_v27 }
 0xe76   :  { %24053 = vmatpush3.bf16.msra.mxu1 %v24050_v2  ;;  %v9915_v2 = vand.u32 4294901760, %v9914_v18 }
 0xe77   :  { %24055 = vmatprep.subr.bf16.mxu1 %v24054_v34 }
 0xe79   :  { %22588 = vmatmul.mubr.f32.vlgmr.msra.gmra.mrb[24].mxu1 %v9314_v41 }
 0xe7a   :  { %24057 = vmatpush3.bf16.msra.mxu1 %v24054_v34  ;;  %22598 = vmatprep.mubr.f32.mxu1 %v9305_v53  ;;  %v9920_v34 = vand.u32 4294901760, %v9919_v27  ;;  %v9936_v53 = vand.u32 4294901760, %v9935_v46 }
 0xe7b   :  { %24059 = vmatprep.subr.bf16.mxu1 %v24058_v7 }
 0xe7e   :  { %24061 = vmatpush3.bf16.msra.mxu1 %v24058_v7  ;;  %v9927_v7 = vand.u32 4294901760, %v9926_v38 }
 0xe7f   :  { %24063 = vmatprep.subr.bf16.mxu1 %v26188_v44 }
 0xe80   :  { %v9928_v9 = vsub.f32 %v9926_v38, %v9927_v7  ;;  %v26266_v56 = vpack.c.bf16 %v9927_v7, %v9920_v34 }
 0xe81   :  { %22599 = vmatmul.mubr.f32.vlgmr.msra.gmra.mrb[24].mxu1 %v9315_v48 }
 0xe82   :  { %24065 = vmatpush3.bf16.msra.mxu1 %v26188_v44  ;;  %22609 = vmatprep.mubr.f32.mxu1 %v9306_v13 }
 0xe83   :  { %24067 = vmatprep.subr.bf16.mxu1 %v26191_v60 }
 0xe86   :  { %24069 = vmatpush3.bf16.msra.mxu1 %v26191_v60 }
 0xe87   :  { %24071 = vmatprep.subr.bf16.mxu1 %v24070_v49 }
 0xe89   :  { %22610 = vmatmul.mubr.f32.vlgmr.msra.gmra.mrb[24].mxu1 %v9316_v54 }
 0xe8a   :  { %24073 = vmatpush3.bf16.msra.mxu1 %v24070_v49  ;;  %22620 = vmatprep.mubr.f32.mxu1 %v9304_v31  ;;  %v26260_v49 = vpack.c.bf16 %v9915_v2, %v9908_v58 }
 0xe8b   :  { %24075 = vmatprep.subr.bf16.mxu1 %v24074_v50 }
 0xe8e   :  { %24077 = vmatpush3.bf16.msra.mxu1 %v24074_v50  ;;  %v9921_v50 = vsub.f32 %v9919_v27, %v9920_v34 }
 0xe8f   :  { %24079 = vmatprep.subr.bf16.mxu1 %v26188_v44 }
 0xe90   :  { %v9922_v39 = vand.u32 4294901760, %v9921_v50 }
 0xe91   :  { %22621 = vmatmul.mubr.f32.vlgmr.msra.gmra.mrb[24].mxu1 %v9314_v41 }
 0xe92   :  { %24081 = vmatpush3.bf16.msra.mxu1 %v26188_v44  ;;  %22631 = vmatprep.mubr.f32.mxu1 %v9304_v31  ;;  %v9818_v44 = vand.u32 4294901760, %v9788_v21 }
 0xe93   :  { %24083 = vmatprep.subr.bf16.mxu1 %v26191_v60 }
 0xe94   :  { %v26252_v33 = vpack.c.bf16 %v9818_v44, %v9815_v36  ;;  %v9940_v51 = vsub.f32 %v9788_v21, %v9818_v44 }
 0xe96   :  { %24085 = vmatpush3.bf16.msra.mxu1 %v26191_v60  ;;  %v9892_v60 = vand.u32 4294901760, %v9891_v30  ;;  %24099 = vmatprep.subr.bf16.mxu0 %v26252_v33  ;;  %v9941_v40 = vand.u32 4294901760, %v9940_v51  ;;  %v24130_v35 = vpack.c.bf16 %v9940_v51, %v9933_v63 }
 0xe97   :  { %24101 = vmatpush3.bf16.msra.mxu0 %v26252_v33 }
 0xe98   :  { %v9893_v47 = vsub.f32 %v9891_v30, %v9892_v60  ;;  %v9942_v31 = vsub.f32 %v9940_v51, %v9941_v40  ;;  %v26262_v28 = vpack.c.bf16 %v9899_v1, %v9892_v60  ;;  %v26268_v57 = vpack.c.bf16 %v9941_v40, %v9934_v24 }
 0xe99   :  { %22632 = vmatmul.mubr.f32.vlgmr.msra.gmra.mrb[24].mxu1 %v9314_v41  ;;  %v9929_v41 = vand.u32 4294901760, %v9928_v9  ;;  %v20787_v9 = vld [vmem:[%s27313_s3 + $0x38] sm:$0xff] }
 0xe9a   :  { %v9894_v10 = vand.u32 4294901760, %v9893_v47  ;;  %v9943_v54 = vand.u32 4294901760, %v9942_v31 }
 0xe9b   :  { %v24110_v48 = vpack.c.bf16 %v9929_v41, %v9922_v39  ;;  %v10408_v41 = vand.u32 4294901760, %v20787_v9 }
 0xe9c   :  { %v26257_v22 = vpack.c.bf16 %v9901_v11, %v9894_v10  ;;  %v24114_v13 = vpack.c.bf16 %v9943_v54, %v9936_v53 }
 0xe9e   :  { %24103 = vmatprep.subr.bf16.mxu0 %v26257_v22 }
 0xf6c   :  { %v22633_v62 = vpop.f32.mrb[24].mxu1 }
 0xf6d   :  { %v24626_v5 = vadd.f32 %v22633_v62, %v20782_v61  ;;  %v9753_v6 = vpop.f32.mrb[25].mxu1 }
 0xf6e   :  { %v24627_v12 = vadd.f32 %v20782_v61, %v9753_v6 }
 0xf6f   :  { %v9766_v15 = vmul.f32 0.044715, %v24626_v5  ;;  %v9764_v37 = vmul.f32 0.5, %v24626_v5 }
 0xf70   :  { %v9765_v16 = vmul.f32 0.044715, %v24627_v12  ;;  %v9763_v3 = vmul.f32 0.5, %v24627_v12 }
 0xf71   :  { %v9768_v43 = vmul.f32 %v24626_v5, %v9766_v15 }
 0xf72   :  { %v9767_v20 = vmul.f32 %v24627_v12, %v9765_v16 }
 0xf73   :  { %v9770_v21 = vmul.f32 %v24626_v5, %v9768_v43 }
 0xf74   :  { %v9769_v36 = vmul.f32 %v24627_v12, %v9767_v20  ;;  %v20783_v20 = vld [vmem:[%s27319_s9] ss:$0 sm:$0xff] }
 0xf75   :  { %v9772_v44 = vadd.f32 %v24626_v5, %v9770_v21 }
 0xf76   :  { %v9771_v30 = vadd.f32 %v24627_v12, %v9769_v36 }
 0xf77   :  { %v9774_v52 = vmul.f32 0.7978846, %v9772_v44 }
 0xf78   :  { %v9773_v60 = vmul.f32 0.7978846, %v9771_v30 }
 0xf79   :  { %25110 = vtanh.f32 %v9774_v52 }
 0xf7a   :  { %25112 = vtanh.f32 %v9773_v60 }
 0xf83   :  { %v25111_v1 = vpop.eup %25110 }
 0xf84   :  { %v25113_v47 = vpop.eup %25112  ;;  %v9778_v55 = vadd.f32 1.0, %v25111_v1 }
 0xf85   :  { %v9777_v10 = vadd.f32 1.0, %v25113_v47 }
 0xf86   :  { %v9780_v11 = vmul.f32 %v9778_v55, %v9764_v37 }
 0xf87   :  { %v9779_v17 = vmul.f32 %v9777_v10, %v9763_v3 }
 0xf88   :  { %v9794_v0 = vsel %vm9789_vm9, %v9780_v11, 0 }
 0xf89   :  { %v9791_v29 = vsel %vm9789_vm9, %v9779_v17, 0  ;;  %v9879_v18 = vand.u32 4294901760, %v9794_v0 }
 0xf8a   :  { %v9869_v27 = vand.u32 4294901760, %v9791_v29 }
 0xf8b   :  { %v9880_v38 = vsub.f32 %v9794_v0, %v9879_v18 }
 0xf8c   :  { %v9870_v58 = vsub.f32 %v9791_v29, %v9869_v27 }
 0xf8d   :  { %v9881_v2 = vand.u32 4294901760, %v9880_v38 }
 0xf8e   :  { %v9871_v34 = vand.u32 4294901760, %v9870_v58 }
 0xf8f   :  { %v9882_v7 = vsub.f32 %v9880_v38, %v9881_v2 }
 0xf90   :  { %v9872_v50 = vsub.f32 %v9870_v58, %v9871_v34 }
 0xf91   :  { %v9883_v51 = vand.u32 4294901760, %v9882_v7 }
 0xf92   :  { %v9873_v63 = vand.u32 4294901760, %v9872_v50 }
 0xf94   :  { %22650 = vmatprep.mubr.f32.mxu0 %v9873_v63 }
 0xf95   :  { %22651 = vmatmul.mubr.f32.vlgmr.msra.gmra.mrb[16].mxu0 %v9883_v51 }
 0xf96   :  { %24105 = vmatpush3.bf16.msra.mxu0 %v26257_v22  ;;  %22669 = vmatprep.mubr.f32.mxu0 %v9869_v27 }
 0xf97   :  { %24107 = vmatprep.subr.bf16.mxu0 %v26260_v49 }
 0xf9a   :  { %24109 = vmatpush3.bf16.msra.mxu0 %v26260_v49 }
 0xf9b   :  { %24111 = vmatprep.subr.bf16.mxu0 %v24110_v48 }
 0xf9e   :  { %24113 = vmatpush3.bf16.msra.mxu0 %v24110_v48 }
 0xf9f   :  { %24115 = vmatprep.subr.bf16.mxu0 %v24114_v13 }
 0xfa2   :  { %24117 = vmatpush3.bf16.msra.mxu0 %v24114_v13 }
 0xfa3   :  { %24119 = vmatprep.subr.bf16.mxu0 %v24118_v26 }
 0xfa5   :  { %22670 = vmatmul.mubr.f32.vlgmr.msra.gmra.mrb[16].mxu0 %v9879_v18 }
 0xfa6   :  { %24121 = vmatpush3.bf16.msra.mxu0 %v24118_v26  ;;  %22688 = vmatprep.mubr.f32.mxu0 %v9870_v58  ;;  %v10510_v26 = vsub.f32 %v20787_v9, %v10408_v41 }
 0xfa7   :  { %24123 = vmatprep.subr.bf16.mxu0 %v24122_v14 }
 0xfaa   :  { %24125 = vmatpush3.bf16.msra.mxu0 %v24122_v14 }
 0xfab   :  { %24127 = vmatprep.subr.bf16.mxu0 %v24126_v19 }
 0xfae   :  { %24129 = vmatpush3.bf16.msra.mxu0 %v24126_v19 }
 0xfaf   :  { %24131 = vmatprep.subr.bf16.mxu0 %v24130_v35 }
 0xfb2   :  { %24133 = vmatpush3.bf16.msra.mxu0 %v24130_v35 }
 0xfb3   :  { %24135 = vmatprep.subr.bf16.mxu0 %v26223_v59 }
 0xfb5   :  { %22689 = vmatmul.mubr.f32.vlgmr.msra.gmra.mrb[16].mxu0 %v9880_v38 }
 0xfb6   :  { %24137 = vmatpush3.bf16.msra.mxu0 %v26223_v59  ;;  %22707 = vmatprep.mubr.f32.mxu0 %v9871_v34 }
 0xfb7   :  { %24139 = vmatprep.subr.bf16.mxu0 %v26245_v23 }
 0xfba   :  { %24141 = vmatpush3.bf16.msra.mxu0 %v26245_v23 }
 0xfbb   :  { %24143 = vmatprep.subr.bf16.mxu0 %v26247_v45 }
 0xfbe   :  { %24145 = vmatpush3.bf16.msra.mxu0 %v26247_v45 }
 0xfbf   :  { %24147 = vmatprep.subr.bf16.mxu0 %v26252_v33 }
 0xfc2   :  { %24149 = vmatpush3.bf16.msra.mxu0 %v26252_v33 }
 0xfc3   :  { %24151 = vmatprep.subr.bf16.mxu0 %v26262_v28 }
 0xfc5   :  { %22708 = vmatmul.mubr.f32.vlgmr.msra.gmra.mrb[16].mxu0 %v9881_v2 }
 0xfc6   :  { %24153 = vmatpush3.bf16.msra.mxu0 %v26262_v28  ;;  %22726 = vmatprep.mubr.f32.mxu0 %v9869_v27  ;;  %v10511_v28 = vand.u32 4294901760, %v10510_v26 }
 0xfc7   :  { %24155 = vmatprep.subr.bf16.mxu0 %v26264_v42 }
 0xfca   :  { %24157 = vmatpush3.bf16.msra.mxu0 %v26264_v42 }
 0xfcb   :  { %24159 = vmatprep.subr.bf16.mxu0 %v26266_v56 }
 0xfce   :  { %24161 = vmatpush3.bf16.msra.mxu0 %v26266_v56 }
 0xfcf   :  { %24163 = vmatprep.subr.bf16.mxu0 %v26268_v57 }
 0xfd2   :  { %24165 = vmatpush3.bf16.msra.mxu0 %v26268_v57  ;;  %v10512_v57 = vsub.f32 %v10510_v26, %v10511_v28 }
 0xfd3   :  { %24167 = vmatprep.subr.bf16.mxu0 %v26223_v59 }
 0xfd4   :  { %v10513_v62 = vand.u32 4294901760, %v10512_v57 }
 0xfd5   :  { %22727 = vmatmul.mubr.f32.vlgmr.msra.gmra.mrb[16].mxu0 %v9879_v18 }
 0xfd6   :  { %24169 = vmatpush3.bf16.msra.mxu0 %v26223_v59  ;;  %22745 = vmatprep.mubr.f32.mxu0 %v9869_v27  ;;  %v20784_v59 = vld [vmem:[%s27313_s3 + $0x20] sm:$0xff] }
 0xfd7   :  { %24171 = vmatprep.subr.bf16.mxu0 %v26245_v23  ;;  %v10399_v22 = vand.u32 4294901760, %v20784_v59 }
 0xfd9   :  { %v10489_v39 = vsub.f32 %v20784_v59, %v10399_v22 }
 0xfda   :  { %24173 = vmatpush3.bf16.msra.mxu0 %v26245_v23  ;;  %v20785_v23 = vld [vmem:[%s27313_s3 + $0x28] sm:$0xff] }
 0xfdb   :  { %24175 = vmatprep.subr.bf16.mxu0 %v26247_v45  ;;  %v10490_v46 = vand.u32 4294901760, %v10489_v39 }
 0xfdd   :  { %v10491_v53 = vsub.f32 %v10489_v39, %v10490_v46 }
 0xfde   :  { %24177 = vmatpush3.bf16.msra.mxu0 %v26247_v45  ;;  %v10402_v45 = vand.u32 4294901760, %v20785_v23 }
 0xfdf   :  { %24179 = vmatprep.subr.bf16.mxu0 %v26252_v33  ;;  %v10492_v14 = vand.u32 4294901760, %v10491_v53 }
 0xfe0   :  { %v26311_v49 = vpack.c.bf16 %v10402_v45, %v10399_v22  ;;  %v10496_v24 = vsub.f32 %v20785_v23, %v10402_v45 }
 0xfe2   :  { %24181 = vmatpush3.bf16.msra.mxu0 %v26252_v33  ;;  %v20786_v33 = vld [vmem:[%s27313_s3 + $0x30] sm:$0xff]  ;;  %24183 = vmatprep.subr.bf16.mxu1 %v26311_v49  ;;  %v10497_v31 = vand.u32 4294901760, %v10496_v24  ;;  %v24198_v6 = vpack.c.bf16 %v10496_v24, %v10489_v39 }
 0xfe3   :  { %22874 = vmatprep.subr.mxu0 %v25191_v8  ;;  %v10405_v40 = vand.u32 4294901760, %v20786_v33  ;;  %24185 = vmatpush3.bf16.msra.mxu1 %v26311_v49 }
 0xfe4   :  { %v10498_v54 = vsub.f32 %v10496_v24, %v10497_v31  ;;  %v24214_v15 = vpack.c.bf16 %v10497_v31, %v10490_v46 }
 0xfe5   :  { %22746 = vmatmul.mubr.f32.vlgmr.msra.gmra.mrb[16].mxu0 %v9879_v18  ;;  %v26321_v48 = vpack.c.bf16 %v10408_v41, %v10405_v40  ;;  %v10503_v13 = vsub.f32 %v20786_v33, %v10405_v40 }
 0xfe6   :  { %22876 = vmatprep.mubr.msk.f32.mxu0 %vm25193_vm3, %v25191_v8  ;;  %v10499_v19 = vand.u32 4294901760, %v10498_v54 }
 0xfe7   :  { %24187 = vmatprep.subr.bf16.mxu1 %v26321_v48  ;;  %v10504_v35 = vand.u32 4294901760, %v10503_v13  ;;  %v24202_v12 = vpack.c.bf16 %v10510_v26, %v10503_v13 }
 0xfe8   :  { %24189 = vmatpush3.bf16.msra.mxu1 %v26321_v48  ;;  %v24190_v42 = vpack.c.bf16 %v10499_v19, %v10492_v14 }
 0xfe9   :  { %v10505_v56 = vsub.f32 %v10503_v13, %v10504_v35  ;;  %v24218_v16 = vpack.c.bf16 %v10511_v28, %v10504_v35 }
 0xfea   :  { %24191 = vmatprep.subr.bf16.mxu1 %v24190_v42 }
 0xfeb   :  { %v10506_v61 = vand.u32 4294901760, %v10505_v56 }
 0xfed   :  { %v24194_v5 = vpack.c.bf16 %v10513_v62, %v10506_v61 }
0x10b8   :  { %v22747_v43 = vpop.f32.mrb[16].mxu0 }
0x10b9   :  { %v10377_v21 = vadd.f32 %v22747_v43, %v26201_v25  ;;  %v10366_v36 = vpop.f32.mrb[17].mxu0 }
0x10ba   :  { %v10376_v44 = vadd.f32 %v10366_v36, %v26203_v32 }
0x10bb   :  { %v26330_v30 = vadd.f32 %v20783_v20, %v10377_v21 }
0x10bc   :  { %v26332_v52 = vadd.f32 %v20783_v20, %v10376_v44 }
0x10bd   :  { %v10396_v60 = vsel %vm762_vm2, %v26330_v30, 0 }
0x10be   :  { %v10477_v1 = vand.u32 4294901760, %v10396_v60  ;;  %v10393_v47 = vsel %vm762_vm2, %v26332_v52, 0 }
0x10bf   :  { %v10467_v37 = vand.u32 4294901760, %v10393_v47 }
0x10c0   :  { %v10478_v55 = vsub.f32 %v10396_v60, %v10477_v1 }
0x10c1   :  { %v10468_v3 = vsub.f32 %v10393_v47, %v10467_v37 }
0x10c2   :  { %v10479_v10 = vand.u32 4294901760, %v10478_v55 }
0x10c3   :  { %v10469_v11 = vand.u32 4294901760, %v10468_v3 }
0x10c4   :  { %v10480_v25 = vsub.f32 %v10478_v55, %v10479_v10 }
0x10c5   :  { %v10470_v17 = vsub.f32 %v10468_v3, %v10469_v11 }
0x10c6   :  { %v10481_v32 = vand.u32 4294901760, %v10480_v25 }
0x10c7   :  { %v10471_v0 = vand.u32 4294901760, %v10470_v17 }
0x10c9   :  { %22756 = vmatprep.mubr.f32.mxu1 %v10471_v0 }
0x10ca   :  { %22757 = vmatmul.mubr.f32.vlgmr.msra.gmra.mrb[26].mxu1 %v10481_v32 }
0x10cb   :  { %24193 = vmatpush3.bf16.msra.mxu1 %v24190_v42  ;;  %22767 = vmatprep.mubr.f32.mxu1 %v10467_v37 }
0x10cc   :  { %24195 = vmatprep.subr.bf16.mxu1 %v24194_v5 }
0x10cf   :  { %24197 = vmatpush3.bf16.msra.mxu1 %v24194_v5 }
0x10d0   :  { %24199 = vmatprep.subr.bf16.mxu1 %v24198_v6 }
0x10d2   :  { %22768 = vmatmul.mubr.f32.vlgmr.msra.gmra.mrb[26].mxu1 %v10477_v1 }
0x10d3   :  { %24201 = vmatpush3.bf16.msra.mxu1 %v24198_v6  ;;  %22778 = vmatprep.mubr.f32.mxu1 %v10468_v3 }
0x10d4   :  { %24203 = vmatprep.subr.bf16.mxu1 %v24202_v12 }
0x10d7   :  { %24205 = vmatpush3.bf16.msra.mxu1 %v24202_v12 }
0x10d8   :  { %24207 = vmatprep.subr.bf16.mxu1 %v26311_v49 }
0x10da   :  { %22779 = vmatmul.mubr.f32.vlgmr.msra.gmra.mrb[26].mxu1 %v10478_v55 }
0x10db   :  { %24209 = vmatpush3.bf16.msra.mxu1 %v26311_v49  ;;  %22789 = vmatprep.mubr.f32.mxu1 %v10469_v11 }
0x10dc   :  { %24211 = vmatprep.subr.bf16.mxu1 %v26321_v48 }
0x10df   :  { %24213 = vmatpush3.bf16.msra.mxu1 %v26321_v48 }
0x10e0   :  { %24215 = vmatprep.subr.bf16.mxu1 %v24214_v15 }
0x10e2   :  { %22790 = vmatmul.mubr.f32.vlgmr.msra.gmra.mrb[26].mxu1 %v10479_v10 }
0x10e3   :  { %24217 = vmatpush3.bf16.msra.mxu1 %v24214_v15  ;;  %22800 = vmatprep.mubr.f32.mxu1 %v10467_v37 }
0x10e4   :  { %24219 = vmatprep.subr.bf16.mxu1 %v24218_v16 }
0x10e7   :  { %24221 = vmatpush3.bf16.msra.mxu1 %v24218_v16 }
0x10e8   :  { %24223 = vmatprep.subr.bf16.mxu1 %v26311_v49 }
0x10ea   :  { %22801 = vmatmul.mubr.f32.vlgmr.msra.gmra.mrb[26].mxu1 %v10477_v1 }
0x10eb   :  { %24225 = vmatpush3.bf16.msra.mxu1 %v26311_v49  ;;  %22811 = vmatprep.mubr.f32.mxu1 %v10467_v37 }
0x10ec   :  { %24227 = vmatprep.subr.bf16.mxu1 %v26321_v48 }
0x10ef   :  { %24229 = vmatpush3.bf16.msra.mxu1 %v26321_v48 }
0x10f0   :  { %22814 = vmatprep.subr.mxu1 %v25191_v8 }
0x10f2   :  { %22812 = vmatmul.mubr.f32.vlgmr.msra.gmra.mrb[26].mxu1 %v10477_v1 }
0x10f3   :  { %22816 = vmatprep.mubr.msk.f32.mxu1 %vm25193_vm3, %v25191_v8 }
0x11c5   :  { %v26349_v29 = vpop.f32.mrb[26].mxu1 }
0x11c6   :  { %v26351_v18 = vpop.f32.mrb[27].mxu1  ;;  %v14612_v0 = vsel %vm1300_vm4, %v26349_v29, 0 }
0x11c7   :  { %11843 = vrot.lane.b32.xlu1 %v26351_v18, %s25196_s19  ;;  %10927 = vrot.lane.b32.xlu0 %v26351_v18, %s25194_s2  ;;  %v10929_v27 = vsel %vm1300_vm4, %v26351_v18, 0 }
0x11c8   :  { %v26383_v38 = vand.u32 4294901760, %v10929_v27 }
0x11ca   :  { %v11000_v58 = vsub.f32 %v10929_v27, %v26383_v38  ;;  %v14682_v27 = vand.u32 4294901760, %v14612_v0 }
0x11cb   :  { %12765 = vrot.lane.b32.xlu1 %v26351_v18, %s25202_s25  ;;  %11845 = vrot.lane.b32.xlu0 %v26351_v18, %s25197_s20 }
0x11cc   :  { %v11001_v2 = vand.u32 4294901760, %v11000_v58 }
0x11ce   :  { %v11002_v51 = vsub.f32 %v11000_v58, %v11001_v2 }
0x11cf   :  { %13687 = vrot.lane.b32.xlu1 %v26351_v18, %s25203_s26  ;;  %12767 = vrot.lane.b32.xlu0 %v26351_v18, %s25200_s23 }
0x11d0   :  { %v11003_v9 = vand.u32 4294901760, %v11002_v51 }
0x11d3   :  { %14610 = vrot.lane.b32.xlu1 %v26349_v29, %s25194_s2  ;;  %13689 = vrot.lane.b32.xlu0 %v26351_v18, %s25201_s24  ;;  %s27339_s2 = smov 16  }
0x11d7   :  { %15528 = vrot.lane.b32.xlu1 %v26349_v29, %s25197_s20  ;;  %15526 = vrot.lane.b32.xlu0 %v26349_v29, %s25196_s19  ;;  %s27340_s19 = smov 24  }
0x11db   :  { %16450 = vrot.lane.b32.xlu1 %v26349_v29, %s25200_s23  ;;  %16448 = vrot.lane.b32.xlu0 %v26349_v29, %s25202_s25 }
0x11df   :  { %17372 = vrot.lane.b32.xlu1 %v26349_v29, %s25201_s24  ;;  %17370 = vrot.lane.b32.xlu0 %v26349_v29, %s25203_s26 }
0x1239   :  { %v11844_v34 = vpop.permute.xlu1 %11843  ;;  %v10928_v7 = vpop.permute.xlu0 %10927 }
0x123a   :  { %v11847_v50 = vsel %vm1300_vm4, %v11844_v34, 0  ;;  %v10931_v63 = vsel %vm1300_vm4, %v10928_v7, 0 }
0x123b   :  { %v26388_v59 = vand.u32 4294901760, %v11847_v50  ;;  %v10934_v23 = vand.u32 4294901760, %v10931_v63 }
0x123d   :  { %v11918_v22 = vsub.f32 %v11847_v50, %v26388_v59  ;;  %v11011_v45 = vsub.f32 %v10931_v63, %v10934_v23  ;;  %22815 = vmatpush3.xpose.msra.mxu1 %v10934_v23  ;;  %v11846_v49 = vpop.permute.xlu0 %11845  ;;  %v12766_v14 = vpop.permute.xlu1 %12765 }
0x123e   :  { %v11849_v33 = vsel %vm1300_vm4, %v11846_v49, 0  ;;  %22819 = vmatprep.subr.mxu1 %v25191_v8  ;;  %v12769_v35 = vsel %vm1300_vm4, %v12766_v14, 0 }
0x123f   :  { %v11919_v39 = vand.u32 4294901760, %v11918_v22  ;;  %v11012_v24 = vand.u32 4294901760, %v11011_v45  ;;  %v11852_v40 = vand.u32 4294901760, %v11849_v33  ;;  %v12839_v42 = vand.u32 4294901760, %v12769_v35 }
0x1240   :  { %22817 = vmatmul.mubr.f32.vlgmr.msra.gmra.mrb[28].mxu1 %v11003_v9 }
0x1241   :  { %v11920_v41 = vsub.f32 %v11918_v22, %v11919_v39  ;;  %v11013_v46 = vsub.f32 %v11011_v45, %v11012_v24  ;;  %v11929_v31 = vsub.f32 %v11849_v33, %v11852_v40  ;;  %22875 = vmatpush3.xpose.msra.mxu0 %v11852_v40  ;;  %22821 = vmatprep.mubr.msk.f32.mxu1 %vm25193_vm3, %v25191_v8  ;;  %v12768_v19 = vpop.permute.xlu0 %12767  ;;  %v13688_v43 = vpop.permute.xlu1 %13687 }
0x1242   :  { %22879 = vmatprep.subr.mxu0 %v25191_v8  ;;  %v12771_v28 = vsel %vm1300_vm4, %v12768_v19, 0  ;;  %v12840_v57 = vsub.f32 %v12769_v35, %v12839_v42  ;;  %v13691_v21 = vsel %vm1300_vm4, %v13688_v43, 0 }
0x1243   :  { %v11921_v48 = vand.u32 4294901760, %v11920_v41  ;;  %v11014_v53 = vand.u32 4294901760, %v11013_v46  ;;  %v11930_v54 = vand.u32 4294901760, %v11929_v31  ;;  %v12774_v56 = vand.u32 4294901760, %v12771_v28 }
0x1244   :  { %v12841_v62 = vand.u32 4294901760, %v12840_v57  ;;  %v13761_v44 = vand.u32 4294901760, %v13691_v21 }
0x1245   :  { %v11931_v13 = vsub.f32 %v11929_v31, %v11930_v54  ;;  %22877 = vmatmul.mubr.f32.vlgmr.msra.gmra.mrb[18].mxu0 %v11921_v48  ;;  %22820 = vmatpush3.xpose.msra.mxu1 %v11014_v53  ;;  %v12851_v61 = vsub.f32 %v12771_v28, %v12774_v56  ;;  %v13690_v20 = vpop.permute.xlu0 %13689  ;;  %v14611_v17 = vpop.permute.xlu1 %14610 }
0x1246   :  { %22824 = vmatprep.subr.mxu1 %v25191_v8  ;;  %22881 = vmatprep.mubr.msk.f32.mxu0 %vm25193_vm3, %v25191_v8  ;;  %v12842_v6 = vsub.f32 %v12840_v57, %v12841_v62  ;;  %v13693_v36 = vsel %vm1300_vm4, %v13690_v20, 0  ;;  %v13762_v1 = vsub.f32 %v13691_v21, %v13761_v44  ;;  %v14614_v32 = vsel %vm1300_vm4, %v14611_v17, 0 }
0x1247   :  { %v11932_v26 = vand.u32 4294901760, %v11931_v13  ;;  %v12852_v5 = vand.u32 4294901760, %v12851_v61  ;;  %v13696_v60 = vand.u32 4294901760, %v13693_v36 }
0x1248   :  { %22822 = vmatmul.mubr.f32.vlgmr.msra.gmra.mrb[28].mxu1 %v26383_v38  ;;  %v12843_v15 = vand.u32 4294901760, %v12842_v6  ;;  %v13763_v37 = vand.u32 4294901760, %v13762_v1 }
0x1249   :  { %22880 = vmatpush3.xpose.msra.mxu0 %v11932_v26  ;;  %22825 = vmatpush3.xpose.msra.mxu1 %v11011_v45  ;;  %v12853_v12 = vsub.f32 %v12851_v61, %v12852_v5  ;;  %v13773_v47 = vsub.f32 %v13693_v36, %v13696_v60 }
0x124a   :  { %22884 = vmatprep.subr.mxu0 %v25191_v8  ;;  %22826 = vmatprep.mubr.msk.f32.mxu1 %vm25193_vm3, %v25191_v8  ;;  %v13764_v3 = vsub.f32 %v13762_v1, %v13763_v37 }
0x124b   :  { %22829 = vmatprep.subr.mxu1 %v25191_v8  ;;  %v12854_v16 = vand.u32 4294901760, %v12853_v12  ;;  %v13774_v55 = vand.u32 4294901760, %v13773_v47 }
0x124c   :  { %v13765_v11 = vand.u32 4294901760, %v13764_v3 }
0x124d   :  { %22882 = vmatmul.mubr.f32.vlgmr.msra.gmra.mrb[18].mxu0 %v26388_v59  ;;  %v13775_v10 = vsub.f32 %v13773_v47, %v13774_v55 }
0x124e   :  { %22885 = vmatpush3.xpose.msra.mxu0 %v11929_v31  ;;  %22886 = vmatprep.mubr.msk.f32.mxu0 %vm25193_vm3, %v25191_v8 }
0x124f   :  { %22889 = vmatprep.subr.mxu0 %v25191_v8  ;;  %v13776_v25 = vand.u32 4294901760, %v13775_v10 }
0x1250   :  { %22827 = vmatmul.mubr.f32.vlgmr.msra.gmra.mrb[28].mxu1 %v11000_v58  ;;  %v14683_v58 = vsub.f32 %v14612_v0, %v14682_v27 }
0x1251   :  { %22830 = vmatpush3.xpose.msra.mxu1 %v10934_v23  ;;  %22831 = vmatprep.mubr.msk.f32.mxu1 %vm25193_vm3, %v25191_v8 }
0x1252   :  { %22834 = vmatprep.subr.mxu1 %v25191_v8  ;;  %v14684_v34 = vand.u32 4294901760, %v14683_v58 }
0x1254   :  { %v14685_v50 = vsub.f32 %v14683_v58, %v14684_v34 }
0x1255   :  { %22887 = vmatmul.mubr.f32.vlgmr.msra.gmra.mrb[18].mxu0 %v11918_v22  ;;  %v15529_v22 = vpop.permute.xlu1 %15528 }
0x1256   :  { %22890 = vmatpush3.xpose.msra.mxu0 %v11852_v40  ;;  %22891 = vmatprep.mubr.msk.f32.mxu0 %vm25193_vm3, %v25191_v8  ;;  %v14686_v51 = vand.u32 4294901760, %v14685_v50  ;;  %v15532_v49 = vsel %vm1300_vm4, %v15529_v22, 0 }
0x1257   :  { %22894 = vmatprep.subr.mxu0 %v25191_v8  ;;  %v15535_v9 = vand.u32 4294901760, %v15532_v49 }
0x1258   :  { %22832 = vmatmul.mubr.f32.vlgmr.msra.gmra.mrb[28].mxu1 %v11001_v2 }
0x1259   :  { %22835 = vmatpush3.xpose.msra.mxu1 %v11012_v24  ;;  %22836 = vmatprep.mubr.msk.f32.mxu1 %vm25193_vm3, %v25191_v8  ;;  %v15612_v24 = vsub.f32 %v15532_v49, %v15535_v9  ;;  %v16451_v13 = vpop.permute.xlu1 %16450 }
0x125a   :  { %22839 = vmatprep.subr.mxu1 %v25191_v8  ;;  %v16454_v14 = vsel %vm1300_vm4, %v16451_v13, 0 }
0x125b   :  { %v15613_v41 = vand.u32 4294901760, %v15612_v24  ;;  %v16457_v35 = vand.u32 4294901760, %v16454_v14 }
0x125d   :  { %22892 = vmatmul.mubr.f32.vlgmr.msra.gmra.mrb[18].mxu0 %v11919_v39  ;;  %v15614_v31 = vsub.f32 %v15612_v24, %v15613_v41 }
0x125e   :  { %22895 = vmatpush3.xpose.msra.mxu0 %v11930_v54  ;;  %22896 = vmatprep.mubr.msk.f32.mxu0 %vm25193_vm3, %v25191_v8 }
0x125f   :  { %22899 = vmatprep.subr.mxu0 %v25191_v8  ;;  %v15615_v53 = vand.u32 4294901760, %v15614_v31 }
0x1260   :  { %22837 = vmatmul.mubr.f32.vlgmr.msra.gmra.mrb[28].mxu1 %v26383_v38 }
0x1261   :  { %22840 = vmatpush3.xpose.msra.mxu1 %v10934_v23  ;;  %22841 = vmatprep.mubr.msk.f32.mxu1 %vm25193_vm3, %v25191_v8  ;;  %v15527_v23 = vpop.permute.xlu0 %15526 }
0x1262   :  { %22844 = vmatprep.subr.mxu1 %v25191_v8  ;;  %v15530_v45 = vsel %vm1300_vm4, %v15527_v23, 0 }
0x1263   :  { %v15600_v33 = vand.u32 4294901760, %v15530_v45 }
0x1265   :  { %22897 = vmatmul.mubr.f32.vlgmr.msra.gmra.mrb[18].mxu0 %v26388_v59  ;;  %v15601_v39 = vsub.f32 %v15530_v45, %v15600_v33  ;;  %v16449_v54 = vpop.permute.xlu0 %16448 }
0x1266   :  { %22900 = vmatpush3.xpose.msra.mxu0 %v11852_v40  ;;  %22901 = vmatprep.mubr.msk.f32.mxu0 %vm25193_vm3, %v25191_v8  ;;  %v16452_v26 = vsel %vm1300_vm4, %v16449_v54, 0 }
0x1267   :  { %22934 = vmatprep.subr.mxu0 %v25191_v8  ;;  %v15602_v40 = vand.u32 4294901760, %v15601_v39  ;;  %v16522_v19 = vand.u32 4294901760, %v16452_v26 }
0x1268   :  { %22842 = vmatmul.mubr.f32.vlgmr.msra.gmra.mrb[28].mxu1 %v26383_v38  ;;  %v14617_v38 = vand.u32 4294901760, %v14614_v32 }
0x1269   :  { %22846 = vmatprep.mubr.msk.f32.mxu1 %vm25193_vm3, %v25191_v8  ;;  %v15603_v46 = vsub.f32 %v15601_v39, %v15602_v40  ;;  %v16523_v28 = vsub.f32 %v16452_v26, %v16522_v19  ;;  %v17371_v12 = vpop.permute.xlu0 %17370 }
0x126a   :  { %v14694_v2 = vsub.f32 %v14614_v32, %v14617_v38 }
0x126b   :  { %v15604_v48 = vand.u32 4294901760, %v15603_v46 }
0x126c   :  { %v14695_v7 = vand.u32 4294901760, %v14694_v2 }
0x126d   :  { %22902 = vmatmul.mubr.f32.vlgmr.msra.gmra.mrb[18].mxu0 %v26388_v59 }
0x126e   :  { %22935 = vmatpush3.xpose.msra.mxu0 %v12774_v56  ;;  %22936 = vmatprep.mubr.msk.f32.mxu0 %vm25193_vm3, %v25191_v8  ;;  %v14696_v63 = vsub.f32 %v14694_v2, %v14695_v7 }
0x126f   :  { %22939 = vmatprep.subr.mxu0 %v25191_v8 }
0x1270   :  { %v14697_v59 = vand.u32 4294901760, %v14696_v63 }
0x1271   :  { %22937 = vmatmul.mubr.f32.vlgmr.msra.gmra.mrb[20].mxu0 %v12843_v15  ;;  %v17373_v15 = vpop.permute.xlu1 %17372 }
0x1272   :  { %22940 = vmatpush3.xpose.msra.mxu0 %v12854_v16  ;;  %22941 = vmatprep.mubr.msk.f32.mxu0 %vm25193_vm3, %v25191_v8  ;;  %v17374_v16 = vsel %vm1300_vm4, %v17371_v12, 0  ;;  %v17376_v43 = vsel %vm1300_vm4, %v17373_v15, 0 }
0x1273   :  { %22944 = vmatprep.subr.mxu0 %v25191_v8  ;;  %v17444_v20 = vand.u32 4294901760, %v17374_v16  ;;  %v17379_v36 = vand.u32 4294901760, %v17376_v43 }
0x1279   :  { %22942 = vmatmul.mubr.f32.vlgmr.msra.gmra.mrb[20].mxu0 %v12839_v42 }
0x127a   :  { %22945 = vmatpush3.xpose.msra.mxu0 %v12851_v61  ;;  %22946 = vmatprep.mubr.msk.f32.mxu0 %vm25193_vm3, %v25191_v8 }
0x127b   :  { %22949 = vmatprep.subr.mxu0 %v25191_v8 }
0x1281   :  { %22947 = vmatmul.mubr.f32.vlgmr.msra.gmra.mrb[20].mxu0 %v12840_v57 }
0x1282   :  { %22950 = vmatpush3.xpose.msra.mxu0 %v12774_v56  ;;  %22951 = vmatprep.mubr.msk.f32.mxu0 %vm25193_vm3, %v25191_v8 }
0x1283   :  { %22954 = vmatprep.subr.mxu0 %v25191_v8 }
0x1289   :  { %22952 = vmatmul.mubr.f32.vlgmr.msra.gmra.mrb[20].mxu0 %v12841_v62 }
0x128a   :  { %22955 = vmatpush3.xpose.msra.mxu0 %v12852_v5  ;;  %22956 = vmatprep.mubr.msk.f32.mxu0 %vm25193_vm3, %v25191_v8 }
0x128b   :  { %22959 = vmatprep.subr.mxu0 %v25191_v8 }
0x1291   :  { %22957 = vmatmul.mubr.f32.vlgmr.msra.gmra.mrb[20].mxu0 %v12839_v42 }
0x1292   :  { %22960 = vmatpush3.xpose.msra.mxu0 %v12774_v56  ;;  %22961 = vmatprep.mubr.msk.f32.mxu0 %vm25193_vm3, %v25191_v8  ;;  %v16524_v56 = vand.u32 4294901760, %v16523_v28 }
0x1293   :  { %22994 = vmatprep.subr.mxu0 %v25191_v8 }
0x1294   :  { %v16525_v61 = vsub.f32 %v16523_v28, %v16524_v56 }
0x1296   :  { %v16526_v5 = vand.u32 4294901760, %v16525_v61 }
0x1299   :  { %22962 = vmatmul.mubr.f32.vlgmr.msra.gmra.mrb[20].mxu0 %v12839_v42  ;;  %v16534_v42 = vsub.f32 %v16454_v14, %v16457_v35 }
0x129a   :  { %22995 = vmatpush3.xpose.msra.mxu0 %v13696_v60  ;;  %22996 = vmatprep.mubr.msk.f32.mxu0 %vm25193_vm3, %v25191_v8 }
0x129b   :  { %22999 = vmatprep.subr.mxu0 %v25191_v8  ;;  %v16535_v57 = vand.u32 4294901760, %v16534_v42 }
0x129d   :  { %22997 = vmatmul.mubr.f32.vlgmr.msra.gmra.mrb[22].mxu0 %v13765_v11  ;;  %v16536_v62 = vsub.f32 %v16534_v42, %v16535_v57 }
0x129e   :  { %23000 = vmatpush3.xpose.msra.mxu0 %v13776_v25  ;;  %23001 = vmatprep.mubr.msk.f32.mxu0 %vm25193_vm3, %v25191_v8 }
0x129f   :  { %23004 = vmatprep.subr.mxu0 %v25191_v8  ;;  %v16537_v6 = vand.u32 4294901760, %v16536_v62 }
0x12a5   :  { %23002 = vmatmul.mubr.f32.vlgmr.msra.gmra.mrb[22].mxu0 %v13761_v44 }
0x12a6   :  { %23005 = vmatpush3.xpose.msra.mxu0 %v13773_v47  ;;  %23006 = vmatprep.mubr.msk.f32.mxu0 %vm25193_vm3, %v25191_v8  ;;  %v17445_v47 = vsub.f32 %v17374_v16, %v17444_v20 }
0x12a7   :  { %23009 = vmatprep.subr.mxu0 %v25191_v8 }
0x12a8   :  { %v17446_v11 = vand.u32 4294901760, %v17445_v47 }
0x12aa   :  { %v17447_v0 = vsub.f32 %v17445_v47, %v17446_v11 }
0x12ad   :  { %23007 = vmatmul.mubr.f32.vlgmr.msra.gmra.mrb[22].mxu0 %v13762_v1 }
0x12ae   :  { %23010 = vmatpush3.xpose.msra.mxu0 %v13696_v60  ;;  %23011 = vmatprep.mubr.msk.f32.mxu0 %vm25193_vm3, %v25191_v8 }
0x12af   :  { %23014 = vmatprep.subr.mxu0 %v25191_v8 }
0x12b5   :  { %23012 = vmatmul.mubr.f32.vlgmr.msra.gmra.mrb[22].mxu0 %v13763_v37  ;;  %v17456_v37 = vsub.f32 %v17376_v43, %v17379_v36 }
0x12b6   :  { %23015 = vmatpush3.xpose.msra.mxu0 %v13774_v55  ;;  %23016 = vmatprep.mubr.msk.f32.mxu0 %vm25193_vm3, %v25191_v8 }
0x12b7   :  { %23019 = vmatprep.subr.mxu0 %v25191_v8  ;;  %v17457_v17 = vand.u32 4294901760, %v17456_v37 }
0x12b9   :  { %v17458_v32 = vsub.f32 %v17456_v37, %v17457_v17 }
0x12bd   :  { %23017 = vmatmul.mubr.f32.vlgmr.msra.gmra.mrb[22].mxu0 %v13761_v44 }
0x12be   :  { %23020 = vmatpush3.xpose.msra.mxu0 %v13696_v60  ;;  %23021 = vmatprep.mubr.msk.f32.mxu0 %vm25193_vm3, %v25191_v8 }
0x12bf   :  { %23054 = vmatprep.subr.mxu0 %v25191_v8 }
0x12c5   :  { %23022 = vmatmul.mubr.f32.vlgmr.msra.gmra.mrb[22].mxu0 %v13761_v44 }
0x12c6   :  { %23055 = vmatpush3.xpose.msra.mxu0 %v14617_v38  ;;  %23056 = vmatprep.mubr.msk.f32.mxu0 %vm25193_vm3, %v25191_v8 }
0x12c7   :  { %23059 = vmatprep.subr.mxu0 %v25191_v8 }
0x12c9   :  { %23057 = vmatmul.mubr.f32.vlgmr.msra.gmra.mrb[24].mxu0 %v14686_v51 }
0x12ca   :  { %23060 = vmatpush3.xpose.msra.mxu0 %v14697_v59  ;;  %23061 = vmatprep.mubr.msk.f32.mxu0 %vm25193_vm3, %v25191_v8 }
0x12cb   :  { %23064 = vmatprep.subr.mxu0 %v25191_v8 }
0x12d1   :  { %23062 = vmatmul.mubr.f32.vlgmr.msra.gmra.mrb[24].mxu0 %v14682_v27 }
0x12d2   :  { %23065 = vmatpush3.xpose.msra.mxu0 %v14694_v2  ;;  %23066 = vmatprep.mubr.msk.f32.mxu0 %vm25193_vm3, %v25191_v8 }
0x12d3   :  { %23069 = vmatprep.subr.mxu0 %v25191_v8 }
0x12d9   :  { %23067 = vmatmul.mubr.f32.vlgmr.msra.gmra.mrb[24].mxu0 %v14683_v58 }
0x12da   :  { %23070 = vmatpush3.xpose.msra.mxu0 %v14617_v38  ;;  %23071 = vmatprep.mubr.msk.f32.mxu0 %vm25193_vm3, %v25191_v8 }
0x12db   :  { %23074 = vmatprep.subr.mxu0 %v25191_v8 }
0x12e1   :  { %23072 = vmatmul.mubr.f32.vlgmr.msra.gmra.mrb[24].mxu0 %v14684_v34 }
0x12e2   :  { %23075 = vmatpush3.xpose.msra.mxu0 %v14695_v7  ;;  %23076 = vmatprep.mubr.msk.f32.mxu0 %vm25193_vm3, %v25191_v8 }
0x12e3   :  { %23079 = vmatprep.subr.mxu0 %v25191_v8 }
0x12e9   :  { %23077 = vmatmul.mubr.f32.vlgmr.msra.gmra.mrb[24].mxu0 %v14682_v27 }
0x12ea   :  { %23080 = vmatpush3.xpose.msra.mxu0 %v14617_v38  ;;  %23081 = vmatprep.mubr.msk.f32.mxu0 %vm25193_vm3, %v25191_v8  ;;  %v17459_v38 = vand.u32 4294901760, %v17458_v32 }
0x12eb   :  { %23114 = vmatprep.subr.mxu0 %v25191_v8 }
0x12f1   :  { %23082 = vmatmul.mubr.f32.vlgmr.msra.gmra.mrb[24].mxu0 %v14682_v27  ;;  %v17448_v27 = vand.u32 4294901760, %v17447_v0 }
0x12f2   :  { %23115 = vmatpush3.xpose.msra.mxu0 %v15535_v9  ;;  %23116 = vmatprep.mubr.msk.f32.mxu0 %vm25193_vm3, %v25191_v8 }
0x12f3   :  { %23119 = vmatprep.subr.mxu0 %v25191_v8 }
0x12f5   :  { %23117 = vmatmul.mubr.f32.vlgmr.msra.gmra.mrb[26].mxu0 %v15604_v48 }
0x12f6   :  { %23120 = vmatpush3.xpose.msra.mxu0 %v15615_v53  ;;  %23121 = vmatprep.mubr.msk.f32.mxu0 %vm25193_vm3, %v25191_v8 }
0x12f7   :  { %23124 = vmatprep.subr.mxu0 %v25191_v8 }
0x12fd   :  { %23122 = vmatmul.mubr.f32.vlgmr.msra.gmra.mrb[26].mxu0 %v15600_v33 }
0x12fe   :  { %23125 = vmatpush3.xpose.msra.mxu0 %v15612_v24  ;;  %23126 = vmatprep.mubr.msk.f32.mxu0 %vm25193_vm3, %v25191_v8 }
0x12ff   :  { %23129 = vmatprep.subr.mxu0 %v25191_v8 }
0x1305   :  { %23127 = vmatmul.mubr.f32.vlgmr.msra.gmra.mrb[26].mxu0 %v15601_v39 }
0x1306   :  { %23130 = vmatpush3.xpose.msra.mxu0 %v15535_v9  ;;  %23131 = vmatprep.mubr.msk.f32.mxu0 %vm25193_vm3, %v25191_v8 }
0x1307   :  { %23134 = vmatprep.subr.mxu0 %v25191_v8 }
0x130d   :  { %23132 = vmatmul.mubr.f32.vlgmr.msra.gmra.mrb[26].mxu0 %v15602_v40 }
0x130e   :  { %23135 = vmatpush3.xpose.msra.mxu0 %v15613_v41  ;;  %23136 = vmatprep.mubr.msk.f32.mxu0 %vm25193_vm3, %v25191_v8 }
0x130f   :  { %23139 = vmatprep.subr.mxu0 %v25191_v8 }
0x1315   :  { %23137 = vmatmul.mubr.f32.vlgmr.msra.gmra.mrb[26].mxu0 %v15600_v33 }
0x1316   :  { %23140 = vmatpush3.xpose.msra.mxu0 %v15535_v9  ;;  %23141 = vmatprep.mubr.msk.f32.mxu0 %vm25193_vm3, %v25191_v8 }
0x1317   :  { %23174 = vmatprep.subr.mxu0 %v25191_v8 }
0x131d   :  { %23142 = vmatmul.mubr.f32.vlgmr.msra.gmra.mrb[26].mxu0 %v15600_v33 }
0x131e   :  { %23175 = vmatpush3.xpose.msra.mxu0 %v16457_v35  ;;  %23176 = vmatprep.mubr.msk.f32.mxu0 %vm25193_vm3, %v25191_v8 }
0x131f   :  { %23179 = vmatprep.subr.mxu0 %v25191_v8 }
0x1321   :  { %23177 = vmatmul.mubr.f32.vlgmr.msra.gmra.mrb[28].mxu0 %v16526_v5 }
0x1322   :  { %23180 = vmatpush3.xpose.msra.mxu0 %v16537_v6  ;;  %23181 = vmatprep.mubr.msk.f32.mxu0 %vm25193_vm3, %v25191_v8 }
0x1323   :  { %23184 = vmatprep.subr.mxu0 %v25191_v8 }
0x1329   :  { %23182 = vmatmul.mubr.f32.vlgmr.msra.gmra.mrb[28].mxu0 %v16522_v19 }
0x132a   :  { %23185 = vmatpush3.xpose.msra.mxu0 %v16534_v42  ;;  %23186 = vmatprep.mubr.msk.f32.mxu0 %vm25193_vm3, %v25191_v8 }
0x132b   :  { %23189 = vmatprep.subr.mxu0 %v25191_v8 }
0x1331   :  { %23187 = vmatmul.mubr.f32.vlgmr.msra.gmra.mrb[28].mxu0 %v16523_v28 }
0x1332   :  { %23190 = vmatpush3.xpose.msra.mxu0 %v16457_v35  ;;  %23191 = vmatprep.mubr.msk.f32.mxu0 %vm25193_vm3, %v25191_v8 }
0x1333   :  { %23194 = vmatprep.subr.mxu0 %v25191_v8 }
0x1339   :  { %23192 = vmatmul.mubr.f32.vlgmr.msra.gmra.mrb[28].mxu0 %v16524_v56 }
0x133a   :  { %23195 = vmatpush3.xpose.msra.mxu0 %v16535_v57  ;;  %23196 = vmatprep.mubr.msk.f32.mxu0 %vm25193_vm3, %v25191_v8 }
0x133b   :  { %v11375_v21 = vpop.f32.mrb[28].mxu1  ;;  %23199 = vmatprep.subr.mxu0 %v25191_v8 }
0x133c   :  { %v24628_v44 = vadd.f32 %v11375_v21, %v25673_v4  ;;  %v22843_v60 = vpop.f32.mrb[29].mxu1 }
0x133e   :  { %v11379_v1 = vsel %vm1300_vm4, %v24628_v44, -inf }
0x133f   :  { %11380 = vmax.xlane.f32.xlu0 %v11379_v1 }
0x1340   :  { %v12293_v55 = vpop.f32.mrb[18].mxu0 }
0x1341   :  { %v24629_v3 = vadd.f32 %v12293_v55, %v25673_v4  ;;  %v22903_v10 = vpop.f32.mrb[19].mxu0  ;;  %23197 = vmatmul.mubr.f32.vlgmr.msra.gmra.mrb[28].mxu0 %v16522_v19 }
0x1342   :  { %23200 = vmatpush3.xpose.msra.mxu0 %v16457_v35  ;;  %23201 = vmatprep.mubr.msk.f32.mxu0 %vm25193_vm3, %v25191_v8 }
0x1343   :  { %v12297_v25 = vsel %vm1300_vm4, %v24629_v3, -inf  ;;  %23234 = vmatprep.subr.mxu0 %v25191_v8 }
0x1344   :  { %12298 = vmax.xlane.f32.xlu1 %v12297_v25 }
0x1349   :  { %23202 = vmatmul.mubr.f32.vlgmr.msra.gmra.mrb[28].mxu0 %v16522_v19 }
0x134a   :  { %23235 = vmatpush3.xpose.msra.mxu0 %v17379_v36  ;;  %23236 = vmatprep.mubr.msk.f32.mxu0 %vm25193_vm3, %v25191_v8 }
0x134b   :  { %23239 = vmatprep.subr.mxu0 %v25191_v8 }
0x134d   :  { %23237 = vmatmul.mubr.f32.vlgmr.msra.gmra.mrb[30].mxu0 %v17448_v27 }
0x134e   :  { %23240 = vmatpush3.xpose.msra.mxu0 %v17459_v38  ;;  %23241 = vmatprep.mubr.msk.f32.mxu0 %vm25193_vm3, %v25191_v8 }
0x134f   :  { %23244 = vmatprep.subr.mxu0 %v25191_v8 }
0x1355   :  { %11390 = vrot.lane.b32.xlu1 %v26351_v18, %s25198_s21  ;;  %23242 = vmatmul.mubr.f32.vlgmr.msra.gmra.mrb[30].mxu0 %v17444_v20 }
0x1356   :  { %23245 = vmatpush3.xpose.msra.mxu0 %v17456_v37  ;;  %23246 = vmatprep.mubr.msk.f32.mxu0 %vm25193_vm3, %v25191_v8 }
0x1357   :  { %23249 = vmatprep.subr.mxu0 %v25191_v8 }
0x135d   :  { %23247 = vmatmul.mubr.f32.vlgmr.msra.gmra.mrb[30].mxu0 %v17445_v47 }
0x135e   :  { %23250 = vmatpush3.xpose.msra.mxu0 %v17379_v36  ;;  %23251 = vmatprep.mubr.msk.f32.mxu0 %vm25193_vm3, %v25191_v8 }
0x135f   :  { %23254 = vmatprep.subr.mxu0 %v25191_v8 }
0x1365   :  { %23252 = vmatmul.mubr.f32.vlgmr.msra.gmra.mrb[30].mxu0 %v17446_v11 }
0x1366   :  { %23255 = vmatpush3.xpose.msra.mxu0 %v17457_v17  ;;  %23256 = vmatprep.mubr.msk.f32.mxu0 %vm25193_vm3, %v25191_v8 }
0x1367   :  { %23259 = vmatprep.subr.mxu0 %v25191_v8 }
0x136c   :  { %v13215_v58 = vpop.f32.mrb[20].mxu0 }
0x136d   :  { %v22963_v2 = vpop.f32.mrb[21].mxu0  ;;  %23257 = vmatmul.mubr.f32.vlgmr.msra.gmra.mrb[30].mxu0 %v17444_v20  ;;  %v24630_v24 = vadd.f32 %v13215_v58, %v25673_v4 }
0x136e   :  { %23260 = vmatpush3.xpose.msra.mxu0 %v17379_v36  ;;  %23261 = vmatprep.mubr.msk.f32.mxu0 %vm25193_vm3, %v25191_v8 }
0x136f   :  { %v13219_v46 = vsel %vm1300_vm4, %v24630_v24, -inf }
0x1375   :  { %23262 = vmatmul.mubr.f32.vlgmr.msra.gmra.mrb[30].mxu0 %v17444_v20 }
0x1398   :  { %v14137_v34 = vpop.f32.mrb[22].mxu0 }
0x1399   :  { %v23023_v7 = vpop.f32.mrb[23].mxu0  ;;  %v24631_v41 = vadd.f32 %v14137_v34, %v25673_v4 }
0x139b   :  { %v14141_v31 = vsel %vm1300_vm4, %v24631_v41, -inf }
0x13c4   :  { %v15058_v50 = vpop.f32.mrb[24].mxu0 }
0x13c5   :  { %v23083_v63 = vpop.f32.mrb[25].mxu0  ;;  %v26571_v26 = vadd.f32 %v15058_v50, %v25673_v4 }
0x13c7   :  { %v15062_v35 = vsel %vm1300_vm4, %v26571_v26, -inf }
0x13cc   :  { %v11381_v51 = vpop.xlane.xlu0 %11380 }
0x13cd   :  { %v11382_v59 = vsub.f32 %v24628_v44, %v11381_v51 }
0x13cf   :  { %v11383_v23 = vmul.f32 1.442695, %v11382_v59 }
0x13d1   :  { %25114 = vpow2.f32 %v11383_v23  ;;  %v12299_v22 = vpop.xlane.xlu1 %12298 }
0x13d2   :  { %v12300_v45 = vsub.f32 %v24629_v3, %v12299_v22 }
0x13d4   :  { %v12301_v9 = vmul.f32 1.442695, %v12300_v45 }
0x13d5   :  { %v11391_v49 = vpop.permute.xlu1 %11390 }
0x13d6   :  { %v26558_v33 = vand.u32 4294901760, %v11391_v49  ;;  %25116 = vpow2.f32 %v12301_v9 }
0x13d8   :  { %22845 = vmatpush3.msra.mxu1 %v26558_v33  ;;  %v11474_v16 = vsub.f32 %v11391_v49, %v26558_v33 }
0x13d9   :  { %22849 = vmatprep.subr.mxu1 %v25191_v8 }
0x13da   :  { %v11475_v36 = vand.u32 4294901760, %v11474_v16 }
0x13db   :  { %v25115_v39 = vpop.eup %25114 }
0x13dc   :  { %v11385_v40 = vsel %vm1300_vm4, %v25115_v39, 0.0  ;;  %v11476_v47 = vsub.f32 %v11474_v16, %v11475_v36 }
0x13dd   :  { %11386 = vadd.xlane.f32.xlu0 %v11385_v40 }
0x13de   :  { %v11477_v11 = vand.u32 4294901760, %v11476_v47 }
0x13e0   :  { %v25117_v48 = vpop.eup %25116 }
0x13e1   :  { %13220 = vmax.xlane.f32.xlu0 %v13219_v46  ;;  %v12303_v53 = vsel %vm1300_vm4, %v25117_v48, 0.0 }
0x13e5   :  { %14142 = vmax.xlane.f32.xlu0 %v14141_v31 }
0x13e9   :  { %12304 = vadd.xlane.f32.xlu0 %v12303_v53 }
0x13f0   :  { %v15976_v54 = vpop.f32.mrb[26].mxu0 }
0x13f1   :  { %v23143_v13 = vpop.f32.mrb[27].mxu0  ;;  %v26588_v25 = vadd.f32 %v15976_v54, %v25673_v4 }
0x13f3   :  { %v15980_v32 = vsel %vm1300_vm4, %v26588_v25, -inf }
0x13ff   :  { %12308 = vrot.lane.b32.xlu0 %v26351_v18, %s25199_s22 }
0x141c   :  { %v26573_v14 = vpop.f32.mrb[28].mxu0 }
0x141d   :  { %v23203_v19 = vpop.f32.mrb[29].mxu0 }
0x141e   :  { %15063 = vmax.xlane.f32.xlu0 %v15062_v35 }
0x1448   :  { %v26577_v28 = vpop.f32.mrb[30].mxu0 }
0x1449   :  { %v23263_v42 = vpop.f32.mrb[31].mxu0 }
0x146a   :  { %v11387_v56 = vpop.xlane.xlu0 %11386 }
0x146b   :  { %25118 = vrcp.f32 %v11387_v56 }
0x146e   :  { %v13221_v57 = vpop.xlane.xlu0 %13220 }
0x146f   :  { %v13222_v61 = vsub.f32 %v24630_v24, %v13221_v57  ;;  %v26629_v24 = vadd.f32 %v26577_v28, %v25673_v4 }
0x1471   :  { %v13223_v62 = vmul.f32 1.442695, %v13222_v61  ;;  %v17824_v46 = vsel %vm1300_vm4, %v26629_v24, -inf }
0x1472   :  { %v14143_v5 = vpop.xlane.xlu0 %14142 }
0x1473   :  { %25120 = vpow2.f32 %v13223_v62  ;;  %v14144_v6 = vsub.f32 %v24631_v41, %v14143_v5 }
0x1475   :  { %v25119_v12 = vpop.eup %25118  ;;  %v14145_v15 = vmul.f32 1.442695, %v14144_v6 }
0x1476   :  { %v11389_v43 = vmul.f32 %v25119_v12, %v25115_v39  ;;  %v12305_v0 = vpop.xlane.xlu0 %12304  ;;  %v26625_v39 = vadd.f32 %v26573_v14, %v25673_v4 }
0x1477   :  { %25122 = vpow2.f32 %v14145_v15 }
0x1478   :  { %v11394_v20 = vsel %vm1300_vm4, %v11389_v43, 0  ;;  %25124 = vrcp.f32 %v12305_v0  ;;  %v16902_v40 = vsel %vm1300_vm4, %v26625_v39, -inf }
0x1479   :  { %v11462_v21 = vand.u32 4294901760, %v11394_v20 }
0x147a   :  { %v12309_v2 = vpop.permute.xlu0 %12308 }
0x147b   :  { %v11463_v44 = vsub.f32 %v11394_v20, %v11462_v21  ;;  %v12315_v7 = vand.u32 4294901760, %v12309_v2 }
0x147d   :  { %v26581_v60 = vpop.eup %25120  ;;  %v11464_v1 = vand.u32 4294901760, %v11463_v44 }
0x147e   :  { %v13225_v37 = vsel %vm1300_vm4, %v26581_v60, 0.0 }
0x147f   :  { %13226 = vadd.xlane.f32.xlu1 %v13225_v37  ;;  %v11465_v55 = vsub.f32 %v11463_v44, %v11464_v1 }
0x1481   :  { %v26585_v3 = vpop.eup %25122  ;;  %v11466_v10 = vand.u32 4294901760, %v11465_v55 }
0x1482   :  { %v14147_v17 = vsel %vm1300_vm4, %v26585_v3, 0.0  ;;  %v25125_v27 = vpop.eup %25124 }
0x1483   :  { %22847 = vmatmul.mubr.f32.vlgmr.msra.gmra.mrb[30].mxu1 %v11466_v10  ;;  %14148 = vadd.xlane.f32.xlu0 %v14147_v17  ;;  %v12307_v38 = vmul.f32 %v25125_v27, %v25117_v48 }
0x1484   :  { %22850 = vmatpush3.msra.mxu1 %v11477_v11  ;;  %22851 = vmatprep.mubr.msk.f32.mxu1 %vm25193_vm3, %v25191_v8 }
0x1485   :  { %22854 = vmatprep.subr.mxu1 %v25191_v8  ;;  %v12312_v58 = vsel %vm1300_vm4, %v12307_v38, 0 }
0x1486   :  { %v12380_v34 = vand.u32 4294901760, %v12312_v58 }
0x1487   :  { %15981 = vmax.xlane.f32.xlu0 %v15980_v32 }
0x1488   :  { %v12381_v50 = vsub.f32 %v12312_v58, %v12380_v34 }
0x148a   :  { %v12382_v63 = vand.u32 4294901760, %v12381_v50 }
0x148b   :  { %22852 = vmatmul.mubr.f32.vlgmr.msra.gmra.mrb[30].mxu1 %v11462_v21 }
0x148c   :  { %22855 = vmatpush3.msra.mxu1 %v11474_v16  ;;  %22856 = vmatprep.mubr.msk.f32.mxu1 %vm25193_vm3, %v25191_v8  ;;  %v12383_v59 = vsub.f32 %v12381_v50, %v12382_v63 }
0x148d   :  { %22859 = vmatprep.subr.mxu1 %v25191_v8 }
0x148e   :  { %v12384_v49 = vand.u32 4294901760, %v12383_v59 }
0x1490   :  { %13230 = vrot.lane.b32.xlu1 %v26351_v18, %s25204_s27 }
0x1493   :  { %22857 = vmatmul.mubr.f32.vlgmr.msra.gmra.mrb[30].mxu1 %v11463_v44 }
0x1494   :  { %22860 = vmatpush3.msra.mxu1 %v26558_v33  ;;  %14152 = vrot.lane.b32.xlu1 %v26351_v18, %s25205_s28  ;;  %v12392_v18 = vsub.f32 %v12309_v2, %v12315_v7 }
0x1495   :  { %22861 = vmatprep.mubr.msk.f32.mxu1 %vm25193_vm3, %v25191_v8  ;;  %22864 = vmatprep.subr.mxu1 %v25191_v8 }
0x1496   :  { %v12393_v51 = vand.u32 4294901760, %v12392_v18 }
0x1498   :  { %v12394_v23 = vsub.f32 %v12392_v18, %v12393_v51 }
0x149b   :  { %22862 = vmatmul.mubr.f32.vlgmr.msra.gmra.mrb[30].mxu1 %v11464_v1 }
0x149c   :  { %22865 = vmatpush3.msra.mxu1 %v11475_v36  ;;  %22866 = vmatprep.mubr.msk.f32.mxu1 %vm25193_vm3, %v25191_v8 }
0x149d   :  { %22869 = vmatprep.subr.mxu1 %v25191_v8 }
0x14a3   :  { %22867 = vmatmul.mubr.f32.vlgmr.msra.gmra.mrb[30].mxu1 %v11462_v21 }
0x14a4   :  { %22870 = vmatpush3.msra.mxu1 %v26558_v33  ;;  %22871 = vmatprep.mubr.msk.f32.mxu1 %vm25193_vm3, %v25191_v8  ;;  %v12395_v33 = vand.u32 4294901760, %v12394_v23 }
0x14a5   :  { %22904 = vmatprep.subr.mxu1 %v25191_v8 }
0x14ab   :  { %22872 = vmatmul.mubr.f32.vlgmr.msra.gmra.mrb[30].mxu1 %v11462_v21  ;;  %v15064_v22 = vpop.xlane.xlu0 %15063 }
0x14ac   :  { %22905 = vmatpush3.msra.mxu1 %v12315_v7  ;;  %v15065_v45 = vsub.f32 %v26571_v26, %v15064_v22  ;;  %22906 = vmatprep.mubr.msk.f32.mxu1 %vm25193_vm3, %v25191_v8 }
0x14ad   :  { %22909 = vmatprep.subr.mxu1 %v25191_v8 }
0x14ae   :  { %v15066_v9 = vmul.f32 1.442695, %v15065_v45 }
0x14af   :  { %22907 = vmatmul.mubr.f32.vlgmr.msra.gmra.mrb[32].mxu1 %v12384_v49 }
0x14b0   :  { %25126 = vpow2.f32 %v15066_v9  ;;  %22910 = vmatpush3.msra.mxu1 %v12395_v33  ;;  %22911 = vmatprep.mubr.msk.f32.mxu1 %vm25193_vm3, %v25191_v8 }
0x14b1   :  { %22914 = vmatprep.subr.mxu1 %v25191_v8 }
0x14b7   :  { %22912 = vmatmul.mubr.f32.vlgmr.msra.gmra.mrb[32].mxu1 %v12380_v34 }
0x14b8   :  { %22915 = vmatpush3.msra.mxu1 %v12392_v18  ;;  %16903 = vmax.xlane.f32.xlu1 %v16902_v40 }
0x14b9   :  { %22916 = vmatprep.mubr.msk.f32.mxu1 %vm25193_vm3, %v25191_v8  ;;  %22919 = vmatprep.subr.mxu1 %v25191_v8 }
0x14ba   :  { %v26636_v41 = vpop.eup %25126 }
0x14bb   :  { %v15068_v4 = vsel %vm1300_vm4, %v26636_v41, 0.0 }
0x14bc   :  { %17825 = vmax.xlane.f32.xlu1 %v17824_v46  ;;  %15069 = vadd.xlane.f32.xlu0 %v15068_v4 }
0x14bf   :  { %22917 = vmatmul.mubr.f32.vlgmr.msra.gmra.mrb[32].mxu1 %v12381_v50 }
0x14c0   :  { %22920 = vmatpush3.msra.mxu1 %v12315_v7  ;;  %22921 = vmatprep.mubr.msk.f32.mxu1 %vm25193_vm3, %v25191_v8 }
0x14c1   :  { %22924 = vmatprep.subr.mxu1 %v25191_v8 }
0x14c7   :  { %22922 = vmatmul.mubr.f32.vlgmr.msra.gmra.mrb[32].mxu1 %v12382_v63 }
0x14c8   :  { %22925 = vmatpush3.msra.mxu1 %v12393_v51  ;;  %22926 = vmatprep.mubr.msk.f32.mxu1 %vm25193_vm3, %v25191_v8 }
0x14c9   :  { %22929 = vmatprep.subr.mxu1 %v25191_v8 }
0x14cd   :  { %15991 = vrot.lane.b32.xlu1 %v26349_v29, %s25199_s22 }
0x14cf   :  { %22927 = vmatmul.mubr.f32.vlgmr.msra.gmra.mrb[32].mxu1 %v12380_v34 }
0x14d0   :  { %22930 = vmatpush3.msra.mxu1 %v12315_v7  ;;  %22931 = vmatprep.mubr.msk.f32.mxu1 %vm25193_vm3, %v25191_v8 }
0x14d1   :  { %16913 = vrot.lane.b32.xlu1 %v26349_v29, %s25204_s27  ;;  %22964 = vmatprep.subr.mxu1 %v25191_v8 }
0x14d2   :  { %15073 = vrot.lane.b32.xlu0 %v26349_v29, %s25198_s21 }
0x14d5   :  { %17835 = vrot.lane.b32.xlu1 %v26349_v29, %s25205_s28 }
0x14d7   :  { %22932 = vmatmul.mubr.f32.vlgmr.msra.gmra.mrb[32].mxu1 %v12380_v34 }
0x14d8   :  { %22966 = vmatprep.mubr.msk.f32.mxu1 %vm25193_vm3, %v25191_v8 }
0x150c   :  { %v13227_v31 = vpop.xlane.xlu1 %13226 }
0x150d   :  { %25128 = vrcp.f32 %v13227_v31 }
0x1510   :  { %v13231_v48 = vpop.permute.xlu1 %13230  ;;  %v14149_v53 = vpop.xlane.xlu0 %14148 }
0x1511   :  { %v13237_v54 = vand.u32 4294901760, %v13231_v48 }
0x1513   :  { %22965 = vmatpush3.msra.mxu1 %v13237_v54  ;;  %v13314_v29 = vsub.f32 %v13231_v48, %v13237_v54 }
0x1514   :  { %v15982_v13 = vpop.xlane.xlu0 %15981  ;;  %22969 = vmatprep.subr.mxu1 %v25191_v8  ;;  %v14153_v36 = vpop.permute.xlu1 %14152 }
0x1515   :  { %v15983_v26 = vsub.f32 %v26588_v25, %v15982_v13  ;;  %v13315_v56 = vand.u32 4294901760, %v13314_v29 }
0x1517   :  { %v25129_v14 = vpop.eup %25128  ;;  %v15984_v19 = vmul.f32 1.442695, %v15983_v26  ;;  %v13316_v62 = vsub.f32 %v13314_v29, %v13315_v56 }
0x1518   :  { %v13229_v35 = vmul.f32 %v25129_v14, %v26581_v60  ;;  %v14159_v60 = vand.u32 4294901760, %v14153_v36 }
0x1519   :  { %25130 = vpow2.f32 %v15984_v19  ;;  %v13317_v15 = vand.u32 4294901760, %v13316_v62 }
0x151a   :  { %v13234_v28 = vsel %vm1300_vm4, %v13229_v35, 0  ;;  %25132 = vrcp.f32 %v14149_v53  ;;  %v14236_v47 = vsub.f32 %v14153_v36, %v14159_v60 }
0x151b   :  { %v13302_v42 = vand.u32 4294901760, %v13234_v28 }
0x151c   :  { %v14237_v10 = vand.u32 4294901760, %v14236_v47 }
0x151d   :  { %v13303_v57 = vsub.f32 %v13234_v28, %v13302_v42 }
0x151e   :  { %v14238_v32 = vsub.f32 %v14236_v47, %v14237_v10 }
0x151f   :  { %v13304_v61 = vand.u32 4294901760, %v13303_v57 }
0x1520   :  { %v14239_v58 = vand.u32 4294901760, %v14238_v32 }
0x1521   :  { %v13305_v5 = vsub.f32 %v13303_v57, %v13304_v61 }
0x1523   :  { %v26665_v6 = vpop.eup %25130  ;;  %v13306_v12 = vand.u32 4294901760, %v13305_v5 }
0x1524   :  { %v15986_v16 = vsel %vm1300_vm4, %v26665_v6, 0.0  ;;  %v25133_v43 = vpop.eup %25132 }
0x1525   :  { %22967 = vmatmul.mubr.f32.vlgmr.msra.gmra.mrb[34].mxu1 %v13306_v12  ;;  %15987 = vadd.xlane.f32.xlu0 %v15986_v16  ;;  %v14151_v20 = vmul.f32 %v25133_v43, %v26585_v3 }
0x1526   :  { %22970 = vmatpush3.msra.mxu1 %v13317_v15  ;;  %22971 = vmatprep.mubr.msk.f32.mxu1 %vm25193_vm3, %v25191_v8 }
0x1527   :  { %22974 = vmatprep.subr.mxu1 %v25191_v8  ;;  %v14156_v21 = vsel %vm1300_vm4, %v14151_v20, 0 }
0x1528   :  { %v26683_v44 = vand.u32 4294901760, %v14156_v21 }
0x152a   :  { %v14225_v1 = vsub.f32 %v14156_v21, %v26683_v44 }
0x152c   :  { %v14226_v3 = vand.u32 4294901760, %v14225_v1 }
0x152d   :  { %22972 = vmatmul.mubr.f32.vlgmr.msra.gmra.mrb[34].mxu1 %v13302_v42 }
0x152e   :  { %22975 = vmatpush3.msra.mxu1 %v13314_v29  ;;  %22976 = vmatprep.mubr.msk.f32.mxu1 %vm25193_vm3, %v25191_v8  ;;  %v14227_v0 = vsub.f32 %v14225_v1, %v14226_v3 }
0x152f   :  { %22979 = vmatprep.subr.mxu1 %v25191_v8 }
0x1530   :  { %v14228_v38 = vand.u32 4294901760, %v14227_v0 }
0x1535   :  { %22977 = vmatmul.mubr.f32.vlgmr.msra.gmra.mrb[34].mxu1 %v13303_v57 }
0x1536   :  { %22980 = vmatpush3.msra.mxu1 %v13237_v54  ;;  %22981 = vmatprep.mubr.msk.f32.mxu1 %vm25193_vm3, %v25191_v8 }
0x1537   :  { %22984 = vmatprep.subr.mxu1 %v25191_v8 }
0x153d   :  { %22982 = vmatmul.mubr.f32.vlgmr.msra.gmra.mrb[34].mxu1 %v13304_v61 }
0x153e   :  { %22985 = vmatpush3.msra.mxu1 %v13315_v56  ;;  %22986 = vmatprep.mubr.msk.f32.mxu1 %vm25193_vm3, %v25191_v8 }
0x153f   :  { %22989 = vmatprep.subr.mxu1 %v25191_v8 }
0x1545   :  { %v16904_v37 = vpop.xlane.xlu1 %16903  ;;  %22987 = vmatmul.mubr.f32.vlgmr.msra.gmra.mrb[34].mxu1 %v13302_v42 }
0x1546   :  { %v16905_v55 = vsub.f32 %v26625_v39, %v16904_v37  ;;  %22990 = vmatpush3.msra.mxu1 %v13237_v54  ;;  %22991 = vmatprep.mubr.msk.f32.mxu1 %vm25193_vm3, %v25191_v8 }
0x1547   :  { %23024 = vmatprep.subr.mxu1 %v25191_v8 }
0x1548   :  { %v16906_v11 = vmul.f32 1.442695, %v16905_v55 }
0x1549   :  { %v17826_v25 = vpop.xlane.xlu1 %17825  ;;  %v15070_v34 = vpop.xlane.xlu0 %15069 }
0x154a   :  { %25134 = vpow2.f32 %v16906_v11  ;;  %v17827_v17 = vsub.f32 %v26629_v24, %v17826_v25 }
0x154c   :  { %v17828_v27 = vmul.f32 1.442695, %v17827_v17 }
0x154d   :  { %22992 = vmatmul.mubr.f32.vlgmr.msra.gmra.mrb[34].mxu1 %v13302_v42  ;;  %v15074_v23 = vpop.permute.xlu0 %15073  ;;  %v15992_v48 = vpop.permute.xlu1 %15991 }
0x154e   :  { %25136 = vpow2.f32 %v17828_v27  ;;  %23025 = vmatpush3.msra.mxu1 %v14159_v60  ;;  %23026 = vmatprep.mubr.msk.f32.mxu1 %vm25193_vm3, %v25191_v8  ;;  %v15080_v45 = vand.u32 4294901760, %v15074_v23  ;;  %v15998_v53 = vand.u32 4294901760, %v15992_v48 }
0x154f   :  { %23029 = vmatprep.subr.mxu1 %v25191_v8  ;;  %25138 = vrcp.f32 %v15070_v34 }
0x1550   :  { %v15157_v33 = vsub.f32 %v15074_v23, %v15080_v45  ;;  %v16075_v19 = vsub.f32 %v15992_v48, %v15998_v53 }
0x1551   :  { %23027 = vmatmul.mubr.f32.vlgmr.msra.gmra.mrb[36].mxu1 %v14228_v38  ;;  %v16914_v15 = vpop.permute.xlu1 %16913 }
0x1552   :  { %23030 = vmatpush3.msra.mxu1 %v14239_v58  ;;  %23031 = vmatprep.mubr.msk.f32.mxu1 %vm25193_vm3, %v25191_v8  ;;  %v15158_v39 = vand.u32 4294901760, %v15157_v33  ;;  %v16076_v42 = vand.u32 4294901760, %v16075_v19  ;;  %v16920_v16 = vand.u32 4294901760, %v16914_v15 }
0x1553   :  { %23034 = vmatprep.subr.mxu1 %v25191_v8 }
0x1554   :  { %v26697_v2 = vpop.eup %25134  ;;  %v15159_v40 = vsub.f32 %v15157_v33, %v15158_v39  ;;  %v16077_v61 = vsub.f32 %v16075_v19, %v16076_v42  ;;  %v16997_v20 = vsub.f32 %v16914_v15, %v16920_v16 }
0x1555   :  { %v16908_v7 = vsel %vm1300_vm4, %v26697_v2, 0.0  ;;  %v17836_v32 = vpop.permute.xlu1 %17835 }
0x1556   :  { %16909 = vadd.xlane.f32.xlu0 %v16908_v7  ;;  %v15160_v46 = vand.u32 4294901760, %v15159_v40  ;;  %v16078_v12 = vand.u32 4294901760, %v16077_v61  ;;  %v17842_v38 = vand.u32 4294901760, %v17836_v32 }
0x1558   :  { %v26701_v50 = vpop.eup %25136 }
0x1559   :  { %23032 = vmatmul.mubr.f32.vlgmr.msra.gmra.mrb[36].mxu1 %v26683_v44  ;;  %v17830_v18 = vsel %vm1300_vm4, %v26701_v50, 0.0  ;;  %v25139_v63 = vpop.eup %25138 }
0x155a   :  { %23035 = vmatpush3.msra.mxu1 %v14236_v47  ;;  %17831 = vadd.xlane.f32.xlu0 %v17830_v18  ;;  %v15072_v51 = vmul.f32 %v25139_v63, %v26636_v41 }
0x155b   :  { %23036 = vmatprep.mubr.msk.f32.mxu1 %vm25193_vm3, %v25191_v8  ;;  %23039 = vmatprep.subr.mxu1 %v25191_v8 }
0x155c   :  { %v15077_v59 = vsel %vm1300_vm4, %v15072_v51, 0 }
0x155d   :  { %v15145_v22 = vand.u32 4294901760, %v15077_v59 }
0x155f   :  { %v15146_v49 = vsub.f32 %v15077_v59, %v15145_v22 }
0x1561   :  { %23037 = vmatmul.mubr.f32.vlgmr.msra.gmra.mrb[36].mxu1 %v14225_v1  ;;  %v15147_v9 = vand.u32 4294901760, %v15146_v49 }
0x1562   :  { %23040 = vmatpush3.msra.mxu1 %v14159_v60  ;;  %23041 = vmatprep.mubr.msk.f32.mxu1 %vm25193_vm3, %v25191_v8 }
0x1563   :  { %23044 = vmatprep.subr.mxu1 %v25191_v8  ;;  %v15148_v24 = vsub.f32 %v15146_v49, %v15147_v9 }
0x1565   :  { %v15149_v41 = vand.u32 4294901760, %v15148_v24 }
0x1569   :  { %23042 = vmatmul.mubr.f32.vlgmr.msra.gmra.mrb[36].mxu1 %v14226_v3 }
0x156a   :  { %23045 = vmatpush3.msra.mxu1 %v14237_v10  ;;  %23046 = vmatprep.mubr.msk.f32.mxu1 %vm25193_vm3, %v25191_v8 }
0x156b   :  { %23049 = vmatprep.subr.mxu1 %v25191_v8 }
0x1571   :  { %23047 = vmatmul.mubr.f32.vlgmr.msra.gmra.mrb[36].mxu1 %v26683_v44 }
0x1572   :  { %23050 = vmatpush3.msra.mxu1 %v14159_v60  ;;  %23051 = vmatprep.mubr.msk.f32.mxu1 %vm25193_vm3, %v25191_v8  ;;  %v16998_v60 = vand.u32 4294901760, %v16997_v20 }
0x1573   :  { %23084 = vmatprep.subr.mxu1 %v25191_v8 }
0x1574   :  { %v16999_v37 = vsub.f32 %v16997_v20, %v16998_v60 }
0x1576   :  { %v17000_v10 = vand.u32 4294901760, %v16999_v37 }
0x1579   :  { %23052 = vmatmul.mubr.f32.vlgmr.msra.gmra.mrb[36].mxu1 %v26683_v44 }
0x157a   :  { %23085 = vmatpush3.msra.mxu1 %v15080_v45  ;;  %23086 = vmatprep.mubr.msk.f32.mxu1 %vm25193_vm3, %v25191_v8 }
0x157b   :  { %23089 = vmatprep.subr.mxu1 %v25191_v8 }
0x157d   :  { %23087 = vmatmul.mubr.f32.vlgmr.msra.gmra.mrb[38].mxu1 %v15149_v41 }
0x157e   :  { %23090 = vmatpush3.msra.mxu1 %v15160_v46  ;;  %v11838_v4 = vpop.f32.mrb[30].mxu1  ;;  %23091 = vmatprep.mubr.msk.f32.mxu1 %vm25193_vm3, %v25191_v8 }
0x157f   :  { %11842 = vst.msk [vmem:[#allocation2] sm:$0xff] %vm1300_vm4, %v11838_v4  ;;  %v22873_v31 = vpop.f32.mrb[31].mxu1  ;;  %23094 = vmatprep.subr.mxu1 %v25191_v8 }
0x1585   :  { %23092 = vmatmul.mubr.f32.vlgmr.msra.gmra.mrb[38].mxu1 %v15145_v22 }
0x1586   :  { %23095 = vmatpush3.msra.mxu1 %v15157_v33  ;;  %23096 = vmatprep.mubr.msk.f32.mxu1 %vm25193_vm3, %v25191_v8 }
0x1587   :  { %23099 = vmatprep.subr.mxu1 %v25191_v8 }
0x158d   :  { %23097 = vmatmul.mubr.f32.vlgmr.msra.gmra.mrb[38].mxu1 %v15146_v49 }
0x158e   :  { %23100 = vmatpush3.msra.mxu1 %v15080_v45  ;;  %23101 = vmatprep.mubr.msk.f32.mxu1 %vm25193_vm3, %v25191_v8 }
0x158f   :  { %23104 = vmatprep.subr.mxu1 %v25191_v8 }
0x1595   :  { %23102 = vmatmul.mubr.f32.vlgmr.msra.gmra.mrb[38].mxu1 %v15147_v9 }
0x1596   :  { %23105 = vmatpush3.msra.mxu1 %v15158_v39  ;;  %23106 = vmatprep.mubr.msk.f32.mxu1 %vm25193_vm3, %v25191_v8 }
0x1597   :  { %23109 = vmatprep.subr.mxu1 %v25191_v8 }
0x159d   :  { %23107 = vmatmul.mubr.f32.vlgmr.msra.gmra.mrb[38].mxu1 %v15145_v22 }
0x159e   :  { %23110 = vmatpush3.msra.mxu1 %v15080_v45  ;;  %23111 = vmatprep.mubr.msk.f32.mxu1 %vm25193_vm3, %v25191_v8 }
0x159f   :  { %23144 = vmatprep.subr.mxu1 %v25191_v8 }
0x15a5   :  { %23112 = vmatmul.mubr.f32.vlgmr.msra.gmra.mrb[38].mxu1 %v15145_v22 }
0x15a6   :  { %23145 = vmatpush3.msra.mxu1 %v15998_v53  ;;  %23146 = vmatprep.mubr.msk.f32.mxu1 %vm25193_vm3, %v25191_v8 }
0x15a7   :  { %23149 = vmatprep.subr.mxu1 %v25191_v8 }
0x15aa   :  { %v12756_v54 = vpop.f32.mrb[32].mxu1 }
0x15ab   :  { %12761 = vrot.lane.b32.xlu0 %v12756_v54, %s25206_s29  ;;  %v22933_v13 = vpop.f32.mrb[33].mxu1 }
0x15b2   :  { %v15988_v26 = vpop.xlane.xlu0 %15987 }
0x15b3   :  { %25140 = vrcp.f32 %v15988_v26 }
0x15bd   :  { %v25141_v14 = vpop.eup %25140 }
0x15be   :  { %v15990_v35 = vmul.f32 %v25141_v14, %v26665_v6  ;;  %v20788_v14 = vld [vmem:[%s27314_s4 + $0x20] sm:$0xff] }
0x15c0   :  { %v15995_v29 = vsel %vm1300_vm4, %v15990_v35, 0  ;;  %v20790_v35 = vld [vmem:[%s27314_s4 + $0x30] sm:$0xff] }
0x15c1   :  { %v16063_v28 = vand.u32 4294901760, %v15995_v29 }
0x15c3   :  { %v16064_v56 = vsub.f32 %v15995_v29, %v16063_v28  ;;  %v18306_v29 = vand.u32 4294901760, %v20788_v14 }
0x15c5   :  { %v16065_v57 = vand.u32 4294901760, %v16064_v56 }
0x15c7   :  { %v16066_v62 = vsub.f32 %v16064_v56, %v16065_v57 }
0x15c9   :  { %v16067_v5 = vand.u32 4294901760, %v16066_v62 }
0x15cb   :  { %23147 = vmatmul.mubr.f32.vlgmr.msra.gmra.mrb[40].mxu1 %v16067_v5  ;;  %v18396_v5 = vsub.f32 %v20788_v14, %v18306_v29 }
0x15cc   :  { %23150 = vmatpush3.msra.mxu1 %v16078_v12  ;;  %23151 = vmatprep.mubr.msk.f32.mxu1 %vm25193_vm3, %v25191_v8 }
0x15cd   :  { %23154 = vmatprep.subr.mxu1 %v25191_v8  ;;  %v18397_v15 = vand.u32 4294901760, %v18396_v5 }
0x15d3   :  { %23152 = vmatmul.mubr.f32.vlgmr.msra.gmra.mrb[40].mxu1 %v16063_v28 }
0x15d4   :  { %23155 = vmatpush3.msra.mxu1 %v16075_v19  ;;  %23156 = vmatprep.mubr.msk.f32.mxu1 %vm25193_vm3, %v25191_v8  ;;  %v20789_v19 = vld [vmem:[%s27314_s4 + $0x28] sm:$0xff] }
0x15d5   :  { %23159 = vmatprep.subr.mxu1 %v25191_v8 }
0x15db   :  { %23157 = vmatmul.mubr.f32.vlgmr.msra.gmra.mrb[40].mxu1 %v16064_v56  ;;  %v18312_v56 = vand.u32 4294901760, %v20790_v35 }
0x15dc   :  { %23160 = vmatpush3.msra.mxu1 %v15998_v53  ;;  %23161 = vmatprep.mubr.msk.f32.mxu1 %vm25193_vm3, %v25191_v8 }
0x15dd   :  { %23164 = vmatprep.subr.mxu1 %v25191_v8 }
0x15e3   :  { %23162 = vmatmul.mubr.f32.vlgmr.msra.gmra.mrb[40].mxu1 %v16065_v57  ;;  %v16910_v6 = vpop.xlane.xlu0 %16909 }
0x15e4   :  { %23165 = vmatpush3.msra.mxu1 %v16076_v42  ;;  %25142 = vrcp.f32 %v16910_v6  ;;  %23166 = vmatprep.mubr.msk.f32.mxu1 %vm25193_vm3, %v25191_v8  ;;  %v20791_v42 = vld [vmem:[%s27314_s4 + $0x38] sm:$0xff] }
0x15e5   :  { %23169 = vmatprep.subr.mxu1 %v25191_v8  ;;  %v18315_v57 = vand.u32 4294901760, %v20791_v42 }
0x15e7   :  { %v17832_v11 = vpop.xlane.xlu0 %17831  ;;  %v26833_v62 = vpack.c.bf16 %v18315_v57, %v18312_v56 }
0x15e8   :  { %25144 = vrcp.f32 %v17832_v11 }
0x15eb   :  { %23167 = vmatmul.mubr.f32.vlgmr.msra.gmra.mrb[40].mxu1 %v16063_v28 }
0x15ec   :  { %23170 = vmatpush3.msra.mxu1 %v15998_v53  ;;  %23171 = vmatprep.mubr.msk.f32.mxu1 %vm25193_vm3, %v25191_v8 }
0x15ed   :  { %23204 = vmatprep.subr.mxu1 %v25191_v8 }
0x15ee   :  { %v25143_v43 = vpop.eup %25142 }
0x15ef   :  { %v16912_v21 = vmul.f32 %v25143_v43, %v26697_v2  ;;  %v17919_v2 = vsub.f32 %v17836_v32, %v17842_v38 }
0x15f1   :  { %v16917_v36 = vsel %vm1300_vm4, %v16912_v21, 0 }
0x15f2   :  { %v16985_v44 = vand.u32 4294901760, %v16917_v36  ;;  %v25145_v25 = vpop.eup %25144 }
0x15f3   :  { %23172 = vmatmul.mubr.f32.vlgmr.msra.gmra.mrb[40].mxu1 %v16063_v28  ;;  %v17834_v17 = vmul.f32 %v25145_v25, %v26701_v50  ;;  %v17920_v50 = vand.u32 4294901760, %v17919_v2  ;;  %v18309_v28 = vand.u32 4294901760, %v20789_v19 }
0x15f4   :  { %23205 = vmatpush3.msra.mxu1 %v16920_v16  ;;  %23206 = vmatprep.mubr.msk.f32.mxu1 %vm25193_vm3, %v25191_v8  ;;  %v16986_v1 = vsub.f32 %v16917_v36, %v16985_v44  ;;  %v18410_v36 = vsub.f32 %v20790_v35, %v18312_v56 }
0x15f5   :  { %23209 = vmatprep.subr.mxu1 %v25191_v8  ;;  %v17839_v0 = vsel %vm1300_vm4, %v17834_v17, 0  ;;  %v17921_v59 = vsub.f32 %v17919_v2, %v17920_v50  ;;  %v26831_v61 = vpack.c.bf16 %v18309_v28, %v18306_v29  ;;  %v18403_v12 = vsub.f32 %v20789_v19, %v18309_v28 }
0x15f6   :  { %v16987_v47 = vand.u32 4294901760, %v16986_v1  ;;  %v17907_v27 = vand.u32 4294901760, %v17839_v0 }
0x15f7   :  { %v17922_v22 = vand.u32 4294901760, %v17921_v59  ;;  %24231 = vmatprep.subr.bf16.mxu0 %v26831_v61 }
0x15f8   :  { %v16988_v55 = vsub.f32 %v16986_v1, %v16987_v47  ;;  %v17908_v58 = vsub.f32 %v17839_v0, %v17907_v27  ;;  %24233 = vmatpush3.bf16.msra.mxu0 %v26831_v61  ;;  %v24246_v0 = vpack.c.bf16 %v18403_v12, %v18396_v5 }
0x15f9   :  { %24235 = vmatprep.subr.bf16.mxu0 %v26833_v62 }
0x15fa   :  { %v16989_v3 = vand.u32 4294901760, %v16988_v55  ;;  %v17909_v7 = vand.u32 4294901760, %v17908_v58 }
0x15fc   :  { %23207 = vmatmul.mubr.f32.vlgmr.msra.gmra.mrb[42].mxu1 %v16989_v3  ;;  %v17910_v51 = vsub.f32 %v17908_v58, %v17909_v7  ;;  %24237 = vmatpush3.bf16.msra.mxu0 %v26833_v62 }
0x15fd   :  { %23210 = vmatpush3.msra.mxu1 %v17000_v10  ;;  %23211 = vmatprep.mubr.msk.f32.mxu1 %vm25193_vm3, %v25191_v8 }
0x15fe   :  { %23214 = vmatprep.subr.mxu1 %v25191_v8  ;;  %v17911_v23 = vand.u32 4294901760, %v17910_v51 }
0x1604   :  { %23212 = vmatmul.mubr.f32.vlgmr.msra.gmra.mrb[42].mxu1 %v16985_v44 }
0x1605   :  { %23215 = vmatpush3.msra.mxu1 %v16997_v20  ;;  %23216 = vmatprep.mubr.msk.f32.mxu1 %vm25193_vm3, %v25191_v8  ;;  %v18398_v20 = vsub.f32 %v18396_v5, %v18397_v15 }
0x1606   :  { %23219 = vmatprep.subr.mxu1 %v25191_v8 }
0x160c   :  { %23217 = vmatmul.mubr.f32.vlgmr.msra.gmra.mrb[42].mxu1 %v16986_v1 }
0x160d   :  { %23220 = vmatpush3.msra.mxu1 %v16920_v16  ;;  %23221 = vmatprep.mubr.msk.f32.mxu1 %vm25193_vm3, %v25191_v8 }
0x160e   :  { %23224 = vmatprep.subr.mxu1 %v25191_v8 }
0x1614   :  { %23222 = vmatmul.mubr.f32.vlgmr.msra.gmra.mrb[42].mxu1 %v16987_v47  ;;  %v18411_v47 = vand.u32 4294901760, %v18410_v36 }
0x1615   :  { %23225 = vmatpush3.msra.mxu1 %v16998_v60  ;;  %23226 = vmatprep.mubr.msk.f32.mxu1 %vm25193_vm3, %v25191_v8  ;;  %v18399_v60 = vand.u32 4294901760, %v18398_v20 }
0x1616   :  { %23229 = vmatprep.subr.mxu1 %v25191_v8  ;;  %v18412_v3 = vsub.f32 %v18410_v36, %v18411_v47 }
0x1618   :  { %v18413_v11 = vand.u32 4294901760, %v18412_v3 }
0x161c   :  { %23227 = vmatmul.mubr.f32.vlgmr.msra.gmra.mrb[42].mxu1 %v16985_v44 }
0x161d   :  { %23230 = vmatpush3.msra.mxu1 %v16920_v16  ;;  %v12762_v34 = vpop.permute.xlu0 %12761  ;;  %23231 = vmatprep.mubr.msk.f32.mxu1 %vm25193_vm3, %v25191_v8  ;;  %v18404_v16 = vand.u32 4294901760, %v18403_v12 }
0x161e   :  { %12764 = vst.msk [vmem:[#allocation2] sm:$0xff] %vm3136_vm6, %v12762_v34  ;;  %23264 = vmatprep.subr.mxu1 %v25191_v8 }
0x161f   :  { %v18405_v21 = vsub.f32 %v18403_v12, %v18404_v16 }
0x1620   :  { %v13678_v18 = vpop.f32.mrb[34].mxu1 }
0x1621   :  { %13683 = vrot.lane.b32.xlu1 %v13678_v18, %s27339_s2  ;;  %v22993_v63 = vpop.f32.mrb[35].mxu1  ;;  %v18406_v1 = vand.u32 4294901760, %v18405_v21 }
0x1623   :  { %v24238_v55 = vpack.c.bf16 %v18406_v1, %v18399_v60 }
0x1624   :  { %23232 = vmatmul.mubr.f32.vlgmr.msra.gmra.mrb[42].mxu1 %v16985_v44  ;;  %v18417_v44 = vsub.f32 %v20791_v42, %v18315_v57 }
0x1625   :  { %23265 = vmatpush3.msra.mxu1 %v17842_v38  ;;  %23266 = vmatprep.mubr.msk.f32.mxu1 %vm25193_vm3, %v25191_v8 }
0x1626   :  { %23269 = vmatprep.subr.mxu1 %v25191_v8  ;;  %v18418_v37 = vand.u32 4294901760, %v18417_v44  ;;  %24239 = vmatprep.subr.bf16.mxu0 %v24238_v55  ;;  %v24250_v32 = vpack.c.bf16 %v18417_v44, %v18410_v36 }
0x1628   :  { %23267 = vmatmul.mubr.f32.vlgmr.msra.gmra.mrb[44].mxu1 %v17911_v23  ;;  %v18419_v10 = vsub.f32 %v18417_v44, %v18418_v37 }
0x1629   :  { %23270 = vmatpush3.msra.mxu1 %v17922_v22  ;;  %23271 = vmatprep.mubr.msk.f32.mxu1 %vm25193_vm3, %v25191_v8  ;;  %v20794_v22 = vld [vmem:[%s27316_s6 + $0x20] sm:$0xff] }
0x162a   :  { %23274 = vmatprep.subr.mxu1 %v25191_v8  ;;  %v18420_v25 = vand.u32 4294901760, %v18419_v10 }
0x162c   :  { %v24242_v17 = vpack.c.bf16 %v18420_v25, %v18413_v11 }
0x1630   :  { %23272 = vmatmul.mubr.f32.vlgmr.msra.gmra.mrb[44].mxu1 %v17907_v27 }
0x1631   :  { %23275 = vmatpush3.msra.mxu1 %v17919_v2  ;;  %23276 = vmatprep.mubr.msk.f32.mxu1 %vm25193_vm3, %v25191_v8 }
0x1632   :  { %23279 = vmatprep.subr.mxu1 %v25191_v8 }
0x1638   :  { %23277 = vmatmul.mubr.f32.vlgmr.msra.gmra.mrb[44].mxu1 %v17908_v58  ;;  %v24266_v58 = vpack.c.bf16 %v18418_v37, %v18411_v47 }
0x1639   :  { %23280 = vmatpush3.msra.mxu1 %v17842_v38  ;;  %23281 = vmatprep.mubr.msk.f32.mxu1 %vm25193_vm3, %v25191_v8 }
0x163a   :  { %23284 = vmatprep.subr.mxu1 %v25191_v8 }
0x1640   :  { %23282 = vmatmul.mubr.f32.vlgmr.msra.gmra.mrb[44].mxu1 %v17909_v7 }
0x1641   :  { %23285 = vmatpush3.msra.mxu1 %v17920_v50  ;;  %23286 = vmatprep.mubr.msk.f32.mxu1 %vm25193_vm3, %v25191_v8 }
0x1642   :  { %23289 = vmatprep.subr.mxu1 %v25191_v8 }
0x1648   :  { %23287 = vmatmul.mubr.f32.vlgmr.msra.gmra.mrb[44].mxu1 %v17907_v27 }
0x1649   :  { %23290 = vmatpush3.msra.mxu1 %v17842_v38  ;;  %23291 = vmatprep.mubr.msk.f32.mxu1 %vm25193_vm3, %v25191_v8  ;;  %v24262_v38 = vpack.c.bf16 %v18404_v16, %v18397_v15 }
0x164c   :  { %v14600_v45 = vpop.f32.mrb[36].mxu1 }
0x164d   :  { %14605 = vrot.lane.b32.xlu1 %v14600_v45, %s27340_s19  ;;  %v23053_v49 = vpop.f32.mrb[37].mxu1  ;;  %v20795_v45 = vld [vmem:[%s27316_s6 + $0x28] sm:$0xff] }
0x164e   :  { %v18865_v49 = vand.u32 4294901760, %v20794_v22 }
0x1650   :  { %23292 = vmatmul.mubr.f32.vlgmr.msra.gmra.mrb[44].mxu1 %v17907_v27 }
0x1678   :  { %v15521_v33 = vpop.f32.mrb[38].mxu1 }
0x1679   :  { %15525 = vst.msk [vmem:[#allocation2 + $0x8] sm:$0xff] %vm1300_vm4, %v15521_v33  ;;  %v23113_v9 = vpop.f32.mrb[39].mxu1  ;;  %v18868_v33 = vand.u32 4294901760, %v20795_v45 }
0x167b   :  { %v26864_v9 = vpack.c.bf16 %v18868_v33, %v18865_v49 }
0x167d   :  { %24279 = vmatprep.subr.bf16.mxu1 %v26864_v9 }
0x167e   :  { %24281 = vmatpush3.bf16.msra.mxu1 %v26864_v9 }
0x1693   :  { %v13684_v39 = vpop.permute.xlu1 %13683 }
0x1694   :  { %13686 = vst.msk [vmem:[#allocation2] sm:$0xff] %vm4059_vm7, %v13684_v39  ;;  %v20796_v39 = vld [vmem:[%s27316_s6 + $0x30] sm:$0xff] }
0x16bf   :  { %v14606_v24 = vpop.permute.xlu1 %14605 }
0x16c0   :  { %14608 = vst.msk [vmem:[#allocation2] sm:$0xff] %vm4982_vm8, %v14606_v24  ;;  %v20797_v24 = vld [vmem:[%s27316_s6 + $0x38] sm:$0xff] }
0x16c6   :  { %v16439_v40 = vpop.f32.mrb[40].mxu1 }
0x16c7   :  { %16444 = vrot.lane.b32.xlu1 %v16439_v40, %s25206_s29  ;;  %v23173_v41 = vpop.f32.mrb[41].mxu1  ;;  %v18292_v8 = vld [vmem:[#allocation2] sm:$0xff]  ;;  %v18955_v40 = vsub.f32 %v20794_v22, %v18865_v49  ;;  %v20807_v49 = vld [vmem:[%s27318_s8 + $0x78] sm:$0xff] }
0x16c8   :  { %v18300_v46 = vsel %vm762_vm2, %v18292_v8, 0  ;;  %v18962_v41 = vsub.f32 %v20795_v45, %v18868_v33  ;;  %v18871_v8 = vand.u32 4294901760, %v20796_v39 }
0x16c9   :  { %v26809_v4 = vand.u32 4294901760, %v18300_v46 }
0x16ca   :  { %v24294_v5 = vpack.c.bf16 %v18962_v41, %v18955_v40 }
0x16cb   :  { %v26812_v31 = vsub.f32 %v18300_v46, %v26809_v4  ;;  %v18874_v46 = vand.u32 4294901760, %v20797_v24 }
0x16cd   :  { %v18376_v48 = vand.u32 4294901760, %v26812_v31 }
0x16cf   :  { %v18377_v53 = vsub.f32 %v26812_v31, %v18376_v48 }
0x16d1   :  { %v18378_v54 = vand.u32 4294901760, %v18377_v53 }
0x16d3   :  { %23302 = vmatprep.mubr.f32.mxu0 %v18378_v54 }
0x16f7   :  { %v17361_v13 = vpop.f32.mrb[42].mxu1 }
0x16f8   :  { %17366 = vrot.lane.b32.xlu1 %v17361_v13, %s27339_s2  ;;  %v23233_v26 = vpop.f32.mrb[43].mxu1  ;;  %v18969_v13 = vsub.f32 %v20796_v39, %v18871_v8 }
0x16f9   :  { %v18976_v26 = vsub.f32 %v20797_v24, %v18874_v46 }
0x16fa   :  { %v18970_v35 = vand.u32 4294901760, %v18969_v13 }
0x16fb   :  { %v18977_v29 = vand.u32 4294901760, %v18976_v26  ;;  %v24298_v12 = vpack.c.bf16 %v18976_v26, %v18969_v13 }
0x16fc   :  { %v18971_v42 = vsub.f32 %v18969_v13, %v18970_v35 }
0x16fd   :  { %v18978_v56 = vsub.f32 %v18976_v26, %v18977_v29  ;;  %v24314_v15 = vpack.c.bf16 %v18977_v29, %v18970_v35 }
0x16fe   :  { %v18972_v57 = vand.u32 4294901760, %v18971_v42 }
0x1723   :  { %v18283_v6 = vpop.f32.mrb[44].mxu1 }
0x1724   :  { %18288 = vrot.lane.b32.xlu1 %v18283_v6, %s27340_s19  ;;  %v23293_v43 = vpop.f32.mrb[45].mxu1 }
0x1725   :  { %v20793_v43 = vld [vmem:[%s27315_s5 + $0x1] ss:$0 sm:$0xff] }
0x1739   :  { %v16445_v27 = vpop.permute.xlu1 %16444 }
0x173a   :  { %16447 = vst.msk [vmem:[#allocation2 + $0x8] sm:$0xff] %vm3136_vm6, %v16445_v27  ;;  %v20801_v27 = vld [vmem:[%s27318_s8 + $0x48] sm:$0xff] }
0x176a   :  { %v17367_v2 = vpop.permute.xlu1 %17366 }
0x176b   :  { %17369 = vst.msk [vmem:[#allocation2 + $0x8] sm:$0xff] %vm4059_vm7, %v17367_v2 }
0x1796   :  { %v18289_v34 = vpop.permute.xlu1 %18288 }
0x1797   :  { %18291 = vst.msk [vmem:[#allocation2 + $0x8] sm:$0xff] %vm4982_vm8, %v18289_v34  ;;  %v20802_v34 = vld [vmem:[%s27318_s8 + $0x50] sm:$0xff] }
0x179e   :  { %v18293_v7 = vld [vmem:[#allocation2 + $0x8] sm:$0xff] }
0x179f   :  { %v18303_v50 = vsel %vm762_vm2, %v18293_v7, 0  ;;  %v20803_v7 = vld [vmem:[%s27318_s8 + $0x58] sm:$0xff] }
0x17a0   :  { %v18384_v18 = vand.u32 4294901760, %v18303_v50 }
0x17a2   :  { %v18385_v63 = vsub.f32 %v18303_v50, %v18384_v18  ;;  %v19432_v50 = vand.u32 4294901760, %v20802_v34 }
0x17a4   :  { %v18386_v51 = vand.u32 4294901760, %v18385_v63 }
0x17a6   :  { %v18387_v59 = vsub.f32 %v18385_v63, %v18386_v51 }
0x17a8   :  { %v18388_v23 = vand.u32 4294901760, %v18387_v59  ;;  %v20806_v59 = vld [vmem:[%s27318_s8 + $0x70] sm:$0xff] }
0x17a9   :  { %v19444_v33 = vand.u32 4294901760, %v20806_v59 }
0x17aa   :  { %23303 = vmatmul.mubr.f32.vlgmr.msra.gmra.mrb[32].mxu0 %v18388_v23 }
0x17ab   :  { %24241 = vmatpush3.bf16.msra.mxu0 %v24238_v55  ;;  %23313 = vmatprep.mubr.f32.mxu0 %v26809_v4 }
0x17ac   :  { %24243 = vmatprep.subr.bf16.mxu0 %v24242_v17 }
0x17af   :  { %24245 = vmatpush3.bf16.msra.mxu0 %v24242_v17 }
0x17b0   :  { %24247 = vmatprep.subr.bf16.mxu0 %v24246_v0 }
0x17b2   :  { %23314 = vmatmul.mubr.f32.vlgmr.msra.gmra.mrb[32].mxu0 %v18384_v18 }
0x17b3   :  { %24249 = vmatpush3.bf16.msra.mxu0 %v24246_v0  ;;  %23324 = vmatprep.mubr.f32.mxu0 %v26812_v31  ;;  %v18963_v31 = vand.u32 4294901760, %v18962_v41 }
0x17b4   :  { %24251 = vmatprep.subr.bf16.mxu0 %v24250_v32 }
0x17b5   :  { %v18964_v54 = vsub.f32 %v18962_v41, %v18963_v31 }
0x17b7   :  { %24253 = vmatpush3.bf16.msra.mxu0 %v24250_v32  ;;  %v18965_v19 = vand.u32 4294901760, %v18964_v54  ;;  %v20800_v32 = vld [vmem:[%s27318_s8 + $0x40] sm:$0xff] }
0x17b8   :  { %24255 = vmatprep.subr.bf16.mxu0 %v26831_v61 }
0x17ba   :  { %23325 = vmatmul.mubr.f32.vlgmr.msra.gmra.mrb[32].mxu0 %v18385_v63  ;;  %v20804_v63 = vld [vmem:[%s27318_s8 + $0x60] sm:$0xff] }
0x17bb   :  { %24257 = vmatpush3.bf16.msra.mxu0 %v26831_v61  ;;  %23335 = vmatprep.mubr.f32.mxu0 %v18376_v48  ;;  %v26874_v48 = vpack.c.bf16 %v18874_v46, %v18871_v8  ;;  %v19438_v22 = vand.u32 4294901760, %v20804_v63 }
0x17bc   :  { %24259 = vmatprep.subr.bf16.mxu0 %v26833_v62 }
0x17bd   :  { %24283 = vmatprep.subr.bf16.mxu1 %v26874_v48 }
0x17be   :  { %24285 = vmatpush3.bf16.msra.mxu1 %v26874_v48 }
0x17bf   :  { %24261 = vmatpush3.bf16.msra.mxu0 %v26833_v62 }
0x17c0   :  { %24263 = vmatprep.subr.bf16.mxu0 %v24262_v38 }
0x17c2   :  { %23336 = vmatmul.mubr.f32.vlgmr.msra.gmra.mrb[32].mxu0 %v18386_v51  ;;  %v20805_v51 = vld [vmem:[%s27318_s8 + $0x68] sm:$0xff] }
0x17c3   :  { %24265 = vmatpush3.bf16.msra.mxu0 %v24262_v38  ;;  %23346 = vmatprep.mubr.f32.mxu0 %v26809_v4  ;;  %v19426_v38 = vand.u32 4294901760, %v20800_v32  ;;  %v19441_v45 = vand.u32 4294901760, %v20805_v51 }
0x17c4   :  { %24267 = vmatprep.subr.bf16.mxu0 %v24266_v58 }
0x17c5   :  { %v26930_v39 = vpack.c.bf16 %v19441_v45, %v19438_v22  ;;  %v19555_v42 = vsub.f32 %v20805_v51, %v19441_v45 }
0x17c7   :  { %24269 = vmatpush3.bf16.msra.mxu0 %v24266_v58  ;;  %v19429_v58 = vand.u32 4294901760, %v20801_v27 }
0x17c8   :  { %24271 = vmatprep.subr.bf16.mxu0 %v26831_v61 }
0x17c9   :  { %v26905_v2 = vpack.c.bf16 %v19429_v58, %v19426_v38  ;;  %v19527_v41 = vsub.f32 %v20801_v27, %v19429_v58 }
0x17ca   :  { %23347 = vmatmul.mubr.f32.vlgmr.msra.gmra.mrb[32].mxu0 %v18384_v18 }
0x17cb   :  { %24273 = vmatpush3.bf16.msra.mxu0 %v26831_v61  ;;  %23357 = vmatprep.mubr.f32.mxu0 %v26809_v4  ;;  %v18956_v4 = vand.u32 4294901760, %v18955_v40  ;;  %v18979_v61 = vand.u32 4294901760, %v18978_v56  ;;  %v19528_v46 = vand.u32 4294901760, %v19527_v41 }
0x17cc   :  { %24275 = vmatprep.subr.bf16.mxu0 %v26833_v62 }
0x17cd   :  { %v18957_v53 = vsub.f32 %v18955_v40, %v18956_v4  ;;  %v24310_v6 = vpack.c.bf16 %v18963_v31, %v18956_v4  ;;  %v19520_v40 = vsub.f32 %v20800_v32, %v19426_v38  ;;  %v19529_v31 = vsub.f32 %v19527_v41, %v19528_v46  ;;  %v25150_v38 = vld [vmem:[%s27311_s1] sm:$0xff] }
0x17ce   :  { %v20024_v58 = vsel %vm762_vm2, %v25150_v38, 0 }
0x17cf   :  { %24277 = vmatpush3.bf16.msra.mxu0 %v26833_v62  ;;  %v18958_v14 = vand.u32 4294901760, %v18957_v53  ;;  %v24290_v62 = vpack.c.bf16 %v18979_v61, %v18972_v57  ;;  %v19521_v8 = vand.u32 4294901760, %v19520_v40  ;;  %v19530_v13 = vand.u32 4294901760, %v19529_v31 }
0x17d0   :  { %24327 = vmatprep.subr.bf16.mxu0 %v26905_v2 }
0x17d1   :  { %v24286_v28 = vpack.c.bf16 %v18965_v19, %v18958_v14  ;;  %v19522_v4 = vsub.f32 %v19520_v40, %v19521_v8 }
0x17d2   :  { %23358 = vmatmul.mubr.f32.vlgmr.msra.gmra.mrb[32].mxu0 %v18384_v18  ;;  %v19435_v18 = vand.u32 4294901760, %v20803_v7 }
0x17d3   :  { %24287 = vmatprep.subr.bf16.mxu1 %v24286_v28  ;;  %24329 = vmatpush3.bf16.msra.mxu0 %v26905_v2  ;;  %v19523_v54 = vand.u32 4294901760, %v19522_v4 }
0x17d4   :  { %v26924_v23 = vpack.c.bf16 %v19435_v18, %v19432_v50  ;;  %v19541_v53 = vsub.f32 %v20803_v7, %v19435_v18 }
0x17d5   :  { %v26939_v19 = vpack.c.bf16 %v19530_v13, %v19523_v54 }
0x17d6   :  { %24331 = vmatprep.subr.bf16.mxu0 %v26924_v23  ;;  %v19542_v14 = vand.u32 4294901760, %v19541_v53 }
0x17d7   :  { %24333 = vmatpush3.bf16.msra.mxu0 %v26924_v23 }
0x17d8   :  { %24335 = vmatprep.subr.bf16.mxu0 %v26930_v39  ;;  %v19543_v29 = vsub.f32 %v19541_v53, %v19542_v14 }
0x17da   :  { %v19544_v57 = vand.u32 4294901760, %v19543_v29 }
0x17db   :  { %24337 = vmatpush3.bf16.msra.mxu0 %v26930_v39 }
0x18a5   :  { %v23359_v16 = vpop.f32.mrb[32].mxu0 }
0x18a6   :  { %v18834_v20 = vadd.f32 %v23359_v16, %v26330_v30  ;;  %v18823_v21 = vpop.f32.mrb[33].mxu0 }
0x18a7   :  { %v18833_v36 = vadd.f32 %v18823_v21, %v26332_v52 }
0x18a8   :  { %v26883_v44 = vadd.f32 %v20793_v43, %v18834_v20 }
0x18a9   :  { %v26885_v60 = vadd.f32 %v20793_v43, %v18833_v36 }
0x18aa   :  { %v18862_v1 = vsel %vm762_vm2, %v26883_v44, 0 }
0x18ab   :  { %v18943_v47 = vand.u32 4294901760, %v18862_v1  ;;  %v18859_v37 = vsel %vm762_vm2, %v26885_v60, 0 }
0x18ac   :  { %v18933_v55 = vand.u32 4294901760, %v18859_v37 }
0x18ad   :  { %v18944_v3 = vsub.f32 %v18862_v1, %v18943_v47 }
0x18ae   :  { %v18934_v10 = vsub.f32 %v18859_v37, %v18933_v55 }
0x18af   :  { %v18945_v11 = vand.u32 4294901760, %v18944_v3 }
0x18b0   :  { %v18935_v25 = vand.u32 4294901760, %v18934_v10 }
0x18b1   :  { %v18946_v30 = vsub.f32 %v18944_v3, %v18945_v11 }
0x18b2   :  { %v18936_v17 = vsub.f32 %v18934_v10, %v18935_v25 }
0x18b3   :  { %v18947_v52 = vand.u32 4294901760, %v18946_v30 }
0x18b4   :  { %v18937_v0 = vand.u32 4294901760, %v18936_v17 }
0x18b6   :  { %23368 = vmatprep.mubr.f32.mxu1 %v18937_v0  ;;  %v26956_v0 = vpack.c.bf16 %v19528_v46, %v19521_v8 }
0x18b7   :  { %23369 = vmatmul.mubr.f32.vlgmr.msra.gmra.mrb[46].mxu1 %v18947_v52 }
0x18b8   :  { %24289 = vmatpush3.bf16.msra.mxu1 %v24286_v28  ;;  %23379 = vmatprep.mubr.f32.mxu1 %v18933_v55  ;;  %v19548_v28 = vsub.f32 %v20804_v63, %v19438_v22  ;;  %v20799_v22 = vld [vmem:[%s27317_s7 + $0x1] ss:$0 sm:$0xff] }
0x18b9   :  { %24291 = vmatprep.subr.bf16.mxu1 %v24290_v62 }
0x18ba   :  { %v19549_v61 = vand.u32 4294901760, %v19548_v28  ;;  %v26952_v30 = vpack.c.bf16 %v19555_v42, %v19548_v28 }
0x18bc   :  { %24293 = vmatpush3.bf16.msra.mxu1 %v24290_v62  ;;  %v19556_v62 = vand.u32 4294901760, %v19555_v42 }
0x18bd   :  { %24295 = vmatprep.subr.bf16.mxu1 %v24294_v5 }
0x18be   :  { %v19557_v16 = vsub.f32 %v19555_v42, %v19556_v62  ;;  %v26960_v32 = vpack.c.bf16 %v19556_v62, %v19549_v61 }
0x18bf   :  { %23380 = vmatmul.mubr.f32.vlgmr.msra.gmra.mrb[46].mxu1 %v18943_v47 }
0x18c0   :  { %24297 = vmatpush3.bf16.msra.mxu1 %v24294_v5  ;;  %23390 = vmatprep.mubr.f32.mxu1 %v18934_v10  ;;  %v19558_v36 = vand.u32 4294901760, %v19557_v16 }
0x18c1   :  { %24299 = vmatprep.subr.bf16.mxu1 %v24298_v12 }
0x18c4   :  { %24301 = vmatpush3.bf16.msra.mxu1 %v24298_v12  ;;  %v19550_v12 = vsub.f32 %v19548_v28, %v19549_v61  ;;  %v25155_v61 = vld [vmem:[%s27311_s1 + $0x28] sm:$0xff] }
0x18c5   :  { %24303 = vmatprep.subr.bf16.mxu1 %v26864_v9  ;;  %v20039_v62 = vsel %vm762_vm2, %v25155_v61, 0 }
0x18c6   :  { %v19551_v43 = vand.u32 4294901760, %v19550_v12 }
0x18c7   :  { %23391 = vmatmul.mubr.f32.vlgmr.msra.gmra.mrb[46].mxu1 %v18944_v3 }
0x18c8   :  { %24305 = vmatpush3.bf16.msra.mxu1 %v26864_v9  ;;  %23401 = vmatprep.mubr.f32.mxu1 %v18935_v25  ;;  %v26944_v37 = vpack.c.bf16 %v19558_v36, %v19551_v43 }
0x18c9   :  { %24307 = vmatprep.subr.bf16.mxu1 %v26874_v48 }
0x18cc   :  { %24309 = vmatpush3.bf16.msra.mxu1 %v26874_v48 }
0x18cd   :  { %24311 = vmatprep.subr.bf16.mxu1 %v24310_v6 }
0x18cf   :  { %23402 = vmatmul.mubr.f32.vlgmr.msra.gmra.mrb[46].mxu1 %v18945_v11  ;;  %v26948_v11 = vpack.c.bf16 %v19527_v41, %v19520_v40 }
0x18d0   :  { %24313 = vmatpush3.bf16.msra.mxu1 %v24310_v6  ;;  %23412 = vmatprep.mubr.f32.mxu1 %v18933_v55  ;;  %v19562_v6 = vsub.f32 %v20806_v59, %v19444_v33 }
0x18d1   :  { %24315 = vmatprep.subr.bf16.mxu1 %v24314_v15 }
0x18d2   :  { %v19563_v20 = vand.u32 4294901760, %v19562_v6 }
0x18d4   :  { %24317 = vmatpush3.bf16.msra.mxu1 %v24314_v15  ;;  %v19564_v1 = vsub.f32 %v19562_v6, %v19563_v20 }
0x18d5   :  { %24319 = vmatprep.subr.bf16.mxu1 %v26864_v9 }
0x18d7   :  { %23413 = vmatmul.mubr.f32.vlgmr.msra.gmra.mrb[46].mxu1 %v18943_v47 }
0x18d8   :  { %24321 = vmatpush3.bf16.msra.mxu1 %v26864_v9  ;;  %23423 = vmatprep.mubr.f32.mxu1 %v18933_v55  ;;  %v19447_v9 = vand.u32 4294901760, %v20807_v49  ;;  %v19565_v55 = vand.u32 4294901760, %v19564_v1 }
0x18d9   :  { %24323 = vmatprep.subr.bf16.mxu1 %v26874_v48 }
0x18da   :  { %v26934_v24 = vpack.c.bf16 %v19447_v9, %v19444_v33  ;;  %v19569_v15 = vsub.f32 %v20807_v49, %v19447_v9  ;;  %v25152_v49 = vld [vmem:[%s27311_s1 + $0x10] sm:$0xff]  ;;  %v25153_v9 = vld [vmem:[%s27311_s1 + $0x18] sm:$0xff] }
0x18db   :  { %v20030_v33 = vsel %vm762_vm2, %v25152_v49, 0  ;;  %v20033_v40 = vsel %vm762_vm2, %v25153_v9, 0  ;;  %v25158_v9 = vld [vmem:[%s27311_s1 + $0x40] sm:$0xff] }
0x18dc   :  { %24325 = vmatpush3.bf16.msra.mxu1 %v26874_v48  ;;  %24339 = vmatprep.subr.bf16.mxu0 %v26934_v24  ;;  %v19534_v48 = vsub.f32 %v20802_v34, %v19432_v50  ;;  %v19570_v21 = vand.u32 4294901760, %v19569_v15  ;;  %v26954_v17 = vpack.c.bf16 %v19569_v15, %v19562_v6  ;;  %v25151_v34 = vld [vmem:[%s27311_s1 + $0x8] sm:$0xff]  ;;  %v20072_v50 = vand.u32 4294901760, %v20024_v58 }
0x18dd   :  { %24341 = vmatpush3.bf16.msra.mxu0 %v26934_v24  ;;  %v20027_v7 = vsel %vm762_vm2, %v25151_v34, 0  ;;  %v20078_v8 = vand.u32 4294901760, %v20030_v33  ;;  %v20081_v46 = vand.u32 4294901760, %v20033_v40 }
0x18de   :  { %v19535_v26 = vand.u32 4294901760, %v19534_v48  ;;  %24343 = vmatprep.subr.bf16.mxu0 %v26939_v19  ;;  %v26950_v25 = vpack.c.bf16 %v19541_v53, %v19534_v48  ;;  %v26962_v27 = vpack.c.bf16 %v19570_v21, %v19563_v20  ;;  %v20075_v18 = vand.u32 4294901760, %v20027_v7 }
0x18df   :  { %23424 = vmatmul.mubr.f32.vlgmr.msra.gmra.mrb[46].mxu1 %v18943_v47  ;;  %v19571_v47 = vsub.f32 %v19569_v15, %v19570_v21  ;;  %v26974_v51 = vsub.f32 %v20024_v58, %v20072_v50  ;;  %v26991_v53 = vpack.c.bf16 %v20081_v46, %v20078_v8  ;;  %v26993_v54 = vsub.f32 %v20030_v33, %v20078_v8  ;;  %v25157_v58 = vld [vmem:[%s27311_s1 + $0x38] sm:$0xff] }
0x18e0   :  { %v19536_v35 = vsub.f32 %v19534_v48, %v19535_v26  ;;  %v26958_v52 = vpack.c.bf16 %v19542_v14, %v19535_v26  ;;  %v26972_v63 = vpack.c.bf16 %v20075_v18, %v20072_v50  ;;  %v26976_v59 = vsub.f32 %v20027_v7, %v20075_v18 }
0x18e1   :  { %v19572_v3 = vand.u32 4294901760, %v19571_v47  ;;  %v26995_v13 = vsub.f32 %v20033_v40, %v20081_v46  ;;  %v20087_v15 = vand.u32 4294901760, %v20039_v62  ;;  %v20045_v34 = vsel %vm762_vm2, %v25157_v58, 0 }
0x18e2   :  { %v19537_v56 = vand.u32 4294901760, %v19536_v35  ;;  %v24486_v45 = vpack.c.bf16 %v26976_v59, %v26974_v51  ;;  %v20093_v50 = vand.u32 4294901760, %v20045_v34  ;;  %v20048_v40 = vsel %vm762_vm2, %v25158_v9, 0 }
0x18e3   :  { %v26946_v10 = vpack.c.bf16 %v19572_v3, %v19565_v55  ;;  %v24490_v35 = vpack.c.bf16 %v26995_v13, %v26993_v54  ;;  %v27011_v36 = vsub.f32 %v20039_v62, %v20087_v15  ;;  %v25156_v3 = vld [vmem:[%s27311_s1 + $0x30] sm:$0xff] }
0x18e4   :  { %v26942_v5 = vpack.c.bf16 %v19544_v57, %v19537_v56  ;;  %24487 = vmatprep.subr.bf16.mxu1 %v24486_v45  ;;  %v25154_v56 = vld [vmem:[%s27311_s1 + $0x20] sm:$0xff]  ;;  %v20042_v38 = vsel %vm762_vm2, %v25156_v3, 0 }
0x18e5   :  { %24489 = vmatpush3.bf16.xpose.msra.mxu1 %v24486_v45  ;;  %v20036_v57 = vsel %vm762_vm2, %v25154_v56, 0  ;;  %v20090_v7 = vand.u32 4294901760, %v20042_v38  ;;  %v27027_v45 = vsub.f32 %v20045_v34, %v20093_v50 }
0x18e6   :  { %24491 = vmatprep.subr.bf16.mxu1 %v24490_v35  ;;  %v20084_v6 = vand.u32 4294901760, %v20036_v57 }
0x18e7   :  { %v27023_v18 = vpack.c.bf16 %v20093_v50, %v20090_v7 }
0x18e8   :  { %v27007_v20 = vpack.c.bf16 %v20087_v15, %v20084_v6  ;;  %v27009_v21 = vsub.f32 %v20036_v57, %v20084_v6 }
0x18ea   :  { %v24494_v55 = vpack.c.bf16 %v27011_v36, %v27009_v21 }
0x18ed   :  { %24493 = vmatpush3.bf16.xpose.msra.mxu1 %v24490_v35 }
0x18ee   :  { %24495 = vmatprep.subr.bf16.mxu1 %v24494_v55 }
0x18f5   :  { %24497 = vmatpush3.bf16.xpose.msra.mxu1 %v24494_v55 }
0x19b2   :  { %v23425_v41 = vpop.f32.mrb[46].mxu1 }
0x19b3   :  { %v24636_v4 = vadd.f32 %v23425_v41, %v20799_v22  ;;  %v19382_v31 = vpop.f32.mrb[47].mxu1  ;;  %v25159_v41 = vld [vmem:[%s27311_s1 + $0x48] sm:$0xff] }
0x19b4   :  { %v24637_v48 = vadd.f32 %v20799_v22, %v19382_v31  ;;  %v27025_v22 = vsub.f32 %v20042_v38, %v20090_v7  ;;  %v20051_v8 = vsel %vm762_vm2, %v25159_v41, 0 }
0x19b5   :  { %v19395_v26 = vmul.f32 0.044715, %v24636_v4  ;;  %v19393_v31 = vmul.f32 0.5, %v24636_v4  ;;  %v20099_v35 = vand.u32 4294901760, %v20051_v8 }
0x19b6   :  { %v19394_v14 = vmul.f32 0.044715, %v24637_v48  ;;  %v24498_v49 = vpack.c.bf16 %v27027_v45, %v27025_v22 }
0x19b7   :  { %v19397_v29 = vmul.f32 %v24636_v4, %v19395_v26  ;;  %v27043_v61 = vsub.f32 %v20051_v8, %v20099_v35 }
0x19b8   :  { %v19396_v28 = vmul.f32 %v24637_v48, %v19394_v14  ;;  %24499 = vmatprep.subr.bf16.mxu1 %v24498_v49  ;;  %v20096_v14 = vand.u32 4294901760, %v20048_v40 }
0x19b9   :  { %v19399_v42 = vmul.f32 %v24636_v4, %v19397_v29  ;;  %v19392_v29 = vmul.f32 0.5, %v24637_v48  ;;  %24501 = vmatpush3.bf16.xpose.msra.mxu1 %v24498_v49 }
0x19ba   :  { %v19398_v12 = vmul.f32 %v24637_v48, %v19396_v28  ;;  %v27039_v56 = vpack.c.bf16 %v20099_v35, %v20096_v14  ;;  %v27041_v57 = vsub.f32 %v20048_v40, %v20096_v14  ;;  %v25163_v14 = vld [vmem:[%s27311_s1 + $0x68] sm:$0xff] }
0x19bb   :  { %v19401_v16 = vadd.f32 %v24636_v4, %v19399_v42  ;;  %v20063_v35 = vsel %vm762_vm2, %v25163_v14, 0  ;;  %v20203_v14 = vand.u32 4294901760, %v27009_v21 }
0x19bc   :  { %v19400_v43 = vadd.f32 %v24637_v48, %v19398_v12  ;;  %v24502_v6 = vpack.c.bf16 %v27043_v61, %v27041_v57 }
0x19bd   :  { %v19403_v1 = vmul.f32 0.7978846, %v19401_v16 }
0x19be   :  { %v19402_v47 = vmul.f32 0.7978846, %v19400_v43  ;;  %24503 = vmatprep.subr.bf16.mxu1 %v24502_v6  ;;  %v25160_v43 = vld [vmem:[%s27311_s1 + $0x50] sm:$0xff] }
0x19bf   :  { %25146 = vtanh.f32 %v19403_v1  ;;  %v20054_v1 = vsel %vm762_vm2, %v25160_v43, 0 }
0x19c0   :  { %25148 = vtanh.f32 %v19402_v47  ;;  %v25161_v47 = vld [vmem:[%s27311_s1 + $0x58] sm:$0xff]  ;;  %v20102_v38 = vand.u32 4294901760, %v20054_v1 }
0x19c1   :  { %v20057_v55 = vsel %vm762_vm2, %v25161_v47, 0  ;;  %24505 = vmatpush3.bf16.xpose.msra.mxu1 %v24502_v6 }
0x19c2   :  { %v20105_v58 = vand.u32 4294901760, %v20057_v55  ;;  %v27068_v49 = vsub.f32 %v20054_v1, %v20102_v38 }
0x19c4   :  { %v27066_v50 = vpack.c.bf16 %v20105_v58, %v20102_v38 }
0x19c9   :  { %v25147_v33 = vpop.eup %25146 }
0x19ca   :  { %v25149_v46 = vpop.eup %25148  ;;  %v19407_v26 = vadd.f32 1.0, %v25147_v33  ;;  %v27070_v33 = vsub.f32 %v20057_v55, %v20105_v58 }
0x19cb   :  { %v19406_v28 = vadd.f32 1.0, %v25149_v46 }
0x19cc   :  { %v19409_v42 = vmul.f32 %v19407_v26, %v19393_v31  ;;  %v24506_v41 = vpack.c.bf16 %v27070_v33, %v27068_v49  ;;  %v25162_v31 = vld [vmem:[%s27311_s1 + $0x60] sm:$0xff] }
0x19cd   :  { %v19408_v62 = vmul.f32 %v19406_v28, %v19392_v29  ;;  %v20060_v26 = vsel %vm762_vm2, %v25162_v31, 0  ;;  %v20111_v28 = vand.u32 4294901760, %v20063_v35 }
0x19ce   :  { %v19423_v12 = vsel %vm9789_vm9, %v19409_v42, 0  ;;  %24507 = vmatprep.subr.bf16.mxu1 %v24506_v41  ;;  %v20108_v29 = vand.u32 4294901760, %v20060_v26 }
0x19cf   :  { %v19420_v4 = vsel %vm9789_vm9, %v19408_v62, 0  ;;  %v27049_v15 = vand.u32 4294901760, %v19423_v12  ;;  %24509 = vmatpush3.bf16.xpose.msra.mxu1 %v24506_v41 }
0x19d0   :  { %v27051_v48 = vand.u32 4294901760, %v19420_v4  ;;  %v27085_v42 = vpack.c.bf16 %v20111_v28, %v20108_v29  ;;  %v27087_v62 = vsub.f32 %v20060_v26, %v20108_v29 }
0x19d1   :  { %v27054_v16 = vsub.f32 %v19423_v12, %v27049_v15  ;;  %v27089_v12 = vsub.f32 %v20063_v35, %v20111_v28  ;;  %v20210_v35 = vand.u32 4294901760, %v27011_v36 }
0x19d2   :  { %v19499_v3 = vsub.f32 %v19420_v4, %v27051_v48 }
0x19d3   :  { %v19510_v34 = vand.u32 4294901760, %v27054_v16  ;;  %v24510_v6 = vpack.c.bf16 %v27089_v12, %v27087_v62 }
0x19d4   :  { %v19500_v7 = vand.u32 4294901760, %v19499_v3 }
0x19d5   :  { %v19511_v9 = vsub.f32 %v27054_v16, %v19510_v34  ;;  %24511 = vmatprep.subr.bf16.mxu1 %v24510_v6 }
0x19d6   :  { %v19501_v40 = vsub.f32 %v19499_v3, %v19500_v7 }
0x19d7   :  { %v19512_v46 = vand.u32 4294901760, %v19511_v9  ;;  %24513 = vmatpush3.bf16.xpose.msra.mxu1 %v24510_v6 }
0x19d8   :  { %v19502_v8 = vand.u32 4294901760, %v19501_v40 }
0x19da   :  { %23442 = vmatprep.mubr.f32.mxu0 %v19502_v8 }
0x19db   :  { %23443 = vmatmul.mubr.f32.vlgmr.msra.gmra.mrb[34].mxu0 %v19512_v46 }
0x19dc   :  { %24345 = vmatpush3.bf16.msra.mxu0 %v26939_v19  ;;  %23461 = vmatprep.mubr.f32.mxu0 %v27051_v48 }
0x19dd   :  { %24347 = vmatprep.subr.bf16.mxu0 %v26942_v5 }
0x19e0   :  { %24349 = vmatpush3.bf16.msra.mxu0 %v26942_v5 }
0x19e1   :  { %24351 = vmatprep.subr.bf16.mxu0 %v26944_v37 }
0x19e4   :  { %24353 = vmatpush3.bf16.msra.mxu0 %v26944_v37 }
0x19e5   :  { %24355 = vmatprep.subr.bf16.mxu0 %v26946_v10 }
0x19e8   :  { %24357 = vmatpush3.bf16.msra.mxu0 %v26946_v10 }
0x19e9   :  { %24359 = vmatprep.subr.bf16.mxu0 %v26948_v11 }
0x19eb   :  { %23462 = vmatmul.mubr.f32.vlgmr.msra.gmra.mrb[34].mxu0 %v27049_v15 }
0x19ec   :  { %24361 = vmatpush3.bf16.msra.mxu0 %v26948_v11  ;;  %23480 = vmatprep.mubr.f32.mxu0 %v19499_v3  ;;  %v20196_v3 = vand.u32 4294901760, %v26995_v13 }
0x19ed   :  { %24363 = vmatprep.subr.bf16.mxu0 %v26950_v25 }
0x19ee   :  { %v20197_v9 = vsub.f32 %v26995_v13, %v20196_v3 }
0x19f0   :  { %24365 = vmatpush3.bf16.msra.mxu0 %v26950_v25  ;;  %v20198_v26 = vand.u32 4294901760, %v20197_v9 }
0x19f1   :  { %24367 = vmatprep.subr.bf16.mxu0 %v26952_v30 }
0x19f4   :  { %24369 = vmatpush3.bf16.msra.mxu0 %v26952_v30  ;;  %v20175_v30 = vand.u32 4294901760, %v26974_v51 }
0x19f5   :  { %24371 = vmatprep.subr.bf16.mxu0 %v26954_v17 }
0x19f8   :  { %24373 = vmatpush3.bf16.msra.mxu0 %v26954_v17  ;;  %v20182_v17 = vand.u32 4294901760, %v26976_v59 }
0x19f9   :  { %24375 = vmatprep.subr.bf16.mxu0 %v26905_v2 }
0x19fb   :  { %23481 = vmatmul.mubr.f32.vlgmr.msra.gmra.mrb[34].mxu0 %v27054_v16  ;;  %v20809_v16 = vld [vmem:[%s27319_s9 + $0x1] ss:$0 sm:$0xff]  ;;  %s25209_s9 = smov [#allocation3]  }
0x19fc   :  { %24377 = vmatpush3.bf16.msra.mxu0 %v26905_v2  ;;  %23499 = vmatprep.mubr.f32.mxu0 %v19500_v7  ;;  %s20762_s6 = sshll.u32 %s25209_s9, 4  ;;  %s20763_s6 = int_to_ptr.vmem [resolvable:$true] %s20762_s6 }
0x19fd   :  { %24379 = vmatprep.subr.bf16.mxu0 %v26924_v23  ;;  %s25166_s16 = scalar_lea.vmem %s20763_s6, 256  ;;  %p25171_p1 = scmp.lt.s32.totalorder %s20763_s6, %s20763_s6 }
0x19fe   :  { %p25167_p0 = scmp.ne.s32.totalorder %s20763_s6, %s25166_s16  ;;  %p25172_p2 = scmp.lt.s32.totalorder %s25166_s16, %s25166_s16 }
0x1a00   :  { %24381 = vmatpush3.bf16.msra.mxu0 %v26924_v23  ;;  %p25173_p3 = por %p25172_p2, %p25171_p1 }
0x1a01   :  { %24383 = vmatprep.subr.bf16.mxu0 %v26930_v39 }
0x1a02   :  { %p25174_p4 = pnand %p25173_p3, %p25167_p0 }
0x1a04   :  { %24385 = vmatpush3.bf16.msra.mxu0 %v26930_v39 }
0x1a05   :  { %24387 = vmatprep.subr.bf16.mxu0 %v26934_v24 }
0x1a08   :  { %24389 = vmatpush3.bf16.msra.mxu0 %v26934_v24 }
0x1a09   :  { %24391 = vmatprep.subr.bf16.mxu0 %v26956_v0 }
0x1a0b   :  { %23500 = vmatmul.mubr.f32.vlgmr.msra.gmra.mrb[34].mxu0 %v19510_v34 }
0x1a0c   :  { %24393 = vmatpush3.bf16.msra.mxu0 %v26956_v0  ;;  %23518 = vmatprep.mubr.f32.mxu0 %v27051_v48  ;;  %v20176_v0 = vsub.f32 %v26974_v51, %v20175_v30  ;;  %v20189_v51 = vand.u32 4294901760, %v26993_v54 }
0x1a0d   :  { %24395 = vmatprep.subr.bf16.mxu0 %v26958_v52 }
0x1a10   :  { %24397 = vmatpush3.bf16.msra.mxu0 %v26958_v52  ;;  %v20183_v52 = vsub.f32 %v26976_v59, %v20182_v17 }
0x1a11   :  { %24399 = vmatprep.subr.bf16.mxu0 %v26960_v32 }
0x1a14   :  { %24401 = vmatpush3.bf16.msra.mxu0 %v26960_v32  ;;  %v20177_v32 = vand.u32 4294901760, %v20176_v0 }
0x1a15   :  { %24403 = vmatprep.subr.bf16.mxu0 %v26962_v27 }
0x1a18   :  { %24405 = vmatpush3.bf16.msra.mxu0 %v26962_v27  ;;  %v20184_v27 = vand.u32 4294901760, %v20183_v52 }
0x1a19   :  { %24407 = vmatprep.subr.bf16.mxu0 %v26905_v2 }
0x1a1a   :  { %v24454_v4 = vpack.c.bf16 %v20184_v27, %v20177_v32  ;;  %v20231_v27 = vand.u32 4294901760, %v27041_v57 }
0x1a1b   :  { %23519 = vmatmul.mubr.f32.vlgmr.msra.gmra.mrb[34].mxu0 %v27049_v15 }
0x1a1c   :  { %24409 = vmatpush3.bf16.msra.mxu0 %v26905_v2  ;;  %23537 = vmatprep.mubr.f32.mxu0 %v27051_v48  ;;  %v25164_v2 = vld [vmem:[%s27311_s1 + $0x70] sm:$0xff] }
0x1a1d   :  { %24411 = vmatprep.subr.bf16.mxu0 %v26924_v23 }
0x1a20   :  { %24413 = vmatpush3.bf16.msra.mxu0 %v26924_v23  ;;  %v20066_v23 = vsel %vm762_vm2, %v25164_v2, 0 }
0x1a21   :  { %24415 = vmatprep.subr.bf16.mxu0 %v26930_v39  ;;  %v20114_v19 = vand.u32 4294901760, %v20066_v23 }
0x1a23   :  { %v27159_v37 = vsub.f32 %v20066_v23, %v20114_v19  ;;  %v20204_v23 = vsub.f32 %v27009_v21, %v20203_v14 }
0x1a24   :  { %24417 = vmatpush3.bf16.msra.mxu0 %v26930_v39  ;;  %v25165_v39 = vld [vmem:[%s27311_s1 + $0x78] sm:$0xff] }
0x1a25   :  { %24419 = vmatprep.subr.bf16.mxu0 %v26934_v24 }
0x1a28   :  { %24421 = vmatpush3.bf16.msra.mxu0 %v26934_v24  ;;  %v20069_v24 = vsel %vm762_vm2, %v25165_v39, 0  ;;  %v20211_v39 = vsub.f32 %v27011_v36, %v20210_v35 }
0x1a29   :  { %24423 = vmatprep.subr.bf16.mxu0 %v26972_v63  ;;  %v20117_v5 = vand.u32 4294901760, %v20069_v24 }
0x1a2b   :  { %23538 = vmatmul.mubr.f32.vlgmr.msra.gmra.mrb[34].mxu0 %v27049_v15  ;;  %v27161_v10 = vsub.f32 %v20069_v24, %v20117_v5  ;;  %v27166_v25 = vpack.c.bf16 %v20117_v5, %v20114_v19  ;;  %v27174_v15 = vpack.c.bf16 %v20182_v17, %v20175_v30  ;;  %v20205_v24 = vand.u32 4294901760, %v20204_v23 }
0x1a2c   :  { %v20212_v19 = vand.u32 4294901760, %v20211_v39  ;;  %v20217_v5 = vand.u32 4294901760, %v27025_v22 }
0x1a2d   :  { %v24514_v11 = vpack.c.bf16 %v27161_v10, %v27159_v37 }
0x1a2e   :  { %v24462_v30 = vpack.c.bf16 %v20212_v19, %v20205_v24  ;;  %v20218_v17 = vsub.f32 %v27025_v22, %v20217_v5 }
0x1a2f   :  { %24515 = vmatprep.subr.bf16.mxu1 %v24514_v11 }
0x1a30   :  { %24517 = vmatpush3.bf16.xpose.msra.mxu1 %v24514_v11  ;;  %v20224_v11 = vand.u32 4294901760, %v27027_v45  ;;  %v20219_v52 = vand.u32 4294901760, %v20218_v17 }
0x1a31   :  { %24425 = vmatpush3.bf16.xpose.msra.mxu0 %v26972_v63  ;;  %24519 = vmatprep.subr.bf16.mxu1 %v26972_v63 }
0x1a32   :  { %24427 = vmatprep.subr.bf16.mxu0 %v26991_v53  ;;  %v20225_v0 = vsub.f32 %v27027_v45, %v20224_v11 }
0x1a34   :  { %v20226_v32 = vand.u32 4294901760, %v20225_v0 }
0x1a39   :  { %24429 = vmatpush3.bf16.xpose.msra.mxu0 %v26991_v53 }
0x1a3a   :  { %24431 = vmatprep.subr.bf16.mxu0 %v27007_v20 }
0x1a41   :  { %24433 = vmatpush3.bf16.xpose.msra.mxu0 %v27007_v20 }
0x1a42   :  { %24435 = vmatprep.subr.bf16.mxu0 %v27023_v18 }
0x1a49   :  { %24437 = vmatpush3.bf16.xpose.msra.mxu0 %v27023_v18 }
0x1a4a   :  { %24439 = vmatprep.subr.bf16.mxu0 %v27039_v56 }
0x1a51   :  { %24441 = vmatpush3.bf16.xpose.msra.mxu0 %v27039_v56 }
0x1a52   :  { %24443 = vmatprep.subr.bf16.mxu0 %v27066_v50 }
0x1a59   :  { %24445 = vmatpush3.bf16.xpose.msra.mxu0 %v27066_v50 }
0x1a5a   :  { %24447 = vmatprep.subr.bf16.mxu0 %v27085_v42 }
0x1a61   :  { %24449 = vmatpush3.bf16.xpose.msra.mxu0 %v27085_v42 }
0x1a62   :  { %24451 = vmatprep.subr.bf16.mxu0 %v27166_v25 }
0x1a69   :  { %24453 = vmatpush3.bf16.xpose.msra.mxu0 %v27166_v25 }
0x1a6a   :  { %24455 = vmatprep.subr.bf16.mxu0 %v24454_v4 }
0x1afe   :  { %v23539_v48 = vpop.f32.mrb[34].mxu0 }
0x1aff   :  { %v20006_v43 = vadd.f32 %v23539_v48, %v26883_v44  ;;  %v19995_v1 = vpop.f32.mrb[35].mxu0  ;;  %v20190_v44 = vsub.f32 %v26993_v54, %v20189_v51  ;;  %v24466_v48 = vpack.c.bf16 %v20226_v32, %v20219_v52  ;;  %v24562_v54 = vpack.c.bf16 %v20224_v11, %v20217_v5 }
0x1b00   :  { %v20005_v47 = vadd.f32 %v19995_v1, %v26885_v60 }
0x1b01   :  { %v20016_v55 = vadd.f32 %v20809_v16, %v20006_v43  ;;  %v20191_v46 = vand.u32 4294901760, %v20190_v44 }
0x1b02   :  { %v20015_v59 = vadd.f32 %v20809_v16, %v20005_v47  ;;  %v20232_v16 = vsub.f32 %v27041_v57, %v20231_v27 }
0x1b03   :  { %v20021_v38 = vsel %vm762_vm2, %v20016_v55, 0  ;;  %v24458_v2 = vpack.c.bf16 %v20198_v26, %v20191_v46  ;;  %v20245_v55 = vand.u32 4294901760, %v27068_v49  ;;  %v20266_v46 = vand.u32 4294901760, %v27089_v12 }
0x1b04   :  { %v27184_v58 = vand.u32 4294901760, %v20021_v38  ;;  %v20018_v34 = vsel %vm762_vm2, %v20015_v59, 0  ;;  %v20233_v1 = vand.u32 4294901760, %v20232_v16  ;;  %v20252_v59 = vand.u32 4294901760, %v27070_v33 }
0x1b05   :  { %v27187_v7 = vand.u32 4294901760, %v20018_v34 }
0x1b06   :  { %v27193_v60 = vsub.f32 %v20021_v38, %v27184_v58  ;;  %v20253_v44 = vsub.f32 %v27070_v33, %v20252_v59  ;;  %v24570_v21 = vpack.c.bf16 %v20252_v59, %v20245_v55 }
0x1b07   :  { %v20153_v40 = vsub.f32 %v20018_v34, %v27187_v7  ;;  %v20246_v34 = vsub.f32 %v27068_v49, %v20245_v55 }
0x1b08   :  { %v20164_v41 = vand.u32 4294901760, %v27193_v60 }
0x1b09   :  { %23642 = vmatprep.mubr.f32.mxu1 %v20153_v40  ;;  %v20154_v8 = vand.u32 4294901760, %v20153_v40  ;;  %v20247_v9 = vand.u32 4294901760, %v20246_v34 }
0x1b0a   :  { %23643 = vmatmul.mubr.f32.vlgmr.msra.gmra.mrb[48].mxu1 %v27193_v60  ;;  %v20165_v31 = vsub.f32 %v27193_v60, %v20164_v41 }
0x1b0b   :  { %24521 = vmatpush3.bf16.xpose.msra.mxu1 %v26972_v63  ;;  %23677 = vmatprep.mubr.f32.mxu1 %v20154_v8  ;;  %v20155_v29 = vsub.f32 %v20153_v40, %v20154_v8  ;;  %v20254_v40 = vand.u32 4294901760, %v20253_v44  ;;  %v20259_v8 = vand.u32 4294901760, %v27087_v62 }
0x1b0c   :  { %24523 = vmatprep.subr.bf16.mxu1 %v26991_v53  ;;  %v20166_v6 = vand.u32 4294901760, %v20165_v31 }
0x1b0d   :  { %v20156_v28 = vand.u32 4294901760, %v20155_v29  ;;  %v24474_v31 = vpack.c.bf16 %v20254_v40, %v20247_v9  ;;  %v20260_v26 = vsub.f32 %v27087_v62, %v20259_v8  ;;  %v20267_v29 = vsub.f32 %v27089_v12, %v20266_v46 }
0x1b0e   :  { %v24574_v36 = vpack.c.bf16 %v20266_v46, %v20259_v8 }
0x1b0f   :  { %23572 = vmatprep.mubr.f32.mxu0 %v20156_v28  ;;  %v20261_v49 = vand.u32 4294901760, %v20260_v26  ;;  %v20268_v33 = vand.u32 4294901760, %v20267_v29  ;;  %v20273_v28 = vand.u32 4294901760, %v27159_v37 }
0x1b10   :  { %23573 = vmatmul.mubr.f32.vlgmr.msra.gmra.mrb[36].mxu0 %v20166_v6  ;;  %v20280_v6 = vand.u32 4294901760, %v27161_v10 }
0x1b11   :  { %24457 = vmatpush3.bf16.xpose.msra.mxu0 %v24454_v4  ;;  %23607 = vmatprep.mubr.f32.mxu0 %v27187_v7  ;;  %v20238_v4 = vand.u32 4294901760, %v27043_v61  ;;  %v20274_v23 = vsub.f32 %v27159_v37, %v20273_v28  ;;  %v24554_v37 = vpack.c.bf16 %v20196_v3, %v20189_v51 }
0x1b12   :  { %24459 = vmatprep.subr.bf16.mxu0 %v24458_v2  ;;  %v20281_v39 = vsub.f32 %v27161_v10, %v20280_v6  ;;  %v24558_v10 = vpack.c.bf16 %v20210_v35, %v20203_v14 }
0x1b13   :  { %24525 = vmatpush3.bf16.xpose.msra.mxu1 %v26991_v53  ;;  %v20239_v43 = vsub.f32 %v27043_v61, %v20238_v4  ;;  %v20275_v62 = vand.u32 4294901760, %v20274_v23  ;;  %v24566_v13 = vpack.c.bf16 %v20238_v4, %v20231_v27 }
0x1b14   :  { %24527 = vmatprep.subr.bf16.mxu1 %v27007_v20  ;;  %v20282_v12 = vand.u32 4294901760, %v20281_v39 }
0x1b15   :  { %v20240_v47 = vand.u32 4294901760, %v20239_v43 }
0x1b16   :  { %v24482_v24 = vpack.c.bf16 %v20282_v12, %v20275_v62 }
0x1b17   :  { %v24470_v38 = vpack.c.bf16 %v20240_v47, %v20233_v1 }
0x1b19   :  { %24461 = vmatpush3.bf16.xpose.msra.mxu0 %v24458_v2  ;;  %v24478_v2 = vpack.c.bf16 %v20268_v33, %v20261_v49 }
0x1b1a   :  { %24463 = vmatprep.subr.bf16.mxu0 %v24462_v30 }
0x1b1b   :  { %24529 = vmatpush3.bf16.xpose.msra.mxu1 %v27007_v20 }
0x1b1c   :  { %24531 = vmatprep.subr.bf16.mxu1 %v27023_v18 }
0x1b21   :  { %24465 = vmatpush3.bf16.xpose.msra.mxu0 %v24462_v30 }
0x1b22   :  { %24467 = vmatprep.subr.bf16.mxu0 %v24466_v48 }
0x1b23   :  { %24533 = vmatpush3.bf16.xpose.msra.mxu1 %v27023_v18 }
0x1b24   :  { %24535 = vmatprep.subr.bf16.mxu1 %v27039_v56 }
0x1b29   :  { %24469 = vmatpush3.bf16.xpose.msra.mxu0 %v24466_v48 }
0x1b2a   :  { %24471 = vmatprep.subr.bf16.mxu0 %v24470_v38 }
0x1b2b   :  { %24537 = vmatpush3.bf16.xpose.msra.mxu1 %v27039_v56 }
0x1b2c   :  { %24539 = vmatprep.subr.bf16.mxu1 %v27066_v50 }
0x1b31   :  { %24473 = vmatpush3.bf16.xpose.msra.mxu0 %v24470_v38 }
0x1b32   :  { %24475 = vmatprep.subr.bf16.mxu0 %v24474_v31 }
0x1b33   :  { %24541 = vmatpush3.bf16.xpose.msra.mxu1 %v27066_v50 }
0x1b34   :  { %24543 = vmatprep.subr.bf16.mxu1 %v27085_v42 }
0x1b39   :  { %24477 = vmatpush3.bf16.xpose.msra.mxu0 %v24474_v31 }
0x1b3a   :  { %24479 = vmatprep.subr.bf16.mxu0 %v24478_v2 }
0x1b3b   :  { %24545 = vmatpush3.bf16.xpose.msra.mxu1 %v27085_v42 }
0x1b3c   :  { %24547 = vmatprep.subr.bf16.mxu1 %v27166_v25 }
0x1b41   :  { %24481 = vmatpush3.bf16.xpose.msra.mxu0 %v24478_v2 }
0x1b42   :  { %24483 = vmatprep.subr.bf16.mxu0 %v24482_v24 }
0x1b43   :  { %24549 = vmatpush3.bf16.xpose.msra.mxu1 %v27166_v25 }
0x1b44   :  { %24551 = vmatprep.subr.bf16.mxu1 %v27174_v15 }
0x1b49   :  { %24485 = vmatpush3.bf16.xpose.msra.mxu0 %v24482_v24 }
0x1b4a   :  { %23678 = vmatmul.mubr.f32.vlgmr.msra.gmra.mrb[48].mxu1 %v20164_v41 }
0x1b4b   :  { %24553 = vmatpush3.bf16.xpose.msra.mxu1 %v27174_v15  ;;  %23712 = vmatprep.mubr.f32.mxu1 %v27187_v7  ;;  %v24578_v15 = vpack.c.bf16 %v20280_v6, %v20273_v28 }
0x1b4c   :  { %24555 = vmatprep.subr.bf16.mxu1 %v24554_v37 }
0x1b50   :  { %23608 = vmatmul.mubr.f32.vlgmr.msra.gmra.mrb[36].mxu0 %v27184_v58 }
0x1b53   :  { %24557 = vmatpush3.bf16.xpose.msra.mxu1 %v24554_v37 }
0x1b54   :  { %24559 = vmatprep.subr.bf16.mxu1 %v24558_v10 }
0x1b5b   :  { %24561 = vmatpush3.bf16.xpose.msra.mxu1 %v24558_v10 }
0x1b5c   :  { %24563 = vmatprep.subr.bf16.mxu1 %v24562_v54 }
0x1b63   :  { %24565 = vmatpush3.bf16.xpose.msra.mxu1 %v24562_v54 }
0x1b64   :  { %24567 = vmatprep.subr.bf16.mxu1 %v24566_v13 }
0x1b6b   :  { %24569 = vmatpush3.bf16.xpose.msra.mxu1 %v24566_v13 }
0x1b6c   :  { %24571 = vmatprep.subr.bf16.mxu1 %v24570_v21 }
0x1b73   :  { %24573 = vmatpush3.bf16.xpose.msra.mxu1 %v24570_v21 }
0x1b74   :  { %24575 = vmatprep.subr.bf16.mxu1 %v24574_v36 }
0x1b7b   :  { %24577 = vmatpush3.bf16.xpose.msra.mxu1 %v24574_v36 }
0x1b7c   :  { %24579 = vmatprep.subr.bf16.mxu1 %v24578_v15 }
0x1b83   :  { %24581 = vmatpush3.bf16.xpose.msra.mxu1 %v24578_v15 }
0x1b84   :  { %24583 = vmatprep.subr.bf16.mxu1 %v26972_v63 }
0x1b8a   :  { %23713 = vmatmul.mubr.f32.vlgmr.msra.gmra.mrb[48].mxu1 %v27184_v58 }
0x1b8b   :  { %24585 = vmatpush3.bf16.xpose.msra.mxu1 %v26972_v63  ;;  %23747 = vmatprep.mubr.f32.mxu1 %v27187_v7 }
0x1b8c   :  { %24587 = vmatprep.subr.bf16.mxu1 %v26991_v53 }
0x1b93   :  { %24589 = vmatpush3.bf16.xpose.msra.mxu1 %v26991_v53 }
0x1b94   :  { %24591 = vmatprep.subr.bf16.mxu1 %v27007_v20 }
0x1b9b   :  { %24593 = vmatpush3.bf16.xpose.msra.mxu1 %v27007_v20 }
0x1b9c   :  { %24595 = vmatprep.subr.bf16.mxu1 %v27023_v18 }
0x1ba3   :  { %24597 = vmatpush3.bf16.xpose.msra.mxu1 %v27023_v18 }
0x1ba4   :  { %24599 = vmatprep.subr.bf16.mxu1 %v27039_v56 }
0x1bab   :  { %24601 = vmatpush3.bf16.xpose.msra.mxu1 %v27039_v56 }
0x1bac   :  { %24603 = vmatprep.subr.bf16.mxu1 %v27066_v50 }
0x1bb3   :  { %24605 = vmatpush3.bf16.xpose.msra.mxu1 %v27066_v50 }
0x1bb4   :  { %24607 = vmatprep.subr.bf16.mxu1 %v27085_v42 }
0x1bbb   :  { %24609 = vmatpush3.bf16.xpose.msra.mxu1 %v27085_v42 }
0x1bbc   :  { %24611 = vmatprep.subr.bf16.mxu1 %v27166_v25 }
0x1bc3   :  { %24613 = vmatpush3.bf16.xpose.msra.mxu1 %v27166_v25 }
0x1bca   :  { %23748 = vmatmul.mubr.f32.vlgmr.msra.gmra.mrb[48].mxu1 %v27184_v58 }
0x1c23   :  { %v23609_v63 = vpop.f32.mrb[36].mxu0 }
0x1c24   :  { %v20319_v53 = vpop.f32.mrb[37].mxu0 }
0x1c9d   :  { %v23749_v20 = vpop.f32.mrb[48].mxu1 }
0x1c9e   :  { %v24638_v18 = vadd.f32 %v23749_v20, %v23609_v63  ;;  %v20745_v22 = vpop.f32.mrb[49].mxu1 }
0x1c9f   :  { %v24639_v45 = vadd.f32 %v20745_v22, %v20319_v53 }
0x1ca0   :  { %20756 = vst [vmem:[#allocation3 + $0x8] sm:$0xff] %v24638_v18 }
0x1ca1   :  { %20755 = vst [vmem:[#allocation3] sm:$0xff] %v24639_v45 }
0x1ca2   :  { %25177 = shalt.err (!%p25174_p4)
}
0x1ca3   :  { %s25178_s17 = scalar_lea.hbm %s27320_s10, 256 }
0x1ca4   :  { %p25179_p5 = scmp.ne.s32.totalorder %s27320_s10, %s25178_s17  ;;  %p25182_p6 = scmp.lt.u32.totalorder %s25178_s17, %s27320_s10 }
0x1ca6   :  { %p25184_p7 = pnand %p25182_p6, %p25179_p5 }
0x1ca8   :  { %25187 = shalt.err (!%p25184_p7)
}
0x1ca9   :  { %s25210_s19 = smov 128  }
0x1caa   :  { %20768 = dma.vmem_to_hbm [thread:$0]  %s20763_s6, 256, %s27320_s10, [#allocation4], %s25210_s19, %s25210_s19, %s25206_s29  }
0x1cab   :  { %25188 = dma.done.wait [#allocation4], 256  }
0x1cac   :  { %25189 = vsyncadd [#allocation4], 4294967040 }
0x1cad   :  { %20772 = vsyncpa [#allocation4], 1 }

</bundles_post_ra>
